<compile_context>
chip_gen: v7x
topology: tpu7x:2x2x1
jax: 0.10.0
libtpu: 0.0.40
codegen_flags: <defaults>
</compile_context>

<pallas_src>
import math
from functools import partial

import jax
import jax.numpy as jnp
import numpy as np
from jax import lax
from jax.experimental import pallas as pl
from jax.experimental.pallas import tpu as pltpu

_LANE = 128   # TPU lane width (samples per group)
_SUB = 8      # sublane rows per compute sub-slab (one f32 vreg)


def _k_lm(l: int, m: int) -> float:
    """sqrt((2l+1)/(4*pi) * (l-m)!/(l+m)!), computed stably."""
    ratio = 1.0
    for k in range(l - m + 1, l + m + 1):
        ratio /= float(k)
    return math.sqrt((2 * l + 1) / (4.0 * math.pi) * ratio)


def _sh_compute(x, y, z, l_max: int, emit):
    """Evaluate all Y_{l,m} for one slab of normalized directions.

    x, y, z: float32 arrays of identical shape (unit vectors).
    emit(j, arr): called exactly once per (l, m) with j = l*l + l + m and
    arr a float32 array of shape x.shape.
    """
    sqrt2 = math.sqrt(2.0)
    c_m = None  # sin^m(theta) * cos(m*phi), from (x + i*y)^m
    s_m = None  # sin^m(theta) * sin(m*phi)

    for m in range(l_max + 1):
        if m == 1:
            c_m, s_m = x, y
        elif m > 1:
            c_m, s_m = c_m * x - s_m * y, c_m * y + s_m * x

        # (2m-1)!!  (with (-1)!! = 1); Q_m^m is this pure constant.
        dfact = 1.0
        for k in range(1, 2 * m, 2):
            dfact *= float(k)

        # Rolling 2-term recurrence on Q_l^m(z) = P_l^m(z) / sin^m(theta)
        # (no Condon-Shortley phase); q may be a Python float at l == m.
        q_prev2 = None
        q_prev1 = None
        for l in range(m, l_max + 1):
            if l == m:
                q = dfact
            elif l == m + 1:
                q = ((2 * m + 1) * dfact) * z
            else:
                inv = 1.0 / (l - m)
                q = ((2 * l - 1) * inv) * z * q_prev1 - ((l + m - 1) * inv) * q_prev2

            k_lm = _k_lm(l, m)
            base = l * l + l
            if m == 0:
                val = k_lm * q
                if isinstance(val, float):  # only l == 0: pure constant row
                    val = jnp.full(x.shape, val, jnp.float32)
                emit(base, val)
            else:
                t = (sqrt2 * k_lm) * q      # float (l == m) or array
                emit(base + m, t * c_m)
                emit(base - m, t * s_m)

            q_prev2, q_prev1 = q_prev1, q


def _load_normalized_subslab(xyz_ref, r0):
    x = xyz_ref[0, pl.ds(r0, _SUB), :].astype(jnp.float32)
    y = xyz_ref[1, pl.ds(r0, _SUB), :].astype(jnp.float32)
    z = xyz_ref[2, pl.ds(r0, _SUB), :].astype(jnp.float32)
    inv_r = lax.rsqrt(x * x + y * y + z * z)
    return x * inv_r, y * inv_r, z * inv_r


def _sh_kernel_sample_major(xyz_ref, out_ref, q_ref, *, l_max: int, sh_pad: int):
    """Writes the PyTorch (samples, sh_dim) layout directly.

    xyz_ref: (3, ROWS, 128) VMEM block (x/y/z planes, samples dense on lanes)
    out_ref: (ROWS*128, sh_dim) VMEM block (sample-major output)
    q_ref:   (sh_pad*_SUB, 128) float32 scratch; row j*_SUB + g holds Y_j for
             the 128 samples of sub-slab group g.
    """
    lane = xyz_ref.shape[2]
    rows = xyz_ref.shape[1]
    sh_dim = (l_max + 1) ** 2
    out_dtype = out_ref.dtype
    n_sub = rows // _SUB

    def body(s, carry):
        r0 = pl.multiple_of(s * _SUB, _SUB)
        x, y, z = _load_normalized_subslab(xyz_ref, r0)

        def emit(j, arr):
            q_ref[j * _SUB:(j + 1) * _SUB, :] = arr

        _sh_compute(x, y, z, l_max, emit)

        # Per 128-sample group: gather the sh-major (sh_pad, 128) tile with a
        # strided read, transpose on the XLU, store a lane-dense (128, sh_dim)
        # slab into the sample-major output block.
        for g in range(_SUB):
            mat = q_ref[pl.ds(g, sh_pad, stride=_SUB), :]     # (sh_pad, 128)
            t = jnp.transpose(mat, (1, 0))                    # (128, sh_pad)
            row0 = pl.multiple_of((s * _SUB + g) * lane, lane)
            out_ref[pl.ds(row0, lane), :] = t[:, :sh_dim].astype(out_dtype)
        return carry

    lax.fori_loop(0, n_sub, body, 0)


def _sh_kernel_lm_major(xyz_ref, out_ref, *, l_max: int):
    """Harmonics-major streaming kernel (no relayout; used as fallback and
    for fused consumers via return_lm_major=True).

    xyz_ref: (3, ROWS, 128) VMEM block
    out_ref: ((l_max+1)^2, ROWS, 128) VMEM block
    """
    rows = xyz_ref.shape[1]
    out_dtype = out_ref.dtype
    n_sub = rows // _SUB

    def body(s, carry):
        r0 = pl.multiple_of(s * _SUB, _SUB)
        x, y, z = _load_normalized_subslab(xyz_ref, r0)

        def emit(j, arr):
            out_ref[j, pl.ds(r0, _SUB), :] = arr.astype(out_dtype)

        _sh_compute(x, y, z, l_max, emit)
        return carry

    lax.fori_loop(0, n_sub, body, 0)


def _pick_rows(n_blocks: int, rows_per_step: int) -> int:
    """Sublane rows per grid step: multiple of _SUB, clamped for small inputs,
    and chosen so the grid has >= 2 steps when possible (v7x megacore)."""
    rows_per_step = max(_SUB, (rows_per_step // _SUB) * _SUB)
    half = -(-n_blocks // 2)
    rows = -(-half // _SUB) * _SUB
    return max(_SUB, min(rows_per_step, rows))


def spherical_harmonics(xyz: jax.Array, l_max: int,
                        rows_per_step: int = 128,
                        return_lm_major: bool = False) -> jax.Array:
    """Equivalent of SphericalHarmonics(l_max)(xyz).

    xyz: (n_samples, 3) float array.
    returns: (n_samples, (l_max+1)**2) array, same dtype as xyz.
             If return_lm_major=True, returns the transpose-free
             ((l_max+1)**2, n_samples) layout for fused consumers instead.
    """
    n = xyz.shape[0]
    sh_dim = (l_max + 1) ** 2
    dtype = xyz.dtype

    n_blocks = -(-n // _LANE)
    rows = _pick_rows(n_blocks, rows_per_step)
    grid_n = -(-n_blocks // rows)
    n_pad = grid_n * rows * _LANE

    # Glue: (n, 3) -> (3, grid_n*rows, 128); pad with 1.0 (nonzero -> no NaNs).
    xyz_t = jnp.transpose(xyz)
    if n_pad != n:
        xyz_t = jnp.pad(xyz_t, ((0, 0), (0, n_pad - n)), constant_values=1.0)
    xyz_t = xyz_t.reshape(3, grid_n * rows, _LANE)

    in_spec = pl.BlockSpec((3, rows, _LANE), lambda i: (0, i, 0))
    itemsize = jnp.dtype(dtype).itemsize
    sh_lanes = -(-sh_dim // _LANE) * _LANE
    vmem_limit = 2 * rows * _LANE * sh_lanes * itemsize + (16 << 20)
    vmem_limit = int(min(max(vmem_limit, 32 << 20), 64 << 20))
    cparams = pltpu.CompilerParams(dimension_semantics=("parallel",),
                                   vmem_limit_bytes=vmem_limit)

    if (not return_lm_major) and sh_dim <= _LANE:
        try:
            out = pl.pallas_call(
                partial(_sh_kernel_sample_major, l_max=l_max, sh_pad=_LANE),
                out_shape=jax.ShapeDtypeStruct((n_pad, sh_dim), dtype),
                grid_spec=pltpu.PrefetchScalarGridSpec(
                    num_scalar_prefetch=0,
                    grid=(grid_n,),
                    in_specs=[in_spec],
                    out_specs=pl.BlockSpec((rows * _LANE, sh_dim),
                                           lambda i: (i, 0)),
                    scratch_shapes=[pltpu.VMEM((_LANE * _SUB, _LANE),
                                               jnp.float32)]),
                compiler_params=cparams,
            )(xyz_t)
            return out if n_pad == n else out[:n]
        except Exception:
            # Mosaic refused the strided read / in-kernel transpose on this
            # toolchain: fall back to the harmonics-major kernel below.
            pass

    out = pl.pallas_call(
        partial(_sh_kernel_lm_major, l_max=l_max),
        out_shape=jax.ShapeDtypeStruct((sh_dim, grid_n * rows, _LANE), dtype),
        grid_spec=pltpu.PrefetchScalarGridSpec(
            num_scalar_prefetch=0,
            grid=(grid_n,),
            in_specs=[in_spec],
            out_specs=pl.BlockSpec((sh_dim, rows, _LANE), lambda i: (0, i, 0))),
        compiler_params=cparams,
    )(xyz_t)
    out = out.reshape(sh_dim, n_pad)
    if return_lm_major:
        return out if n_pad == n else out[:, :n]
    return jnp.transpose(out)[:n]


def _reference_sh_numpy(xyz_np: np.ndarray, l_max: int) -> np.ndarray:
    """Independent float64 host reference (standard P_l^m recurrence + phi)."""
    xyz_np = np.asarray(xyz_np, dtype=np.float64)
    r = np.linalg.norm(xyz_np, axis=1, keepdims=True)
    u = xyz_np / r
    x, y, z = u[:, 0], u[:, 1], u[:, 2]
    n = xyz_np.shape[0]
    sin_t = np.sqrt(np.maximum(0.0, 1.0 - z * z))
    phi = np.arctan2(y, x)

    P = np.zeros((l_max + 1, l_max + 1, n))
    P[0, 0] = 1.0
    for m in range(1, l_max + 1):
        P[m, m] = (2 * m - 1) * sin_t * P[m - 1, m - 1]
    for m in range(l_max + 1):
        if m + 1 <= l_max:
            P[m + 1, m] = (2 * m + 1) * z * P[m, m]
        for l in range(m + 2, l_max + 1):
            P[l, m] = ((2 * l - 1) * z * P[l - 1, m]
                       - (l + m - 1) * P[l - 2, m]) / (l - m)

    out = np.zeros((n, (l_max + 1) ** 2))
    sqrt2 = math.sqrt(2.0)
    for l in range(l_max + 1):
        for m in range(l + 1):
            k = _k_lm(l, m)
            if m == 0:
                out[:, l * l + l] = k * P[l, 0]
            else:
                out[:, l * l + l + m] = sqrt2 * k * P[l, m] * np.cos(m * phi)
                out[:, l * l + l - m] = sqrt2 * k * P[l, m] * np.sin(m * phi)
    return out


if __name__ == "__main__":
    l_max = 8  # as in the module's docstring example
    key = jax.random.PRNGKey(0)

    for n_samples in (10, 4000):  # small case + multi-grid-step / padded case
        xyz = jax.random.normal(key, (n_samples, 3), dtype=jnp.float32)

        sh = jax.block_until_ready(spherical_harmonics(xyz, l_max))
        assert sh.shape == (n_samples, (l_max + 1) ** 2)
        assert sh.dtype == xyz.dtype

        sh_np = np.asarray(sh)
        xyz_np = np.asarray(xyz)

        # Full comparison against an independent float64 host reference.
        ref = _reference_sh_numpy(xyz_np, l_max)
        np.testing.assert_allclose(sh_np, ref, rtol=1e-3, atol=5e-5)

        # Transpose-free harmonics-major layout agrees with the default path.
        sh_lm = jax.block_until_ready(
            spherical_harmonics(xyz, l_max, return_lm_major=True))
        assert sh_lm.shape == ((l_max + 1) ** 2, n_samples)
        np.testing.assert_allclose(np.asarray(sh_lm).T, sh_np,
                                   rtol=1e-6, atol=1e-6)

        # Addition theorem: sum_m Y_l^m^2 == (2l+1)/(4*pi) for every l.
        for l in range(l_max + 1):
            block = sh_np[:, l * l:(l + 1) * (l + 1)]
            np.testing.assert_allclose(np.sum(block * block, axis=1),
                                       (2 * l + 1) / (4.0 * math.pi),
                                       rtol=1e-3, atol=1e-5)

    print("KERNEL_OK")
</pallas_src>

<mosaic_0001>
module attributes {stable_mosaic.version = 11 : i64} {
  func.func @_sh_kernel_sample_major(%arg0: i32, %arg1: memref<3x8x128xf32, #tpu.memory_space<vmem>>, %arg2: memref<1024x81xf32, #tpu.memory_space<vmem>>, %arg3: memref<1024x128xf32, #tpu.memory_space<vmem>>) attributes {dimension_semantics = [#tpu.dimension_semantics<parallel>], iteration_bounds = array<i64: 1>, scalar_prefetch = 0 : i64, scratch_operands = 1 : i64, tpu.core_type = #tpu.core_type<tc>, window_params = [{transform_indices = @transform_0, window_bounds = array<i64: 3, 8, 128>}, {transform_indices = @transform_1, window_bounds = array<i64: 1024, 81>}]} {
    %c0_i32 = arith.constant 0 : i32
    %c8_i32 = arith.constant 8 : i32
    %0 = arith.muli %c0_i32, %c8_i32 : i32
    %1 = tpu.assume_multiple %0, 8 : i32
    %c0 = arith.constant 0 : index
    %2 = arith.index_cast %1 : i32 to index
    %c0_0 = arith.constant 0 : index
    %3 = vector.load %arg1[%c0, %2, %c0_0] : memref<3x8x128xf32, #tpu.memory_space<vmem>>, vector<1x8x128xf32>
    %4 = vector.shape_cast %3 : vector<1x8x128xf32> to vector<8x128xf32>
    %c1 = arith.constant 1 : index
    %5 = arith.index_cast %1 : i32 to index
    %c0_1 = arith.constant 0 : index
    %6 = vector.load %arg1[%c1, %5, %c0_1] : memref<3x8x128xf32, #tpu.memory_space<vmem>>, vector<1x8x128xf32>
    %7 = vector.shape_cast %6 : vector<1x8x128xf32> to vector<8x128xf32>
    %c2 = arith.constant 2 : index
    %8 = arith.index_cast %1 : i32 to index
    %c0_2 = arith.constant 0 : index
    %9 = vector.load %arg1[%c2, %8, %c0_2] : memref<3x8x128xf32, #tpu.memory_space<vmem>>, vector<1x8x128xf32>
    %10 = vector.shape_cast %9 : vector<1x8x128xf32> to vector<8x128xf32>
    %11 = arith.mulf %4, %4 : vector<8x128xf32>
    %12 = arith.mulf %7, %7 : vector<8x128xf32>
    %13 = arith.addf %11, %12 : vector<8x128xf32>
    %14 = arith.mulf %10, %10 : vector<8x128xf32>
    %15 = arith.addf %13, %14 : vector<8x128xf32>
    %16 = math.rsqrt %15 : vector<8x128xf32>
    %17 = arith.mulf %4, %16 : vector<8x128xf32>
    %18 = arith.mulf %7, %16 : vector<8x128xf32>
    %19 = arith.mulf %10, %16 : vector<8x128xf32>
    %cst = arith.constant 0.282094806 : f32
    %20 = vector.broadcast %cst : f32 to vector<8x128xf32>
    %c0_3 = arith.constant 0 : index
    %c0_4 = arith.constant 0 : index
    %21 = vector.load %arg3[%c0_3, %c0_4] : memref<1024x128xf32, #tpu.memory_space<vmem>>, vector<8x128xf32>
    tpu.vector_store %arg3[%c0_3, %c0_4], %20 {strides = array<i32>} : memref<1024x128xf32, #tpu.memory_space<vmem>>, vector<8x128xf32>,
    %cst_5 = arith.constant 1.000000e+00 : f32
    %22 = vector.broadcast %cst_5 : f32 to vector<8x128xf32>
    %23 = arith.mulf %22, %19 : vector<8x128xf32>
    %cst_6 = arith.constant 0.488602519 : f32
    %24 = vector.broadcast %cst_6 : f32 to vector<8x128xf32>
    %25 = arith.mulf %24, %23 : vector<8x128xf32>
    %c16 = arith.constant 16 : index
    %c0_7 = arith.constant 0 : index
    %26 = vector.load %arg3[%c16, %c0_7] : memref<1024x128xf32, #tpu.memory_space<vmem>>, vector<8x128xf32>
    tpu.vector_store %arg3[%c16, %c0_7], %25 {strides = array<i32>} : memref<1024x128xf32, #tpu.memory_space<vmem>>, vector<8x128xf32>,
    %cst_8 = arith.constant 1.500000e+00 : f32
    %27 = vector.broadcast %cst_8 : f32 to vector<8x128xf32>
    %28 = arith.mulf %27, %19 : vector<8x128xf32>
    %29 = arith.mulf %28, %23 : vector<8x128xf32>
    %cst_9 = arith.constant 5.000000e-01 : f32
    %30 = vector.broadcast %cst_9 : f32 to vector<8x128xf32>
    %31 = arith.subf %29, %30 : vector<8x128xf32>
    %cst_10 = arith.constant 0.63078314 : f32
    %32 = vector.broadcast %cst_10 : f32 to vector<8x128xf32>
    %33 = arith.mulf %32, %31 : vector<8x128xf32>
    %c48 = arith.constant 48 : index
    %c0_11 = arith.constant 0 : index
    %34 = vector.load %arg3[%c48, %c0_11] : memref<1024x128xf32, #tpu.memory_space<vmem>>, vector<8x128xf32>
    tpu.vector_store %arg3[%c48, %c0_11], %33 {strides = array<i32>} : memref<1024x128xf32, #tpu.memory_space<vmem>>, vector<8x128xf32>,
    %cst_12 = arith.constant 1.66666663 : f32
    %35 = vector.broadcast %cst_12 : f32 to vector<8x128xf32>
    %36 = arith.mulf %35, %19 : vector<8x128xf32>
    %37 = arith.mulf %36, %31 : vector<8x128xf32>
    %cst_13 = arith.constant 0.666666686 : f32
    %38 = vector.broadcast %cst_13 : f32 to vector<8x128xf32>
    %39 = arith.mulf %38, %23 : vector<8x128xf32>
    %40 = arith.subf %37, %39 : vector<8x128xf32>
    %cst_14 = arith.constant 0.746352672 : f32
    %41 = vector.broadcast %cst_14 : f32 to vector<8x128xf32>
    %42 = arith.mulf %41, %40 : vector<8x128xf32>
    %c96 = arith.constant 96 : index
    %c0_15 = arith.constant 0 : index
    %43 = vector.load %arg3[%c96, %c0_15] : memref<1024x128xf32, #tpu.memory_space<vmem>>, vector<8x128xf32>
    tpu.vector_store %arg3[%c96, %c0_15], %42 {strides = array<i32>} : memref<1024x128xf32, #tpu.memory_space<vmem>>, vector<8x128xf32>,
    %cst_16 = arith.constant 1.750000e+00 : f32
    %44 = vector.broadcast %cst_16 : f32 to vector<8x128xf32>
    %45 = arith.mulf %44, %19 : vector<8x128xf32>
    %46 = arith.mulf %45, %40 : vector<8x128xf32>
    %cst_17 = arith.constant 7.500000e-01 : f32
    %47 = vector.broadcast %cst_17 : f32 to vector<8x128xf32>
    %48 = arith.mulf %47, %31 : vector<8x128xf32>
    %49 = arith.subf %46, %48 : vector<8x128xf32>
    %cst_18 = arith.constant 0.846284389 : f32
    %50 = vector.broadcast %cst_18 : f32 to vector<8x128xf32>
    %51 = arith.mulf %50, %49 : vector<8x128xf32>
    %c160 = arith.constant 160 : index
    %c0_19 = arith.constant 0 : index
    %52 = vector.load %arg3[%c160, %c0_19] : memref<1024x128xf32, #tpu.memory_space<vmem>>, vector<8x128xf32>
    tpu.vector_store %arg3[%c160, %c0_19], %51 {strides = array<i32>} : memref<1024x128xf32, #tpu.memory_space<vmem>>, vector<8x128xf32>,
    %cst_20 = arith.constant 1.800000e+00 : f32
    %53 = vector.broadcast %cst_20 : f32 to vector<8x128xf32>
    %54 = arith.mulf %53, %19 : vector<8x128xf32>
    %55 = arith.mulf %54, %49 : vector<8x128xf32>
    %cst_21 = arith.constant 8.000000e-01 : f32
    %56 = vector.broadcast %cst_21 : f32 to vector<8x128xf32>
    %57 = arith.mulf %56, %40 : vector<8x128xf32>
    %58 = arith.subf %55, %57 : vector<8x128xf32>
    %cst_22 = arith.constant 0.935602605 : f32
    %59 = vector.broadcast %cst_22 : f32 to vector<8x128xf32>
    %60 = arith.mulf %59, %58 : vector<8x128xf32>
    %c240 = arith.constant 240 : index
    %c0_23 = arith.constant 0 : index
    %61 = vector.load %arg3[%c240, %c0_23] : memref<1024x128xf32, #tpu.memory_space<vmem>>, vector<8x128xf32>
    tpu.vector_store %arg3[%c240, %c0_23], %60 {strides = array<i32>} : memref<1024x128xf32, #tpu.memory_space<vmem>>, vector<8x128xf32>,
    %cst_24 = arith.constant 1.83333337 : f32
    %62 = vector.broadcast %cst_24 : f32 to vector<8x128xf32>
    %63 = arith.mulf %62, %19 : vector<8x128xf32>
    %64 = arith.mulf %63, %58 : vector<8x128xf32>
    %cst_25 = arith.constant 0.833333313 : f32
    %65 = vector.broadcast %cst_25 : f32 to vector<8x128xf32>
    %66 = arith.mulf %65, %49 : vector<8x128xf32>
    %67 = arith.subf %64, %66 : vector<8x128xf32>
    %cst_26 = arith.constant 1.01710725 : f32
    %68 = vector.broadcast %cst_26 : f32 to vector<8x128xf32>
    %69 = arith.mulf %68, %67 : vector<8x128xf32>
    %c336 = arith.constant 336 : index
    %c0_27 = arith.constant 0 : index
    %70 = vector.load %arg3[%c336, %c0_27] : memref<1024x128xf32, #tpu.memory_space<vmem>>, vector<8x128xf32>
    tpu.vector_store %arg3[%c336, %c0_27], %69 {strides = array<i32>} : memref<1024x128xf32, #tpu.memory_space<vmem>>, vector<8x128xf32>,
    %cst_28 = arith.constant 1.85714281 : f32
    %71 = vector.broadcast %cst_28 : f32 to vector<8x128xf32>
    %72 = arith.mulf %71, %19 : vector<8x128xf32>
    %73 = arith.mulf %72, %67 : vector<8x128xf32>
    %cst_29 = arith.constant 0.857142865 : f32
    %74 = vector.broadcast %cst_29 : f32 to vector<8x128xf32>
    %75 = arith.mulf %74, %58 : vector<8x128xf32>
    %76 = arith.subf %73, %75 : vector<8x128xf32>
    %cst_30 = arith.constant 1.09254849 : f32
    %77 = vector.broadcast %cst_30 : f32 to vector<8x128xf32>
    %78 = arith.mulf %77, %76 : vector<8x128xf32>
    %c448 = arith.constant 448 : index
    %c0_31 = arith.constant 0 : index
    %79 = vector.load %arg3[%c448, %c0_31] : memref<1024x128xf32, #tpu.memory_space<vmem>>, vector<8x128xf32>
    tpu.vector_store %arg3[%c448, %c0_31], %78 {strides = array<i32>} : memref<1024x128xf32, #tpu.memory_space<vmem>>, vector<8x128xf32>,
    %cst_32 = arith.constant 1.875000e+00 : f32
    %80 = vector.broadcast %cst_32 : f32 to vector<8x128xf32>
    %81 = arith.mulf %80, %19 : vector<8x128xf32>
    %82 = arith.mulf %81, %76 : vector<8x128xf32>
    %cst_33 = arith.constant 8.750000e-01 : f32
    %83 = vector.broadcast %cst_33 : f32 to vector<8x128xf32>
    %84 = arith.mulf %83, %67 : vector<8x128xf32>
    %85 = arith.subf %82, %84 : vector<8x128xf32>
    %cst_34 = arith.constant 1.16310668 : f32
    %86 = vector.broadcast %cst_34 : f32 to vector<8x128xf32>
    %87 = arith.mulf %86, %85 : vector<8x128xf32>
    %c576 = arith.constant 576 : index
    %c0_35 = arith.constant 0 : index
    %88 = vector.load %arg3[%c576, %c0_35] : memref<1024x128xf32, #tpu.memory_space<vmem>>, vector<8x128xf32>
    tpu.vector_store %arg3[%c576, %c0_35], %87 {strides = array<i32>} : memref<1024x128xf32, #tpu.memory_space<vmem>>, vector<8x128xf32>,
    %cst_36 = arith.constant 0.488602519 : f32
    %89 = vector.broadcast %cst_36 : f32 to vector<8x128xf32>
    %90 = arith.mulf %89, %17 : vector<8x128xf32>
    %c24 = arith.constant 24 : index
    %c0_37 = arith.constant 0 : index
    %91 = vector.load %arg3[%c24, %c0_37] : memref<1024x128xf32, #tpu.memory_space<vmem>>, vector<8x128xf32>
    tpu.vector_store %arg3[%c24, %c0_37], %90 {strides = array<i32>} : memref<1024x128xf32, #tpu.memory_space<vmem>>, vector<8x128xf32>,
    %cst_38 = arith.constant 0.488602519 : f32
    %92 = vector.broadcast %cst_38 : f32 to vector<8x128xf32>
    %93 = arith.mulf %92, %18 : vector<8x128xf32>
    %c8 = arith.constant 8 : index
    %c0_39 = arith.constant 0 : index
    %94 = vector.load %arg3[%c8, %c0_39] : memref<1024x128xf32, #tpu.memory_space<vmem>>, vector<8x128xf32>
    tpu.vector_store %arg3[%c8, %c0_39], %93 {strides = array<i32>} : memref<1024x128xf32, #tpu.memory_space<vmem>>, vector<8x128xf32>,
    %cst_40 = arith.constant 3.000000e+00 : f32
    %95 = vector.broadcast %cst_40 : f32 to vector<8x128xf32>
    %96 = arith.mulf %95, %19 : vector<8x128xf32>
    %cst_41 = arith.constant 0.3641828 : f32
    %97 = vector.broadcast %cst_41 : f32 to vector<8x128xf32>
    %98 = arith.mulf %97, %96 : vector<8x128xf32>
    %99 = arith.mulf %98, %17 : vector<8x128xf32>
    %c56 = arith.constant 56 : index
    %c0_42 = arith.constant 0 : index
    %100 = vector.load %arg3[%c56, %c0_42] : memref<1024x128xf32, #tpu.memory_space<vmem>>, vector<8x128xf32>
    tpu.vector_store %arg3[%c56, %c0_42], %99 {strides = array<i32>} : memref<1024x128xf32, #tpu.memory_space<vmem>>, vector<8x128xf32>,
    %101 = arith.mulf %98, %18 : vector<8x128xf32>
    %c40 = arith.constant 40 : index
    %c0_43 = arith.constant 0 : index
    %102 = vector.load %arg3[%c40, %c0_43] : memref<1024x128xf32, #tpu.memory_space<vmem>>, vector<8x128xf32>
    tpu.vector_store %arg3[%c40, %c0_43], %101 {strides = array<i32>} : memref<1024x128xf32, #tpu.memory_space<vmem>>, vector<8x128xf32>,
    %cst_44 = arith.constant 2.500000e+00 : f32
    %103 = vector.broadcast %cst_44 : f32 to vector<8x128xf32>
    %104 = arith.mulf %103, %19 : vector<8x128xf32>
    %105 = arith.mulf %104, %96 : vector<8x128xf32>
    %cst_45 = arith.constant 1.500000e+00 : f32
    %106 = vector.broadcast %cst_45 : f32 to vector<8x128xf32>
    %107 = arith.subf %105, %106 : vector<8x128xf32>
    %cst_46 = arith.constant 0.304697186 : f32
    %108 = vector.broadcast %cst_46 : f32 to vector<8x128xf32>
    %109 = arith.mulf %108, %107 : vector<8x128xf32>
    %110 = arith.mulf %109, %17 : vector<8x128xf32>
    %c104 = arith.constant 104 : index
    %c0_47 = arith.constant 0 : index
    %111 = vector.load %arg3[%c104, %c0_47] : memref<1024x128xf32, #tpu.memory_space<vmem>>, vector<8x128xf32>
    tpu.vector_store %arg3[%c104, %c0_47], %110 {strides = array<i32>} : memref<1024x128xf32, #tpu.memory_space<vmem>>, vector<8x128xf32>,
    %112 = arith.mulf %109, %18 : vector<8x128xf32>
    %c88 = arith.constant 88 : index
    %c0_48 = arith.constant 0 : index
    %113 = vector.load %arg3[%c88, %c0_48] : memref<1024x128xf32, #tpu.memory_space<vmem>>, vector<8x128xf32>
    tpu.vector_store %arg3[%c88, %c0_48], %112 {strides = array<i32>} : memref<1024x128xf32, #tpu.memory_space<vmem>>, vector<8x128xf32>,
    %cst_49 = arith.constant 2.33333325 : f32
    %114 = vector.broadcast %cst_49 : f32 to vector<8x128xf32>
    %115 = arith.mulf %114, %19 : vector<8x128xf32>
    %116 = arith.mulf %115, %107 : vector<8x128xf32>
    %cst_50 = arith.constant 1.33333337 : f32
    %117 = vector.broadcast %cst_50 : f32 to vector<8x128xf32>
    %118 = arith.mulf %117, %96 : vector<8x128xf32>
    %119 = arith.subf %116, %118 : vector<8x128xf32>
    %cst_51 = arith.constant 0.267618626 : f32
    %120 = vector.broadcast %cst_51 : f32 to vector<8x128xf32>
    %121 = arith.mulf %120, %119 : vector<8x128xf32>
    %122 = arith.mulf %121, %17 : vector<8x128xf32>
    %c168 = arith.constant 168 : index
    %c0_52 = arith.constant 0 : index
    %123 = vector.load %arg3[%c168, %c0_52] : memref<1024x128xf32, #tpu.memory_space<vmem>>, vector<8x128xf32>
    tpu.vector_store %arg3[%c168, %c0_52], %122 {strides = array<i32>} : memref<1024x128xf32, #tpu.memory_space<vmem>>, vector<8x128xf32>,
    %124 = arith.mulf %121, %18 : vector<8x128xf32>
    %c152 = arith.constant 152 : index
    %c0_53 = arith.constant 0 : index
    %125 = vector.load %arg3[%c152, %c0_53] : memref<1024x128xf32, #tpu.memory_space<vmem>>, vector<8x128xf32>
    tpu.vector_store %arg3[%c152, %c0_53], %124 {strides = array<i32>} : memref<1024x128xf32, #tpu.memory_space<vmem>>, vector<8x128xf32>,
    %cst_54 = arith.constant 2.250000e+00 : f32
    %126 = vector.broadcast %cst_54 : f32 to vector<8x128xf32>
    %127 = arith.mulf %126, %19 : vector<8x128xf32>
    %128 = arith.mulf %127, %119 : vector<8x128xf32>
    %cst_55 = arith.constant 1.250000e+00 : f32
    %129 = vector.broadcast %cst_55 : f32 to vector<8x128xf32>
    %130 = arith.mulf %129, %107 : vector<8x128xf32>
    %131 = arith.subf %128, %130 : vector<8x128xf32>
    %cst_56 = arith.constant 0.241571546 : f32
    %132 = vector.broadcast %cst_56 : f32 to vector<8x128xf32>
    %133 = arith.mulf %132, %131 : vector<8x128xf32>
    %134 = arith.mulf %133, %17 : vector<8x128xf32>
    %c248 = arith.constant 248 : index
    %c0_57 = arith.constant 0 : index
    %135 = vector.load %arg3[%c248, %c0_57] : memref<1024x128xf32, #tpu.memory_space<vmem>>, vector<8x128xf32>
    tpu.vector_store %arg3[%c248, %c0_57], %134 {strides = array<i32>} : memref<1024x128xf32, #tpu.memory_space<vmem>>, vector<8x128xf32>,
    %136 = arith.mulf %133, %18 : vector<8x128xf32>
    %c232 = arith.constant 232 : index
    %c0_58 = arith.constant 0 : index
    %137 = vector.load %arg3[%c232, %c0_58] : memref<1024x128xf32, #tpu.memory_space<vmem>>, vector<8x128xf32>
    tpu.vector_store %arg3[%c232, %c0_58], %136 {strides = array<i32>} : memref<1024x128xf32, #tpu.memory_space<vmem>>, vector<8x128xf32>,
    %cst_59 = arith.constant 2.200000e+00 : f32
    %138 = vector.broadcast %cst_59 : f32 to vector<8x128xf32>
    %139 = arith.mulf %138, %19 : vector<8x128xf32>
    %140 = arith.mulf %139, %131 : vector<8x128xf32>
    %cst_60 = arith.constant 1.200000e+00 : f32
    %141 = vector.broadcast %cst_60 : f32 to vector<8x128xf32>
    %142 = arith.mulf %141, %119 : vector<8x128xf32>
    %143 = arith.subf %140, %142 : vector<8x128xf32>
    %cst_61 = arith.constant 2.219510e-01 : f32
    %144 = vector.broadcast %cst_61 : f32 to vector<8x128xf32>
    %145 = arith.mulf %144, %143 : vector<8x128xf32>
    %146 = arith.mulf %145, %17 : vector<8x128xf32>
    %c344 = arith.constant 344 : index
    %c0_62 = arith.constant 0 : index
    %147 = vector.load %arg3[%c344, %c0_62] : memref<1024x128xf32, #tpu.memory_space<vmem>>, vector<8x128xf32>
    tpu.vector_store %arg3[%c344, %c0_62], %146 {strides = array<i32>} : memref<1024x128xf32, #tpu.memory_space<vmem>>, vector<8x128xf32>,
    %148 = arith.mulf %145, %18 : vector<8x128xf32>
    %c328 = arith.constant 328 : index
    %c0_63 = arith.constant 0 : index
    %149 = vector.load %arg3[%c328, %c0_63] : memref<1024x128xf32, #tpu.memory_space<vmem>>, vector<8x128xf32>
    tpu.vector_store %arg3[%c328, %c0_63], %148 {strides = array<i32>} : memref<1024x128xf32, #tpu.memory_space<vmem>>, vector<8x128xf32>,
    %cst_64 = arith.constant 2.16666675 : f32
    %150 = vector.broadcast %cst_64 : f32 to vector<8x128xf32>
    %151 = arith.mulf %150, %19 : vector<8x128xf32>
    %152 = arith.mulf %151, %143 : vector<8x128xf32>
    %cst_65 = arith.constant 1.16666663 : f32
    %153 = vector.broadcast %cst_65 : f32 to vector<8x128xf32>
    %154 = arith.mulf %153, %131 : vector<8x128xf32>
    %155 = arith.subf %152, %154 : vector<8x128xf32>
    %cst_66 = arith.constant 0.206472248 : f32
    %156 = vector.broadcast %cst_66 : f32 to vector<8x128xf32>
    %157 = arith.mulf %156, %155 : vector<8x128xf32>
    %158 = arith.mulf %157, %17 : vector<8x128xf32>
    %c456 = arith.constant 456 : index
    %c0_67 = arith.constant 0 : index
    %159 = vector.load %arg3[%c456, %c0_67] : memref<1024x128xf32, #tpu.memory_space<vmem>>, vector<8x128xf32>
    tpu.vector_store %arg3[%c456, %c0_67], %158 {strides = array<i32>} : memref<1024x128xf32, #tpu.memory_space<vmem>>, vector<8x128xf32>,
    %160 = arith.mulf %157, %18 : vector<8x128xf32>
    %c440 = arith.constant 440 : index
    %c0_68 = arith.constant 0 : index
    %161 = vector.load %arg3[%c440, %c0_68] : memref<1024x128xf32, #tpu.memory_space<vmem>>, vector<8x128xf32>
    tpu.vector_store %arg3[%c440, %c0_68], %160 {strides = array<i32>} : memref<1024x128xf32, #tpu.memory_space<vmem>>, vector<8x128xf32>,
    %cst_69 = arith.constant 2.14285707 : f32
    %162 = vector.broadcast %cst_69 : f32 to vector<8x128xf32>
    %163 = arith.mulf %162, %19 : vector<8x128xf32>
    %164 = arith.mulf %163, %155 : vector<8x128xf32>
    %cst_70 = arith.constant 1.14285719 : f32
    %165 = vector.broadcast %cst_70 : f32 to vector<8x128xf32>
    %166 = arith.mulf %165, %143 : vector<8x128xf32>
    %167 = arith.subf %164, %166 : vector<8x128xf32>
    %cst_71 = arith.constant 0.193851098 : f32
    %168 = vector.broadcast %cst_71 : f32 to vector<8x128xf32>
    %169 = arith.mulf %168, %167 : vector<8x128xf32>
    %170 = arith.mulf %169, %17 : vector<8x128xf32>
    %c584 = arith.constant 584 : index
    %c0_72 = arith.constant 0 : index
    %171 = vector.load %arg3[%c584, %c0_72] : memref<1024x128xf32, #tpu.memory_space<vmem>>, vector<8x128xf32>
    tpu.vector_store %arg3[%c584, %c0_72], %170 {strides = array<i32>} : memref<1024x128xf32, #tpu.memory_space<vmem>>, vector<8x128xf32>,
    %172 = arith.mulf %169, %18 : vector<8x128xf32>
    %c568 = arith.constant 568 : index
    %c0_73 = arith.constant 0 : index
    %173 = vector.load %arg3[%c568, %c0_73] : memref<1024x128xf32, #tpu.memory_space<vmem>>, vector<8x128xf32>
    tpu.vector_store %arg3[%c568, %c0_73], %172 {strides = array<i32>} : memref<1024x128xf32, #tpu.memory_space<vmem>>, vector<8x128xf32>,
    %174 = arith.mulf %17, %17 : vector<8x128xf32>
    %175 = arith.mulf %18, %18 : vector<8x128xf32>
    %176 = arith.subf %174, %175 : vector<8x128xf32>
    %177 = arith.mulf %17, %18 : vector<8x128xf32>
    %178 = arith.mulf %18, %17 : vector<8x128xf32>
    %179 = arith.addf %177, %178 : vector<8x128xf32>
    %cst_74 = arith.constant 0.546274245 : f32
    %180 = vector.broadcast %cst_74 : f32 to vector<8x128xf32>
    %181 = arith.mulf %180, %176 : vector<8x128xf32>
    %c64 = arith.constant 64 : index
    %c0_75 = arith.constant 0 : index
    %182 = vector.load %arg3[%c64, %c0_75] : memref<1024x128xf32, #tpu.memory_space<vmem>>, vector<8x128xf32>
    tpu.vector_store %arg3[%c64, %c0_75], %181 {strides = array<i32>} : memref<1024x128xf32, #tpu.memory_space<vmem>>, vector<8x128xf32>,
    %cst_76 = arith.constant 0.546274245 : f32
    %183 = vector.broadcast %cst_76 : f32 to vector<8x128xf32>
    %184 = arith.mulf %183, %179 : vector<8x128xf32>
    %c32 = arith.constant 32 : index
    %c0_77 = arith.constant 0 : index
    %185 = vector.load %arg3[%c32, %c0_77] : memref<1024x128xf32, #tpu.memory_space<vmem>>, vector<8x128xf32>
    tpu.vector_store %arg3[%c32, %c0_77], %184 {strides = array<i32>} : memref<1024x128xf32, #tpu.memory_space<vmem>>, vector<8x128xf32>,
    %cst_78 = arith.constant 1.500000e+01 : f32
    %186 = vector.broadcast %cst_78 : f32 to vector<8x128xf32>
    %187 = arith.mulf %186, %19 : vector<8x128xf32>
    %cst_79 = arith.constant 0.0963537171 : f32
    %188 = vector.broadcast %cst_79 : f32 to vector<8x128xf32>
    %189 = arith.mulf %188, %187 : vector<8x128xf32>
    %190 = arith.mulf %189, %176 : vector<8x128xf32>
    %c112 = arith.constant 112 : index
    %c0_80 = arith.constant 0 : index
    %191 = vector.load %arg3[%c112, %c0_80] : memref<1024x128xf32, #tpu.memory_space<vmem>>, vector<8x128xf32>
    tpu.vector_store %arg3[%c112, %c0_80], %190 {strides = array<i32>} : memref<1024x128xf32, #tpu.memory_space<vmem>>, vector<8x128xf32>,
    %192 = arith.mulf %189, %179 : vector<8x128xf32>
    %c80 = arith.constant 80 : index
    %c0_81 = arith.constant 0 : index
    %193 = vector.load %arg3[%c80, %c0_81] : memref<1024x128xf32, #tpu.memory_space<vmem>>, vector<8x128xf32>
    tpu.vector_store %arg3[%c80, %c0_81], %192 {strides = array<i32>} : memref<1024x128xf32, #tpu.memory_space<vmem>>, vector<8x128xf32>,
    %cst_82 = arith.constant 3.500000e+00 : f32
    %194 = vector.broadcast %cst_82 : f32 to vector<8x128xf32>
    %195 = arith.mulf %194, %19 : vector<8x128xf32>
    %196 = arith.mulf %195, %187 : vector<8x128xf32>
    %cst_83 = arith.constant 7.500000e+00 : f32
    %197 = vector.broadcast %cst_83 : f32 to vector<8x128xf32>
    %198 = arith.subf %196, %197 : vector<8x128xf32>
    %cst_84 = arith.constant 0.063078314 : f32
    %199 = vector.broadcast %cst_84 : f32 to vector<8x128xf32>
    %200 = arith.mulf %199, %198 : vector<8x128xf32>
    %201 = arith.mulf %200, %176 : vector<8x128xf32>
    %c176 = arith.constant 176 : index
    %c0_85 = arith.constant 0 : index
    %202 = vector.load %arg3[%c176, %c0_85] : memref<1024x128xf32, #tpu.memory_space<vmem>>, vector<8x128xf32>
    tpu.vector_store %arg3[%c176, %c0_85], %201 {strides = array<i32>} : memref<1024x128xf32, #tpu.memory_space<vmem>>, vector<8x128xf32>,
    %203 = arith.mulf %200, %179 : vector<8x128xf32>
    %c144 = arith.constant 144 : index
    %c0_86 = arith.constant 0 : index
    %204 = vector.load %arg3[%c144, %c0_86] : memref<1024x128xf32, #tpu.memory_space<vmem>>, vector<8x128xf32>
    tpu.vector_store %arg3[%c144, %c0_86], %203 {strides = array<i32>} : memref<1024x128xf32, #tpu.memory_space<vmem>>, vector<8x128xf32>,
    %cst_87 = arith.constant 3.000000e+00 : f32
    %205 = vector.broadcast %cst_87 : f32 to vector<8x128xf32>
    %206 = arith.mulf %205, %19 : vector<8x128xf32>
    %207 = arith.mulf %206, %198 : vector<8x128xf32>
    %cst_88 = arith.constant 2.000000e+00 : f32
    %208 = vector.broadcast %cst_88 : f32 to vector<8x128xf32>
    %209 = arith.mulf %208, %187 : vector<8x128xf32>
    %210 = arith.subf %207, %209 : vector<8x128xf32>
    %cst_89 = arith.constant 0.0456527323 : f32
    %211 = vector.broadcast %cst_89 : f32 to vector<8x128xf32>
    %212 = arith.mulf %211, %210 : vector<8x128xf32>
    %213 = arith.mulf %212, %176 : vector<8x128xf32>
    %c256 = arith.constant 256 : index
    %c0_90 = arith.constant 0 : index
    %214 = vector.load %arg3[%c256, %c0_90] : memref<1024x128xf32, #tpu.memory_space<vmem>>, vector<8x128xf32>
    tpu.vector_store %arg3[%c256, %c0_90], %213 {strides = array<i32>} : memref<1024x128xf32, #tpu.memory_space<vmem>>, vector<8x128xf32>,
    %215 = arith.mulf %212, %179 : vector<8x128xf32>
    %c224 = arith.constant 224 : index
    %c0_91 = arith.constant 0 : index
    %216 = vector.load %arg3[%c224, %c0_91] : memref<1024x128xf32, #tpu.memory_space<vmem>>, vector<8x128xf32>
    tpu.vector_store %arg3[%c224, %c0_91], %215 {strides = array<i32>} : memref<1024x128xf32, #tpu.memory_space<vmem>>, vector<8x128xf32>,
    %cst_92 = arith.constant 2.750000e+00 : f32
    %217 = vector.broadcast %cst_92 : f32 to vector<8x128xf32>
    %218 = arith.mulf %217, %19 : vector<8x128xf32>
    %219 = arith.mulf %218, %210 : vector<8x128xf32>
    %cst_93 = arith.constant 1.750000e+00 : f32
    %220 = vector.broadcast %cst_93 : f32 to vector<8x128xf32>
    %221 = arith.mulf %220, %198 : vector<8x128xf32>
    %222 = arith.subf %219, %221 : vector<8x128xf32>
    %cst_94 = arith.constant 0.0350935347 : f32
    %223 = vector.broadcast %cst_94 : f32 to vector<8x128xf32>
    %224 = arith.mulf %223, %222 : vector<8x128xf32>
    %225 = arith.mulf %224, %176 : vector<8x128xf32>
    %c352 = arith.constant 352 : index
    %c0_95 = arith.constant 0 : index
    %226 = vector.load %arg3[%c352, %c0_95] : memref<1024x128xf32, #tpu.memory_space<vmem>>, vector<8x128xf32>
    tpu.vector_store %arg3[%c352, %c0_95], %225 {strides = array<i32>} : memref<1024x128xf32, #tpu.memory_space<vmem>>, vector<8x128xf32>,
    %227 = arith.mulf %224, %179 : vector<8x128xf32>
    %c320 = arith.constant 320 : index
    %c0_96 = arith.constant 0 : index
    %228 = vector.load %arg3[%c320, %c0_96] : memref<1024x128xf32, #tpu.memory_space<vmem>>, vector<8x128xf32>
    tpu.vector_store %arg3[%c320, %c0_96], %227 {strides = array<i32>} : memref<1024x128xf32, #tpu.memory_space<vmem>>, vector<8x128xf32>,
    %cst_97 = arith.constant 2.600000e+00 : f32
    %229 = vector.broadcast %cst_97 : f32 to vector<8x128xf32>
    %230 = arith.mulf %229, %19 : vector<8x128xf32>
    %231 = arith.mulf %230, %222 : vector<8x128xf32>
    %cst_98 = arith.constant 1.600000e+00 : f32
    %232 = vector.broadcast %cst_98 : f32 to vector<8x128xf32>
    %233 = arith.mulf %232, %210 : vector<8x128xf32>
    %234 = arith.subf %231, %233 : vector<8x128xf32>
    %cst_99 = arith.constant 0.0280973129 : f32
    %235 = vector.broadcast %cst_99 : f32 to vector<8x128xf32>
    %236 = arith.mulf %235, %234 : vector<8x128xf32>
    %237 = arith.mulf %236, %176 : vector<8x128xf32>
    %c464 = arith.constant 464 : index
    %c0_100 = arith.constant 0 : index
    %238 = vector.load %arg3[%c464, %c0_100] : memref<1024x128xf32, #tpu.memory_space<vmem>>, vector<8x128xf32>
    tpu.vector_store %arg3[%c464, %c0_100], %237 {strides = array<i32>} : memref<1024x128xf32, #tpu.memory_space<vmem>>, vector<8x128xf32>,
    %239 = arith.mulf %236, %179 : vector<8x128xf32>
    %c432 = arith.constant 432 : index
    %c0_101 = arith.constant 0 : index
    %240 = vector.load %arg3[%c432, %c0_101] : memref<1024x128xf32, #tpu.memory_space<vmem>>, vector<8x128xf32>
    tpu.vector_store %arg3[%c432, %c0_101], %239 {strides = array<i32>} : memref<1024x128xf32, #tpu.memory_space<vmem>>, vector<8x128xf32>,
    %cst_102 = arith.constant 2.500000e+00 : f32
    %241 = vector.broadcast %cst_102 : f32 to vector<8x128xf32>
    %242 = arith.mulf %241, %19 : vector<8x128xf32>
    %243 = arith.mulf %242, %234 : vector<8x128xf32>
    %cst_103 = arith.constant 1.500000e+00 : f32
    %244 = vector.broadcast %cst_103 : f32 to vector<8x128xf32>
    %245 = arith.mulf %244, %222 : vector<8x128xf32>
    %246 = arith.subf %243, %245 : vector<8x128xf32>
    %cst_104 = arith.constant 0.0231696386 : f32
    %247 = vector.broadcast %cst_104 : f32 to vector<8x128xf32>
    %248 = arith.mulf %247, %246 : vector<8x128xf32>
    %249 = arith.mulf %248, %176 : vector<8x128xf32>
    %c592 = arith.constant 592 : index
    %c0_105 = arith.constant 0 : index
    %250 = vector.load %arg3[%c592, %c0_105] : memref<1024x128xf32, #tpu.memory_space<vmem>>, vector<8x128xf32>
    tpu.vector_store %arg3[%c592, %c0_105], %249 {strides = array<i32>} : memref<1024x128xf32, #tpu.memory_space<vmem>>, vector<8x128xf32>,
    %251 = arith.mulf %248, %179 : vector<8x128xf32>
    %c560 = arith.constant 560 : index
    %c0_106 = arith.constant 0 : index
    %252 = vector.load %arg3[%c560, %c0_106] : memref<1024x128xf32, #tpu.memory_space<vmem>>, vector<8x128xf32>
    tpu.vector_store %arg3[%c560, %c0_106], %251 {strides = array<i32>} : memref<1024x128xf32, #tpu.memory_space<vmem>>, vector<8x128xf32>,
    %253 = arith.mulf %176, %17 : vector<8x128xf32>
    %254 = arith.mulf %179, %18 : vector<8x128xf32>
    %255 = arith.subf %253, %254 : vector<8x128xf32>
    %256 = arith.mulf %176, %18 : vector<8x128xf32>
    %257 = arith.mulf %179, %17 : vector<8x128xf32>
    %258 = arith.addf %256, %257 : vector<8x128xf32>
    %cst_107 = arith.constant 0.590043604 : f32
    %259 = vector.broadcast %cst_107 : f32 to vector<8x128xf32>
    %260 = arith.mulf %259, %255 : vector<8x128xf32>
    %c120 = arith.constant 120 : index
    %c0_108 = arith.constant 0 : index
    %261 = vector.load %arg3[%c120, %c0_108] : memref<1024x128xf32, #tpu.memory_space<vmem>>, vector<8x128xf32>
    tpu.vector_store %arg3[%c120, %c0_108], %260 {strides = array<i32>} : memref<1024x128xf32, #tpu.memory_space<vmem>>, vector<8x128xf32>,
    %cst_109 = arith.constant 0.590043604 : f32
    %262 = vector.broadcast %cst_109 : f32 to vector<8x128xf32>
    %263 = arith.mulf %262, %258 : vector<8x128xf32>
    %c72 = arith.constant 72 : index
    %c0_110 = arith.constant 0 : index
    %264 = vector.load %arg3[%c72, %c0_110] : memref<1024x128xf32, #tpu.memory_space<vmem>>, vector<8x128xf32>
    tpu.vector_store %arg3[%c72, %c0_110], %263 {strides = array<i32>} : memref<1024x128xf32, #tpu.memory_space<vmem>>, vector<8x128xf32>,
    %cst_111 = arith.constant 1.050000e+02 : f32
    %265 = vector.broadcast %cst_111 : f32 to vector<8x128xf32>
    %266 = arith.mulf %265, %19 : vector<8x128xf32>
    %cst_112 = arith.constant 0.0168583877 : f32
    %267 = vector.broadcast %cst_112 : f32 to vector<8x128xf32>
    %268 = arith.mulf %267, %266 : vector<8x128xf32>
    %269 = arith.mulf %268, %255 : vector<8x128xf32>
    %c184 = arith.constant 184 : index
    %c0_113 = arith.constant 0 : index
    %270 = vector.load %arg3[%c184, %c0_113] : memref<1024x128xf32, #tpu.memory_space<vmem>>, vector<8x128xf32>
    tpu.vector_store %arg3[%c184, %c0_113], %269 {strides = array<i32>} : memref<1024x128xf32, #tpu.memory_space<vmem>>, vector<8x128xf32>,
    %271 = arith.mulf %268, %258 : vector<8x128xf32>
    %c136 = arith.constant 136 : index
    %c0_114 = arith.constant 0 : index
    %272 = vector.load %arg3[%c136, %c0_114] : memref<1024x128xf32, #tpu.memory_space<vmem>>, vector<8x128xf32>
    tpu.vector_store %arg3[%c136, %c0_114], %271 {strides = array<i32>} : memref<1024x128xf32, #tpu.memory_space<vmem>>, vector<8x128xf32>,
    %cst_115 = arith.constant 4.500000e+00 : f32
    %273 = vector.broadcast %cst_115 : f32 to vector<8x128xf32>
    %274 = arith.mulf %273, %19 : vector<8x128xf32>
    %275 = arith.mulf %274, %266 : vector<8x128xf32>
    %cst_116 = arith.constant 5.250000e+01 : f32
    %276 = vector.broadcast %cst_116 : f32 to vector<8x128xf32>
    %277 = arith.subf %275, %276 : vector<8x128xf32>
    %cst_117 = arith.constant 0.00931882485 : f32
    %278 = vector.broadcast %cst_117 : f32 to vector<8x128xf32>
    %279 = arith.mulf %278, %277 : vector<8x128xf32>
    %280 = arith.mulf %279, %255 : vector<8x128xf32>
    %c264 = arith.constant 264 : index
    %c0_118 = arith.constant 0 : index
    %281 = vector.load %arg3[%c264, %c0_118] : memref<1024x128xf32, #tpu.memory_space<vmem>>, vector<8x128xf32>
    tpu.vector_store %arg3[%c264, %c0_118], %280 {strides = array<i32>} : memref<1024x128xf32, #tpu.memory_space<vmem>>, vector<8x128xf32>,
    %282 = arith.mulf %279, %258 : vector<8x128xf32>
    %c216 = arith.constant 216 : index
    %c0_119 = arith.constant 0 : index
    %283 = vector.load %arg3[%c216, %c0_119] : memref<1024x128xf32, #tpu.memory_space<vmem>>, vector<8x128xf32>
    tpu.vector_store %arg3[%c216, %c0_119], %282 {strides = array<i32>} : memref<1024x128xf32, #tpu.memory_space<vmem>>, vector<8x128xf32>,
    %cst_120 = arith.constant 3.66666675 : f32
    %284 = vector.broadcast %cst_120 : f32 to vector<8x128xf32>
    %285 = arith.mulf %284, %19 : vector<8x128xf32>
    %286 = arith.mulf %285, %277 : vector<8x128xf32>
    %cst_121 = arith.constant 2.66666675 : f32
    %287 = vector.broadcast %cst_121 : f32 to vector<8x128xf32>
    %288 = arith.mulf %287, %266 : vector<8x128xf32>
    %289 = arith.subf %286, %288 : vector<8x128xf32>
    %cst_122 = arith.constant 0.0058489223 : f32
    %290 = vector.broadcast %cst_122 : f32 to vector<8x128xf32>
    %291 = arith.mulf %290, %289 : vector<8x128xf32>
    %292 = arith.mulf %291, %255 : vector<8x128xf32>
    %c360 = arith.constant 360 : index
    %c0_123 = arith.constant 0 : index
    %293 = vector.load %arg3[%c360, %c0_123] : memref<1024x128xf32, #tpu.memory_space<vmem>>, vector<8x128xf32>
    tpu.vector_store %arg3[%c360, %c0_123], %292 {strides = array<i32>} : memref<1024x128xf32, #tpu.memory_space<vmem>>, vector<8x128xf32>,
    %294 = arith.mulf %291, %258 : vector<8x128xf32>
    %c312 = arith.constant 312 : index
    %c0_124 = arith.constant 0 : index
    %295 = vector.load %arg3[%c312, %c0_124] : memref<1024x128xf32, #tpu.memory_space<vmem>>, vector<8x128xf32>
    tpu.vector_store %arg3[%c312, %c0_124], %294 {strides = array<i32>} : memref<1024x128xf32, #tpu.memory_space<vmem>>, vector<8x128xf32>,
    %cst_125 = arith.constant 3.250000e+00 : f32
    %296 = vector.broadcast %cst_125 : f32 to vector<8x128xf32>
    %297 = arith.mulf %296, %19 : vector<8x128xf32>
    %298 = arith.mulf %297, %289 : vector<8x128xf32>
    %cst_126 = arith.constant 2.250000e+00 : f32
    %299 = vector.broadcast %cst_126 : f32 to vector<8x128xf32>
    %300 = arith.mulf %299, %277 : vector<8x128xf32>
    %301 = arith.subf %298, %300 : vector<8x128xf32>
    %cst_127 = arith.constant 0.00397356041 : f32
    %302 = vector.broadcast %cst_127 : f32 to vector<8x128xf32>
    %303 = arith.mulf %302, %301 : vector<8x128xf32>
    %304 = arith.mulf %303, %255 : vector<8x128xf32>
    %c472 = arith.constant 472 : index
    %c0_128 = arith.constant 0 : index
    %305 = vector.load %arg3[%c472, %c0_128] : memref<1024x128xf32, #tpu.memory_space<vmem>>, vector<8x128xf32>
    tpu.vector_store %arg3[%c472, %c0_128], %304 {strides = array<i32>} : memref<1024x128xf32, #tpu.memory_space<vmem>>, vector<8x128xf32>,
    %306 = arith.mulf %303, %258 : vector<8x128xf32>
    %c424 = arith.constant 424 : index
    %c0_129 = arith.constant 0 : index
    %307 = vector.load %arg3[%c424, %c0_129] : memref<1024x128xf32, #tpu.memory_space<vmem>>, vector<8x128xf32>
    tpu.vector_store %arg3[%c424, %c0_129], %306 {strides = array<i32>} : memref<1024x128xf32, #tpu.memory_space<vmem>>, vector<8x128xf32>,
    %cst_130 = arith.constant 3.000000e+00 : f32
    %308 = vector.broadcast %cst_130 : f32 to vector<8x128xf32>
    %309 = arith.mulf %308, %19 : vector<8x128xf32>
    %310 = arith.mulf %309, %301 : vector<8x128xf32>
    %cst_131 = arith.constant 2.000000e+00 : f32
    %311 = vector.broadcast %cst_131 : f32 to vector<8x128xf32>
    %312 = arith.mulf %311, %289 : vector<8x128xf32>
    %313 = arith.subf %310, %312 : vector<8x128xf32>
    %cst_132 = arith.constant 0.00285198539 : f32
    %314 = vector.broadcast %cst_132 : f32 to vector<8x128xf32>
    %315 = arith.mulf %314, %313 : vector<8x128xf32>
    %316 = arith.mulf %315, %255 : vector<8x128xf32>
    %c600 = arith.constant 600 : index
    %c0_133 = arith.constant 0 : index
    %317 = vector.load %arg3[%c600, %c0_133] : memref<1024x128xf32, #tpu.memory_space<vmem>>, vector<8x128xf32>
    tpu.vector_store %arg3[%c600, %c0_133], %316 {strides = array<i32>} : memref<1024x128xf32, #tpu.memory_space<vmem>>, vector<8x128xf32>,
    %318 = arith.mulf %315, %258 : vector<8x128xf32>
    %c552 = arith.constant 552 : index
    %c0_134 = arith.constant 0 : index
    %319 = vector.load %arg3[%c552, %c0_134] : memref<1024x128xf32, #tpu.memory_space<vmem>>, vector<8x128xf32>
    tpu.vector_store %arg3[%c552, %c0_134], %318 {strides = array<i32>} : memref<1024x128xf32, #tpu.memory_space<vmem>>, vector<8x128xf32>,
    %320 = arith.mulf %255, %17 : vector<8x128xf32>
    %321 = arith.mulf %258, %18 : vector<8x128xf32>
    %322 = arith.subf %320, %321 : vector<8x128xf32>
    %323 = arith.mulf %255, %18 : vector<8x128xf32>
    %324 = arith.mulf %258, %17 : vector<8x128xf32>
    %325 = arith.addf %323, %324 : vector<8x128xf32>
    %cst_135 = arith.constant 0.625835716 : f32
    %326 = vector.broadcast %cst_135 : f32 to vector<8x128xf32>
    %327 = arith.mulf %326, %322 : vector<8x128xf32>
    %c192 = arith.constant 192 : index
    %c0_136 = arith.constant 0 : index
    %328 = vector.load %arg3[%c192, %c0_136] : memref<1024x128xf32, #tpu.memory_space<vmem>>, vector<8x128xf32>
    tpu.vector_store %arg3[%c192, %c0_136], %327 {strides = array<i32>} : memref<1024x128xf32, #tpu.memory_space<vmem>>, vector<8x128xf32>,
    %cst_137 = arith.constant 0.625835716 : f32
    %329 = vector.broadcast %cst_137 : f32 to vector<8x128xf32>
    %330 = arith.mulf %329, %325 : vector<8x128xf32>
    %c128 = arith.constant 128 : index
    %c0_138 = arith.constant 0 : index
    %331 = vector.load %arg3[%c128, %c0_138] : memref<1024x128xf32, #tpu.memory_space<vmem>>, vector<8x128xf32>
    tpu.vector_store %arg3[%c128, %c0_138], %330 {strides = array<i32>} : memref<1024x128xf32, #tpu.memory_space<vmem>>, vector<8x128xf32>,
    %cst_139 = arith.constant 9.450000e+02 : f32
    %332 = vector.broadcast %cst_139 : f32 to vector<8x128xf32>
    %333 = arith.mulf %332, %19 : vector<8x128xf32>
    %cst_140 = arith.constant 0.00219646795 : f32
    %334 = vector.broadcast %cst_140 : f32 to vector<8x128xf32>
    %335 = arith.mulf %334, %333 : vector<8x128xf32>
    %336 = arith.mulf %335, %322 : vector<8x128xf32>
    %c272 = arith.constant 272 : index
    %c0_141 = arith.constant 0 : index
    %337 = vector.load %arg3[%c272, %c0_141] : memref<1024x128xf32, #tpu.memory_space<vmem>>, vector<8x128xf32>
    tpu.vector_store %arg3[%c272, %c0_141], %336 {strides = array<i32>} : memref<1024x128xf32, #tpu.memory_space<vmem>>, vector<8x128xf32>,
    %338 = arith.mulf %335, %325 : vector<8x128xf32>
    %c208 = arith.constant 208 : index
    %c0_142 = arith.constant 0 : index
    %339 = vector.load %arg3[%c208, %c0_142] : memref<1024x128xf32, #tpu.memory_space<vmem>>, vector<8x128xf32>
    tpu.vector_store %arg3[%c208, %c0_142], %338 {strides = array<i32>} : memref<1024x128xf32, #tpu.memory_space<vmem>>, vector<8x128xf32>,
    %cst_143 = arith.constant 5.500000e+00 : f32
    %340 = vector.broadcast %cst_143 : f32 to vector<8x128xf32>
    %341 = arith.mulf %340, %19 : vector<8x128xf32>
    %342 = arith.mulf %341, %333 : vector<8x128xf32>
    %cst_144 = arith.constant 4.725000e+02 : f32
    %343 = vector.broadcast %cst_144 : f32 to vector<8x128xf32>
    %344 = arith.subf %342, %343 : vector<8x128xf32>
    %cst_145 = arith.constant 0.00106786226 : f32
    %345 = vector.broadcast %cst_145 : f32 to vector<8x128xf32>
    %346 = arith.mulf %345, %344 : vector<8x128xf32>
    %347 = arith.mulf %346, %322 : vector<8x128xf32>
    %c368 = arith.constant 368 : index
    %c0_146 = arith.constant 0 : index
    %348 = vector.load %arg3[%c368, %c0_146] : memref<1024x128xf32, #tpu.memory_space<vmem>>, vector<8x128xf32>
    tpu.vector_store %arg3[%c368, %c0_146], %347 {strides = array<i32>} : memref<1024x128xf32, #tpu.memory_space<vmem>>, vector<8x128xf32>,
    %349 = arith.mulf %346, %325 : vector<8x128xf32>
    %c304 = arith.constant 304 : index
    %c0_147 = arith.constant 0 : index
    %350 = vector.load %arg3[%c304, %c0_147] : memref<1024x128xf32, #tpu.memory_space<vmem>>, vector<8x128xf32>
    tpu.vector_store %arg3[%c304, %c0_147], %349 {strides = array<i32>} : memref<1024x128xf32, #tpu.memory_space<vmem>>, vector<8x128xf32>,
    %cst_148 = arith.constant 4.33333349 : f32
    %351 = vector.broadcast %cst_148 : f32 to vector<8x128xf32>
    %352 = arith.mulf %351, %19 : vector<8x128xf32>
    %353 = arith.mulf %352, %344 : vector<8x128xf32>
    %cst_149 = arith.constant 3.33333325 : f32
    %354 = vector.broadcast %cst_149 : f32 to vector<8x128xf32>
    %355 = arith.mulf %354, %333 : vector<8x128xf32>
    %356 = arith.subf %353, %355 : vector<8x128xf32>
    %cst_150 = arith.constant 5.9903675E-4 : f32
    %357 = vector.broadcast %cst_150 : f32 to vector<8x128xf32>
    %358 = arith.mulf %357, %356 : vector<8x128xf32>
    %359 = arith.mulf %358, %322 : vector<8x128xf32>
    %c480 = arith.constant 480 : index
    %c0_151 = arith.constant 0 : index
    %360 = vector.load %arg3[%c480, %c0_151] : memref<1024x128xf32, #tpu.memory_space<vmem>>, vector<8x128xf32>
    tpu.vector_store %arg3[%c480, %c0_151], %359 {strides = array<i32>} : memref<1024x128xf32, #tpu.memory_space<vmem>>, vector<8x128xf32>,
    %361 = arith.mulf %358, %325 : vector<8x128xf32>
    %c416 = arith.constant 416 : index
    %c0_152 = arith.constant 0 : index
    %362 = vector.load %arg3[%c416, %c0_152] : memref<1024x128xf32, #tpu.memory_space<vmem>>, vector<8x128xf32>
    tpu.vector_store %arg3[%c416, %c0_152], %361 {strides = array<i32>} : memref<1024x128xf32, #tpu.memory_space<vmem>>, vector<8x128xf32>,
    %cst_153 = arith.constant 3.750000e+00 : f32
    %363 = vector.broadcast %cst_153 : f32 to vector<8x128xf32>
    %364 = arith.mulf %363, %19 : vector<8x128xf32>
    %365 = arith.mulf %364, %356 : vector<8x128xf32>
    %cst_154 = arith.constant 2.750000e+00 : f32
    %366 = vector.broadcast %cst_154 : f32 to vector<8x128xf32>
    %367 = arith.mulf %366, %344 : vector<8x128xf32>
    %368 = arith.subf %365, %367 : vector<8x128xf32>
    %cst_155 = arith.constant 3.68189736E-4 : f32
    %369 = vector.broadcast %cst_155 : f32 to vector<8x128xf32>
    %370 = arith.mulf %369, %368 : vector<8x128xf32>
    %371 = arith.mulf %370, %322 : vector<8x128xf32>
    %c608 = arith.constant 608 : index
    %c0_156 = arith.constant 0 : index
    %372 = vector.load %arg3[%c608, %c0_156] : memref<1024x128xf32, #tpu.memory_space<vmem>>, vector<8x128xf32>
    tpu.vector_store %arg3[%c608, %c0_156], %371 {strides = array<i32>} : memref<1024x128xf32, #tpu.memory_space<vmem>>, vector<8x128xf32>,
    %373 = arith.mulf %370, %325 : vector<8x128xf32>
    %c544 = arith.constant 544 : index
    %c0_157 = arith.constant 0 : index
    %374 = vector.load %arg3[%c544, %c0_157] : memref<1024x128xf32, #tpu.memory_space<vmem>>, vector<8x128xf32>
    tpu.vector_store %arg3[%c544, %c0_157], %373 {strides = array<i32>} : memref<1024x128xf32, #tpu.memory_space<vmem>>, vector<8x128xf32>,
    %375 = arith.mulf %322, %17 : vector<8x128xf32>
    %376 = arith.mulf %325, %18 : vector<8x128xf32>
    %377 = arith.subf %375, %376 : vector<8x128xf32>
    %378 = arith.mulf %322, %18 : vector<8x128xf32>
    %379 = arith.mulf %325, %17 : vector<8x128xf32>
    %380 = arith.addf %378, %379 : vector<8x128xf32>
    %cst_158 = arith.constant 0.656382083 : f32
    %381 = vector.broadcast %cst_158 : f32 to vector<8x128xf32>
    %382 = arith.mulf %381, %377 : vector<8x128xf32>
    %c280 = arith.constant 280 : index
    %c0_159 = arith.constant 0 : index
    %383 = vector.load %arg3[%c280, %c0_159] : memref<1024x128xf32, #tpu.memory_space<vmem>>, vector<8x128xf32>
    tpu.vector_store %arg3[%c280, %c0_159], %382 {strides = array<i32>} : memref<1024x128xf32, #tpu.memory_space<vmem>>, vector<8x128xf32>,
    %cst_160 = arith.constant 0.656382083 : f32
    %384 = vector.broadcast %cst_160 : f32 to vector<8x128xf32>
    %385 = arith.mulf %384, %380 : vector<8x128xf32>
    %c200 = arith.constant 200 : index
    %c0_161 = arith.constant 0 : index
    %386 = vector.load %arg3[%c200, %c0_161] : memref<1024x128xf32, #tpu.memory_space<vmem>>, vector<8x128xf32>
    tpu.vector_store %arg3[%c200, %c0_161], %385 {strides = array<i32>} : memref<1024x128xf32, #tpu.memory_space<vmem>>, vector<8x128xf32>,
    %cst_162 = arith.constant 1.039500e+04 : f32
    %387 = vector.broadcast %cst_162 : f32 to vector<8x128xf32>
    %388 = arith.mulf %387, %19 : vector<8x128xf32>
    %cst_163 = arith.constant 2.27668992E-4 : f32
    %389 = vector.broadcast %cst_163 : f32 to vector<8x128xf32>
    %390 = arith.mulf %389, %388 : vector<8x128xf32>
    %391 = arith.mulf %390, %377 : vector<8x128xf32>
    %c376 = arith.constant 376 : index
    %c0_164 = arith.constant 0 : index
    %392 = vector.load %arg3[%c376, %c0_164] : memref<1024x128xf32, #tpu.memory_space<vmem>>, vector<8x128xf32>
    tpu.vector_store %arg3[%c376, %c0_164], %391 {strides = array<i32>} : memref<1024x128xf32, #tpu.memory_space<vmem>>, vector<8x128xf32>,
    %393 = arith.mulf %390, %380 : vector<8x128xf32>
    %c296 = arith.constant 296 : index
    %c0_165 = arith.constant 0 : index
    %394 = vector.load %arg3[%c296, %c0_165] : memref<1024x128xf32, #tpu.memory_space<vmem>>, vector<8x128xf32>
    tpu.vector_store %arg3[%c296, %c0_165], %393 {strides = array<i32>} : memref<1024x128xf32, #tpu.memory_space<vmem>>, vector<8x128xf32>,
    %cst_166 = arith.constant 6.500000e+00 : f32
    %395 = vector.broadcast %cst_166 : f32 to vector<8x128xf32>
    %396 = arith.mulf %395, %19 : vector<8x128xf32>
    %397 = arith.mulf %396, %388 : vector<8x128xf32>
    %cst_167 = arith.constant 5.197500e+03 : f32
    %398 = vector.broadcast %cst_167 : f32 to vector<8x128xf32>
    %399 = arith.subf %397, %398 : vector<8x128xf32>
    %cst_168 = arith.constant 9.98394607E-5 : f32
    %400 = vector.broadcast %cst_168 : f32 to vector<8x128xf32>
    %401 = arith.mulf %400, %399 : vector<8x128xf32>
    %402 = arith.mulf %401, %377 : vector<8x128xf32>
    %c488 = arith.constant 488 : index
    %c0_169 = arith.constant 0 : index
    %403 = vector.load %arg3[%c488, %c0_169] : memref<1024x128xf32, #tpu.memory_space<vmem>>, vector<8x128xf32>
    tpu.vector_store %arg3[%c488, %c0_169], %402 {strides = array<i32>} : memref<1024x128xf32, #tpu.memory_space<vmem>>, vector<8x128xf32>,
    %404 = arith.mulf %401, %380 : vector<8x128xf32>
    %c408 = arith.constant 408 : index
    %c0_170 = arith.constant 0 : index
    %405 = vector.load %arg3[%c408, %c0_170] : memref<1024x128xf32, #tpu.memory_space<vmem>>, vector<8x128xf32>
    tpu.vector_store %arg3[%c408, %c0_170], %404 {strides = array<i32>} : memref<1024x128xf32, #tpu.memory_space<vmem>>, vector<8x128xf32>,
    %cst_171 = arith.constant 5.000000e+00 : f32
    %406 = vector.broadcast %cst_171 : f32 to vector<8x128xf32>
    %407 = arith.mulf %406, %19 : vector<8x128xf32>
    %408 = arith.mulf %407, %399 : vector<8x128xf32>
    %cst_172 = arith.constant 4.000000e+00 : f32
    %409 = vector.broadcast %cst_172 : f32 to vector<8x128xf32>
    %410 = arith.mulf %409, %388 : vector<8x128xf32>
    %411 = arith.subf %408, %410 : vector<8x128xf32>
    %cst_173 = arith.constant 5.1058727E-5 : f32
    %412 = vector.broadcast %cst_173 : f32 to vector<8x128xf32>
    %413 = arith.mulf %412, %411 : vector<8x128xf32>
    %414 = arith.mulf %413, %377 : vector<8x128xf32>
    %c616 = arith.constant 616 : index
    %c0_174 = arith.constant 0 : index
    %415 = vector.load %arg3[%c616, %c0_174] : memref<1024x128xf32, #tpu.memory_space<vmem>>, vector<8x128xf32>
    tpu.vector_store %arg3[%c616, %c0_174], %414 {strides = array<i32>} : memref<1024x128xf32, #tpu.memory_space<vmem>>, vector<8x128xf32>,
    %416 = arith.mulf %413, %380 : vector<8x128xf32>
    %c536 = arith.constant 536 : index
    %c0_175 = arith.constant 0 : index
    %417 = vector.load %arg3[%c536, %c0_175] : memref<1024x128xf32, #tpu.memory_space<vmem>>, vector<8x128xf32>
    tpu.vector_store %arg3[%c536, %c0_175], %416 {strides = array<i32>} : memref<1024x128xf32, #tpu.memory_space<vmem>>, vector<8x128xf32>,
    %418 = arith.mulf %377, %17 : vector<8x128xf32>
    %419 = arith.mulf %380, %18 : vector<8x128xf32>
    %420 = arith.subf %418, %419 : vector<8x128xf32>
    %421 = arith.mulf %377, %18 : vector<8x128xf32>
    %422 = arith.mulf %380, %17 : vector<8x128xf32>
    %423 = arith.addf %421, %422 : vector<8x128xf32>
    %cst_176 = arith.constant 0.683184087 : f32
    %424 = vector.broadcast %cst_176 : f32 to vector<8x128xf32>
    %425 = arith.mulf %424, %420 : vector<8x128xf32>
    %c384 = arith.constant 384 : index
    %c0_177 = arith.constant 0 : index
    %426 = vector.load %arg3[%c384, %c0_177] : memref<1024x128xf32, #tpu.memory_space<vmem>>, vector<8x128xf32>
    tpu.vector_store %arg3[%c384, %c0_177], %425 {strides = array<i32>} : memref<1024x128xf32, #tpu.memory_space<vmem>>, vector<8x128xf32>,
    %cst_178 = arith.constant 0.683184087 : f32
    %427 = vector.broadcast %cst_178 : f32 to vector<8x128xf32>
    %428 = arith.mulf %427, %423 : vector<8x128xf32>
    %c288 = arith.constant 288 : index
    %c0_179 = arith.constant 0 : index
    %429 = vector.load %arg3[%c288, %c0_179] : memref<1024x128xf32, #tpu.memory_space<vmem>>, vector<8x128xf32>
    tpu.vector_store %arg3[%c288, %c0_179], %428 {strides = array<i32>} : memref<1024x128xf32, #tpu.memory_space<vmem>>, vector<8x128xf32>,
    %cst_180 = arith.constant 1.351350e+05 : f32
    %430 = vector.broadcast %cst_180 : f32 to vector<8x128xf32>
    %431 = arith.mulf %430, %19 : vector<8x128xf32>
    %cst_181 = arith.constant 1.95801276E-5 : f32
    %432 = vector.broadcast %cst_181 : f32 to vector<8x128xf32>
    %433 = arith.mulf %432, %431 : vector<8x128xf32>
    %434 = arith.mulf %433, %420 : vector<8x128xf32>
    %c496 = arith.constant 496 : index
    %c0_182 = arith.constant 0 : index
    %435 = vector.load %arg3[%c496, %c0_182] : memref<1024x128xf32, #tpu.memory_space<vmem>>, vector<8x128xf32>
    tpu.vector_store %arg3[%c496, %c0_182], %434 {strides = array<i32>} : memref<1024x128xf32, #tpu.memory_space<vmem>>, vector<8x128xf32>,
    %436 = arith.mulf %433, %423 : vector<8x128xf32>
    %c400 = arith.constant 400 : index
    %c0_183 = arith.constant 0 : index
    %437 = vector.load %arg3[%c400, %c0_183] : memref<1024x128xf32, #tpu.memory_space<vmem>>, vector<8x128xf32>
    tpu.vector_store %arg3[%c400, %c0_183], %436 {strides = array<i32>} : memref<1024x128xf32, #tpu.memory_space<vmem>>, vector<8x128xf32>,
    %cst_184 = arith.constant 7.500000e+00 : f32
    %438 = vector.broadcast %cst_184 : f32 to vector<8x128xf32>
    %439 = arith.mulf %438, %19 : vector<8x128xf32>
    %440 = arith.mulf %439, %431 : vector<8x128xf32>
    %cst_185 = arith.constant 6.756750e+04 : f32
    %441 = vector.broadcast %cst_185 : f32 to vector<8x128xf32>
    %442 = arith.subf %440, %441 : vector<8x128xf32>
    %cst_186 = arith.constant 7.87853241E-6 : f32
    %443 = vector.broadcast %cst_186 : f32 to vector<8x128xf32>
    %444 = arith.mulf %443, %442 : vector<8x128xf32>
    %445 = arith.mulf %444, %420 : vector<8x128xf32>
    %c624 = arith.constant 624 : index
    %c0_187 = arith.constant 0 : index
    %446 = vector.load %arg3[%c624, %c0_187] : memref<1024x128xf32, #tpu.memory_space<vmem>>, vector<8x128xf32>
    tpu.vector_store %arg3[%c624, %c0_187], %445 {strides = array<i32>} : memref<1024x128xf32, #tpu.memory_space<vmem>>, vector<8x128xf32>,
    %447 = arith.mulf %444, %423 : vector<8x128xf32>
    %c528 = arith.constant 528 : index
    %c0_188 = arith.constant 0 : index
    %448 = vector.load %arg3[%c528, %c0_188] : memref<1024x128xf32, #tpu.memory_space<vmem>>, vector<8x128xf32>
    tpu.vector_store %arg3[%c528, %c0_188], %447 {strides = array<i32>} : memref<1024x128xf32, #tpu.memory_space<vmem>>, vector<8x128xf32>,
    %449 = arith.mulf %420, %17 : vector<8x128xf32>
    %450 = arith.mulf %423, %18 : vector<8x128xf32>
    %451 = arith.subf %449, %450 : vector<8x128xf32>
    %452 = arith.mulf %420, %18 : vector<8x128xf32>
    %453 = arith.mulf %423, %17 : vector<8x128xf32>
    %454 = arith.addf %452, %453 : vector<8x128xf32>
    %cst_189 = arith.constant 0.707162738 : f32
    %455 = vector.broadcast %cst_189 : f32 to vector<8x128xf32>
    %456 = arith.mulf %455, %451 : vector<8x128xf32>
    %c504 = arith.constant 504 : index
    %c0_190 = arith.constant 0 : index
    %457 = vector.load %arg3[%c504, %c0_190] : memref<1024x128xf32, #tpu.memory_space<vmem>>, vector<8x128xf32>
    tpu.vector_store %arg3[%c504, %c0_190], %456 {strides = array<i32>} : memref<1024x128xf32, #tpu.memory_space<vmem>>, vector<8x128xf32>,
    %cst_191 = arith.constant 0.707162738 : f32
    %458 = vector.broadcast %cst_191 : f32 to vector<8x128xf32>
    %459 = arith.mulf %458, %454 : vector<8x128xf32>
    %c392 = arith.constant 392 : index
    %c0_192 = arith.constant 0 : index
    %460 = vector.load %arg3[%c392, %c0_192] : memref<1024x128xf32, #tpu.memory_space<vmem>>, vector<8x128xf32>
    tpu.vector_store %arg3[%c392, %c0_192], %459 {strides = array<i32>} : memref<1024x128xf32, #tpu.memory_space<vmem>>, vector<8x128xf32>,
    %cst_193 = arith.constant 0x49F77088 : f32
    %461 = vector.broadcast %cst_193 : f32 to vector<8x128xf32>
    %462 = arith.mulf %461, %19 : vector<8x128xf32>
    %cst_194 = arith.constant 1.43841669E-6 : f32
    %463 = vector.broadcast %cst_194 : f32 to vector<8x128xf32>
    %464 = arith.mulf %463, %462 : vector<8x128xf32>
    %465 = arith.mulf %464, %451 : vector<8x128xf32>
    %c632 = arith.constant 632 : index
    %c0_195 = arith.constant 0 : index
    %466 = vector.load %arg3[%c632, %c0_195] : memref<1024x128xf32, #tpu.memory_space<vmem>>, vector<8x128xf32>
    tpu.vector_store %arg3[%c632, %c0_195], %465 {strides = array<i32>} : memref<1024x128xf32, #tpu.memory_space<vmem>>, vector<8x128xf32>,
    %467 = arith.mulf %464, %454 : vector<8x128xf32>
    %c520 = arith.constant 520 : index
    %c0_196 = arith.constant 0 : index
    %468 = vector.load %arg3[%c520, %c0_196] : memref<1024x128xf32, #tpu.memory_space<vmem>>, vector<8x128xf32>
    tpu.vector_store %arg3[%c520, %c0_196], %467 {strides = array<i32>} : memref<1024x128xf32, #tpu.memory_space<vmem>>, vector<8x128xf32>,
    %469 = arith.mulf %451, %17 : vector<8x128xf32>
    %470 = arith.mulf %454, %18 : vector<8x128xf32>
    %471 = arith.subf %469, %470 : vector<8x128xf32>
    %472 = arith.mulf %451, %18 : vector<8x128xf32>
    %473 = arith.mulf %454, %17 : vector<8x128xf32>
    %474 = arith.addf %472, %473 : vector<8x128xf32>
    %cst_197 = arith.constant 0.728926659 : f32
    %475 = vector.broadcast %cst_197 : f32 to vector<8x128xf32>
    %476 = arith.mulf %475, %471 : vector<8x128xf32>
    %c640 = arith.constant 640 : index
    %c0_198 = arith.constant 0 : index
    %477 = vector.load %arg3[%c640, %c0_198] : memref<1024x128xf32, #tpu.memory_space<vmem>>, vector<8x128xf32>
    tpu.vector_store %arg3[%c640, %c0_198], %476 {strides = array<i32>} : memref<1024x128xf32, #tpu.memory_space<vmem>>, vector<8x128xf32>,
    %cst_199 = arith.constant 0.728926659 : f32
    %478 = vector.broadcast %cst_199 : f32 to vector<8x128xf32>
    %479 = arith.mulf %478, %474 : vector<8x128xf32>
    %c512 = arith.constant 512 : index
    %c0_200 = arith.constant 0 : index
    %480 = vector.load %arg3[%c512, %c0_200] : memref<1024x128xf32, #tpu.memory_space<vmem>>, vector<8x128xf32>
    tpu.vector_store %arg3[%c512, %c0_200], %479 {strides = array<i32>} : memref<1024x128xf32, #tpu.memory_space<vmem>>, vector<8x128xf32>,
    %c0_201 = arith.constant 0 : index
    %c0_202 = arith.constant 0 : index
    %481 = tpu.strided_load %arg3[%c0_201, %c0_202] {strides = array<i32: 8, 1>} : memref<1024x128xf32, #tpu.memory_space<vmem>>, vector<128x128xf32>
    %482 = tpu.transpose %481, [1, 0] : vector<128x128xf32> -> vector<128x128xf32>
    %c8_i32_203 = arith.constant 8 : i32
    %483 = arith.muli %c0_i32, %c8_i32_203 : i32
    %c0_i32_204 = arith.constant 0 : i32
    %484 = arith.addi %483, %c0_i32_204 : i32
    %c128_i32 = arith.constant 128 : i32
    %485 = arith.muli %484, %c128_i32 : i32
    %486 = tpu.assume_multiple %485, 128 : i32
    %487 = vector.extract_strided_slice %482 {offsets = [0, 0], sizes = [128, 81], strides = [1, 1]} : vector<128x128xf32> to vector<128x81xf32>
    %488 = arith.index_cast %486 : i32 to index
    %c0_205 = arith.constant 0 : index
    %489 = vector.load %arg2[%488, %c0_205] : memref<1024x81xf32, #tpu.memory_space<vmem>>, vector<128x81xf32>
    tpu.vector_store %arg2[%488, %c0_205], %487 {strides = array<i32>} : memref<1024x81xf32, #tpu.memory_space<vmem>>, vector<128x81xf32>,
    %c1_206 = arith.constant 1 : index
    %c0_207 = arith.constant 0 : index
    %490 = tpu.strided_load %arg3[%c1_206, %c0_207] {strides = array<i32: 8, 1>} : memref<1024x128xf32, #tpu.memory_space<vmem>>, vector<128x128xf32>
    %491 = tpu.transpose %490, [1, 0] : vector<128x128xf32> -> vector<128x128xf32>
    %c8_i32_208 = arith.constant 8 : i32
    %492 = arith.muli %c0_i32, %c8_i32_208 : i32
    %c1_i32 = arith.constant 1 : i32
    %493 = arith.addi %492, %c1_i32 : i32
    %c128_i32_209 = arith.constant 128 : i32
    %494 = arith.muli %493, %c128_i32_209 : i32
    %495 = tpu.assume_multiple %494, 128 : i32
    %496 = vector.extract_strided_slice %491 {offsets = [0, 0], sizes = [128, 81], strides = [1, 1]} : vector<128x128xf32> to vector<128x81xf32>
    %497 = arith.index_cast %495 : i32 to index
    %c0_210 = arith.constant 0 : index
    %498 = vector.load %arg2[%497, %c0_210] : memref<1024x81xf32, #tpu.memory_space<vmem>>, vector<128x81xf32>
    tpu.vector_store %arg2[%497, %c0_210], %496 {strides = array<i32>} : memref<1024x81xf32, #tpu.memory_space<vmem>>, vector<128x81xf32>,
    %c2_211 = arith.constant 2 : index
    %c0_212 = arith.constant 0 : index
    %499 = tpu.strided_load %arg3[%c2_211, %c0_212] {strides = array<i32: 8, 1>} : memref<1024x128xf32, #tpu.memory_space<vmem>>, vector<128x128xf32>
    %500 = tpu.transpose %499, [1, 0] : vector<128x128xf32> -> vector<128x128xf32>
    %c8_i32_213 = arith.constant 8 : i32
    %501 = arith.muli %c0_i32, %c8_i32_213 : i32
    %c2_i32 = arith.constant 2 : i32
    %502 = arith.addi %501, %c2_i32 : i32
    %c128_i32_214 = arith.constant 128 : i32
    %503 = arith.muli %502, %c128_i32_214 : i32
    %504 = tpu.assume_multiple %503, 128 : i32
    %505 = vector.extract_strided_slice %500 {offsets = [0, 0], sizes = [128, 81], strides = [1, 1]} : vector<128x128xf32> to vector<128x81xf32>
    %506 = arith.index_cast %504 : i32 to index
    %c0_215 = arith.constant 0 : index
    %507 = vector.load %arg2[%506, %c0_215] : memref<1024x81xf32, #tpu.memory_space<vmem>>, vector<128x81xf32>
    tpu.vector_store %arg2[%506, %c0_215], %505 {strides = array<i32>} : memref<1024x81xf32, #tpu.memory_space<vmem>>, vector<128x81xf32>,
    %c3 = arith.constant 3 : index
    %c0_216 = arith.constant 0 : index
    %508 = tpu.strided_load %arg3[%c3, %c0_216] {strides = array<i32: 8, 1>} : memref<1024x128xf32, #tpu.memory_space<vmem>>, vector<128x128xf32>
    %509 = tpu.transpose %508, [1, 0] : vector<128x128xf32> -> vector<128x128xf32>
    %c8_i32_217 = arith.constant 8 : i32
    %510 = arith.muli %c0_i32, %c8_i32_217 : i32
    %c3_i32 = arith.constant 3 : i32
    %511 = arith.addi %510, %c3_i32 : i32
    %c128_i32_218 = arith.constant 128 : i32
    %512 = arith.muli %511, %c128_i32_218 : i32
    %513 = tpu.assume_multiple %512, 128 : i32
    %514 = vector.extract_strided_slice %509 {offsets = [0, 0], sizes = [128, 81], strides = [1, 1]} : vector<128x128xf32> to vector<128x81xf32>
    %515 = arith.index_cast %513 : i32 to index
    %c0_219 = arith.constant 0 : index
    %516 = vector.load %arg2[%515, %c0_219] : memref<1024x81xf32, #tpu.memory_space<vmem>>, vector<128x81xf32>
    tpu.vector_store %arg2[%515, %c0_219], %514 {strides = array<i32>} : memref<1024x81xf32, #tpu.memory_space<vmem>>, vector<128x81xf32>,
    %c4 = arith.constant 4 : index
    %c0_220 = arith.constant 0 : index
    %517 = tpu.strided_load %arg3[%c4, %c0_220] {strides = array<i32: 8, 1>} : memref<1024x128xf32, #tpu.memory_space<vmem>>, vector<128x128xf32>
    %518 = tpu.transpose %517, [1, 0] : vector<128x128xf32> -> vector<128x128xf32>
    %c8_i32_221 = arith.constant 8 : i32
    %519 = arith.muli %c0_i32, %c8_i32_221 : i32
    %c4_i32 = arith.constant 4 : i32
    %520 = arith.addi %519, %c4_i32 : i32
    %c128_i32_222 = arith.constant 128 : i32
    %521 = arith.muli %520, %c128_i32_222 : i32
    %522 = tpu.assume_multiple %521, 128 : i32
    %523 = vector.extract_strided_slice %518 {offsets = [0, 0], sizes = [128, 81], strides = [1, 1]} : vector<128x128xf32> to vector<128x81xf32>
    %524 = arith.index_cast %522 : i32 to index
    %c0_223 = arith.constant 0 : index
    %525 = vector.load %arg2[%524, %c0_223] : memref<1024x81xf32, #tpu.memory_space<vmem>>, vector<128x81xf32>
    tpu.vector_store %arg2[%524, %c0_223], %523 {strides = array<i32>} : memref<1024x81xf32, #tpu.memory_space<vmem>>, vector<128x81xf32>,
    %c5 = arith.constant 5 : index
    %c0_224 = arith.constant 0 : index
    %526 = tpu.strided_load %arg3[%c5, %c0_224] {strides = array<i32: 8, 1>} : memref<1024x128xf32, #tpu.memory_space<vmem>>, vector<128x128xf32>
    %527 = tpu.transpose %526, [1, 0] : vector<128x128xf32> -> vector<128x128xf32>
    %c8_i32_225 = arith.constant 8 : i32
    %528 = arith.muli %c0_i32, %c8_i32_225 : i32
    %c5_i32 = arith.constant 5 : i32
    %529 = arith.addi %528, %c5_i32 : i32
    %c128_i32_226 = arith.constant 128 : i32
    %530 = arith.muli %529, %c128_i32_226 : i32
    %531 = tpu.assume_multiple %530, 128 : i32
    %532 = vector.extract_strided_slice %527 {offsets = [0, 0], sizes = [128, 81], strides = [1, 1]} : vector<128x128xf32> to vector<128x81xf32>
    %533 = arith.index_cast %531 : i32 to index
    %c0_227 = arith.constant 0 : index
    %534 = vector.load %arg2[%533, %c0_227] : memref<1024x81xf32, #tpu.memory_space<vmem>>, vector<128x81xf32>
    tpu.vector_store %arg2[%533, %c0_227], %532 {strides = array<i32>} : memref<1024x81xf32, #tpu.memory_space<vmem>>, vector<128x81xf32>,
    %c6 = arith.constant 6 : index
    %c0_228 = arith.constant 0 : index
    %535 = tpu.strided_load %arg3[%c6, %c0_228] {strides = array<i32: 8, 1>} : memref<1024x128xf32, #tpu.memory_space<vmem>>, vector<128x128xf32>
    %536 = tpu.transpose %535, [1, 0] : vector<128x128xf32> -> vector<128x128xf32>
    %c8_i32_229 = arith.constant 8 : i32
    %537 = arith.muli %c0_i32, %c8_i32_229 : i32
    %c6_i32 = arith.constant 6 : i32
    %538 = arith.addi %537, %c6_i32 : i32
    %c128_i32_230 = arith.constant 128 : i32
    %539 = arith.muli %538, %c128_i32_230 : i32
    %540 = tpu.assume_multiple %539, 128 : i32
    %541 = vector.extract_strided_slice %536 {offsets = [0, 0], sizes = [128, 81], strides = [1, 1]} : vector<128x128xf32> to vector<128x81xf32>
    %542 = arith.index_cast %540 : i32 to index
    %c0_231 = arith.constant 0 : index
    %543 = vector.load %arg2[%542, %c0_231] : memref<1024x81xf32, #tpu.memory_space<vmem>>, vector<128x81xf32>
    tpu.vector_store %arg2[%542, %c0_231], %541 {strides = array<i32>} : memref<1024x81xf32, #tpu.memory_space<vmem>>, vector<128x81xf32>,
    %c7 = arith.constant 7 : index
    %c0_232 = arith.constant 0 : index
    %544 = tpu.strided_load %arg3[%c7, %c0_232] {strides = array<i32: 8, 1>} : memref<1024x128xf32, #tpu.memory_space<vmem>>, vector<128x128xf32>
    %545 = tpu.transpose %544, [1, 0] : vector<128x128xf32> -> vector<128x128xf32>
    %c8_i32_233 = arith.constant 8 : i32
    %546 = arith.muli %c0_i32, %c8_i32_233 : i32
    %c7_i32 = arith.constant 7 : i32
    %547 = arith.addi %546, %c7_i32 : i32
    %c128_i32_234 = arith.constant 128 : i32
    %548 = arith.muli %547, %c128_i32_234 : i32
    %549 = tpu.assume_multiple %548, 128 : i32
    %550 = vector.extract_strided_slice %545 {offsets = [0, 0], sizes = [128, 81], strides = [1, 1]} : vector<128x128xf32> to vector<128x81xf32>
    %551 = arith.index_cast %549 : i32 to index
    %c0_235 = arith.constant 0 : index
    %552 = vector.load %arg2[%551, %c0_235] : memref<1024x81xf32, #tpu.memory_space<vmem>>, vector<128x81xf32>
    tpu.vector_store %arg2[%551, %c0_235], %550 {strides = array<i32>} : memref<1024x81xf32, #tpu.memory_space<vmem>>, vector<128x81xf32>,
    %c1_i32_236 = arith.constant 1 : i32
    return
  }
  func.func @transform_0(%arg0: i32) -> (i32, i32, i32) {
    %c0_i32 = arith.constant 0 : i32
    %c0_i32_0 = arith.constant 0 : i32
    %c0_i32_1 = arith.constant 0 : i32
    return %c0_i32, %arg0, %c0_i32_0 : i32, i32, i32
  }
  func.func @transform_1(%arg0: i32) -> (i32, i32) {
    %c0_i32 = arith.constant 0 : i32
    %c0_i32_0 = arith.constant 0 : i32
    return %arg0, %c0_i32 : i32, i32
  }
}

module attributes {stable_mosaic.version = 11 : i64} {
  func.func @_sh_kernel_lm_major(%arg0: i32, %arg1: memref<3x8x128xf32, #tpu.memory_space<vmem>>, %arg2: memref<81x8x128xf32, #tpu.memory_space<vmem>>) attributes {dimension_semantics = [#tpu.dimension_semantics<parallel>], iteration_bounds = array<i64: 1>, scalar_prefetch = 0 : i64, scratch_operands = 0 : i64, tpu.core_type = #tpu.core_type<tc>, window_params = [{transform_indices = @transform_0, window_bounds = array<i64: 3, 8, 128>}, {transform_indices = @transform_1, window_bounds = array<i64: 81, 8, 128>}]} {
    %c0_i32 = arith.constant 0 : i32
    %c8_i32 = arith.constant 8 : i32
    %0 = arith.muli %c0_i32, %c8_i32 : i32
    %1 = tpu.assume_multiple %0, 8 : i32
    %c0 = arith.constant 0 : index
    %2 = arith.index_cast %1 : i32 to index
    %c0_0 = arith.constant 0 : index
    %3 = vector.load %arg1[%c0, %2, %c0_0] : memref<3x8x128xf32, #tpu.memory_space<vmem>>, vector<1x8x128xf32>
    %4 = vector.shape_cast %3 : vector<1x8x128xf32> to vector<8x128xf32>
    %c1 = arith.constant 1 : index
    %5 = arith.index_cast %1 : i32 to index
    %c0_1 = arith.constant 0 : index
    %6 = vector.load %arg1[%c1, %5, %c0_1] : memref<3x8x128xf32, #tpu.memory_space<vmem>>, vector<1x8x128xf32>
    %7 = vector.shape_cast %6 : vector<1x8x128xf32> to vector<8x128xf32>
    %c2 = arith.constant 2 : index
    %8 = arith.index_cast %1 : i32 to index
    %c0_2 = arith.constant 0 : index
    %9 = vector.load %arg1[%c2, %8, %c0_2] : memref<3x8x128xf32, #tpu.memory_space<vmem>>, vector<1x8x128xf32>
    %10 = vector.shape_cast %9 : vector<1x8x128xf32> to vector<8x128xf32>
    %11 = arith.mulf %4, %4 : vector<8x128xf32>
    %12 = arith.mulf %7, %7 : vector<8x128xf32>
    %13 = arith.addf %11, %12 : vector<8x128xf32>
    %14 = arith.mulf %10, %10 : vector<8x128xf32>
    %15 = arith.addf %13, %14 : vector<8x128xf32>
    %16 = math.rsqrt %15 : vector<8x128xf32>
    %17 = arith.mulf %4, %16 : vector<8x128xf32>
    %18 = arith.mulf %7, %16 : vector<8x128xf32>
    %19 = arith.mulf %10, %16 : vector<8x128xf32>
    %cst = arith.constant 0.282094806 : f32
    %20 = vector.broadcast %cst : f32 to vector<8x128xf32>
    %c0_3 = arith.constant 0 : index
    %21 = arith.index_cast %1 : i32 to index
    %c0_4 = arith.constant 0 : index
    %22 = vector.load %arg2[%c0_3, %21, %c0_4] : memref<81x8x128xf32, #tpu.memory_space<vmem>>, vector<1x8x128xf32>
    %23 = vector.shape_cast %22 : vector<1x8x128xf32> to vector<8x128xf32>
    %24 = vector.shape_cast %20 : vector<8x128xf32> to vector<1x8x128xf32>
    tpu.vector_store %arg2[%c0_3, %21, %c0_4], %24 {strides = array<i32>} : memref<81x8x128xf32, #tpu.memory_space<vmem>>, vector<1x8x128xf32>,
    %cst_5 = arith.constant 1.000000e+00 : f32
    %25 = vector.broadcast %cst_5 : f32 to vector<8x128xf32>
    %26 = arith.mulf %25, %19 : vector<8x128xf32>
    %cst_6 = arith.constant 0.488602519 : f32
    %27 = vector.broadcast %cst_6 : f32 to vector<8x128xf32>
    %28 = arith.mulf %27, %26 : vector<8x128xf32>
    %c2_7 = arith.constant 2 : index
    %29 = arith.index_cast %1 : i32 to index
    %c0_8 = arith.constant 0 : index
    %30 = vector.load %arg2[%c2_7, %29, %c0_8] : memref<81x8x128xf32, #tpu.memory_space<vmem>>, vector<1x8x128xf32>
    %31 = vector.shape_cast %30 : vector<1x8x128xf32> to vector<8x128xf32>
    %32 = vector.shape_cast %28 : vector<8x128xf32> to vector<1x8x128xf32>
    tpu.vector_store %arg2[%c2_7, %29, %c0_8], %32 {strides = array<i32>} : memref<81x8x128xf32, #tpu.memory_space<vmem>>, vector<1x8x128xf32>,
    %cst_9 = arith.constant 1.500000e+00 : f32
    %33 = vector.broadcast %cst_9 : f32 to vector<8x128xf32>
    %34 = arith.mulf %33, %19 : vector<8x128xf32>
    %35 = arith.mulf %34, %26 : vector<8x128xf32>
    %cst_10 = arith.constant 5.000000e-01 : f32
    %36 = vector.broadcast %cst_10 : f32 to vector<8x128xf32>
    %37 = arith.subf %35, %36 : vector<8x128xf32>
    %cst_11 = arith.constant 0.63078314 : f32
    %38 = vector.broadcast %cst_11 : f32 to vector<8x128xf32>
    %39 = arith.mulf %38, %37 : vector<8x128xf32>
    %c6 = arith.constant 6 : index
    %40 = arith.index_cast %1 : i32 to index
    %c0_12 = arith.constant 0 : index
    %41 = vector.load %arg2[%c6, %40, %c0_12] : memref<81x8x128xf32, #tpu.memory_space<vmem>>, vector<1x8x128xf32>
    %42 = vector.shape_cast %41 : vector<1x8x128xf32> to vector<8x128xf32>
    %43 = vector.shape_cast %39 : vector<8x128xf32> to vector<1x8x128xf32>
    tpu.vector_store %arg2[%c6, %40, %c0_12], %43 {strides = array<i32>} : memref<81x8x128xf32, #tpu.memory_space<vmem>>, vector<1x8x128xf32>,
    %cst_13 = arith.constant 1.66666663 : f32
    %44 = vector.broadcast %cst_13 : f32 to vector<8x128xf32>
    %45 = arith.mulf %44, %19 : vector<8x128xf32>
    %46 = arith.mulf %45, %37 : vector<8x128xf32>
    %cst_14 = arith.constant 0.666666686 : f32
    %47 = vector.broadcast %cst_14 : f32 to vector<8x128xf32>
    %48 = arith.mulf %47, %26 : vector<8x128xf32>
    %49 = arith.subf %46, %48 : vector<8x128xf32>
    %cst_15 = arith.constant 0.746352672 : f32
    %50 = vector.broadcast %cst_15 : f32 to vector<8x128xf32>
    %51 = arith.mulf %50, %49 : vector<8x128xf32>
    %c12 = arith.constant 12 : index
    %52 = arith.index_cast %1 : i32 to index
    %c0_16 = arith.constant 0 : index
    %53 = vector.load %arg2[%c12, %52, %c0_16] : memref<81x8x128xf32, #tpu.memory_space<vmem>>, vector<1x8x128xf32>
    %54 = vector.shape_cast %53 : vector<1x8x128xf32> to vector<8x128xf32>
    %55 = vector.shape_cast %51 : vector<8x128xf32> to vector<1x8x128xf32>
    tpu.vector_store %arg2[%c12, %52, %c0_16], %55 {strides = array<i32>} : memref<81x8x128xf32, #tpu.memory_space<vmem>>, vector<1x8x128xf32>,
    %cst_17 = arith.constant 1.750000e+00 : f32
    %56 = vector.broadcast %cst_17 : f32 to vector<8x128xf32>
    %57 = arith.mulf %56, %19 : vector<8x128xf32>
    %58 = arith.mulf %57, %49 : vector<8x128xf32>
    %cst_18 = arith.constant 7.500000e-01 : f32
    %59 = vector.broadcast %cst_18 : f32 to vector<8x128xf32>
    %60 = arith.mulf %59, %37 : vector<8x128xf32>
    %61 = arith.subf %58, %60 : vector<8x128xf32>
    %cst_19 = arith.constant 0.846284389 : f32
    %62 = vector.broadcast %cst_19 : f32 to vector<8x128xf32>
    %63 = arith.mulf %62, %61 : vector<8x128xf32>
    %c20 = arith.constant 20 : index
    %64 = arith.index_cast %1 : i32 to index
    %c0_20 = arith.constant 0 : index
    %65 = vector.load %arg2[%c20, %64, %c0_20] : memref<81x8x128xf32, #tpu.memory_space<vmem>>, vector<1x8x128xf32>
    %66 = vector.shape_cast %65 : vector<1x8x128xf32> to vector<8x128xf32>
    %67 = vector.shape_cast %63 : vector<8x128xf32> to vector<1x8x128xf32>
    tpu.vector_store %arg2[%c20, %64, %c0_20], %67 {strides = array<i32>} : memref<81x8x128xf32, #tpu.memory_space<vmem>>, vector<1x8x128xf32>,
    %cst_21 = arith.constant 1.800000e+00 : f32
    %68 = vector.broadcast %cst_21 : f32 to vector<8x128xf32>
    %69 = arith.mulf %68, %19 : vector<8x128xf32>
    %70 = arith.mulf %69, %61 : vector<8x128xf32>
    %cst_22 = arith.constant 8.000000e-01 : f32
    %71 = vector.broadcast %cst_22 : f32 to vector<8x128xf32>
    %72 = arith.mulf %71, %49 : vector<8x128xf32>
    %73 = arith.subf %70, %72 : vector<8x128xf32>
    %cst_23 = arith.constant 0.935602605 : f32
    %74 = vector.broadcast %cst_23 : f32 to vector<8x128xf32>
    %75 = arith.mulf %74, %73 : vector<8x128xf32>
    %c30 = arith.constant 30 : index
    %76 = arith.index_cast %1 : i32 to index
    %c0_24 = arith.constant 0 : index
    %77 = vector.load %arg2[%c30, %76, %c0_24] : memref<81x8x128xf32, #tpu.memory_space<vmem>>, vector<1x8x128xf32>
    %78 = vector.shape_cast %77 : vector<1x8x128xf32> to vector<8x128xf32>
    %79 = vector.shape_cast %75 : vector<8x128xf32> to vector<1x8x128xf32>
    tpu.vector_store %arg2[%c30, %76, %c0_24], %79 {strides = array<i32>} : memref<81x8x128xf32, #tpu.memory_space<vmem>>, vector<1x8x128xf32>,
    %cst_25 = arith.constant 1.83333337 : f32
    %80 = vector.broadcast %cst_25 : f32 to vector<8x128xf32>
    %81 = arith.mulf %80, %19 : vector<8x128xf32>
    %82 = arith.mulf %81, %73 : vector<8x128xf32>
    %cst_26 = arith.constant 0.833333313 : f32
    %83 = vector.broadcast %cst_26 : f32 to vector<8x128xf32>
    %84 = arith.mulf %83, %61 : vector<8x128xf32>
    %85 = arith.subf %82, %84 : vector<8x128xf32>
    %cst_27 = arith.constant 1.01710725 : f32
    %86 = vector.broadcast %cst_27 : f32 to vector<8x128xf32>
    %87 = arith.mulf %86, %85 : vector<8x128xf32>
    %c42 = arith.constant 42 : index
    %88 = arith.index_cast %1 : i32 to index
    %c0_28 = arith.constant 0 : index
    %89 = vector.load %arg2[%c42, %88, %c0_28] : memref<81x8x128xf32, #tpu.memory_space<vmem>>, vector<1x8x128xf32>
    %90 = vector.shape_cast %89 : vector<1x8x128xf32> to vector<8x128xf32>
    %91 = vector.shape_cast %87 : vector<8x128xf32> to vector<1x8x128xf32>
    tpu.vector_store %arg2[%c42, %88, %c0_28], %91 {strides = array<i32>} : memref<81x8x128xf32, #tpu.memory_space<vmem>>, vector<1x8x128xf32>,
    %cst_29 = arith.constant 1.85714281 : f32
    %92 = vector.broadcast %cst_29 : f32 to vector<8x128xf32>
    %93 = arith.mulf %92, %19 : vector<8x128xf32>
    %94 = arith.mulf %93, %85 : vector<8x128xf32>
    %cst_30 = arith.constant 0.857142865 : f32
    %95 = vector.broadcast %cst_30 : f32 to vector<8x128xf32>
    %96 = arith.mulf %95, %73 : vector<8x128xf32>
    %97 = arith.subf %94, %96 : vector<8x128xf32>
    %cst_31 = arith.constant 1.09254849 : f32
    %98 = vector.broadcast %cst_31 : f32 to vector<8x128xf32>
    %99 = arith.mulf %98, %97 : vector<8x128xf32>
    %c56 = arith.constant 56 : index
    %100 = arith.index_cast %1 : i32 to index
    %c0_32 = arith.constant 0 : index
    %101 = vector.load %arg2[%c56, %100, %c0_32] : memref<81x8x128xf32, #tpu.memory_space<vmem>>, vector<1x8x128xf32>
    %102 = vector.shape_cast %101 : vector<1x8x128xf32> to vector<8x128xf32>
    %103 = vector.shape_cast %99 : vector<8x128xf32> to vector<1x8x128xf32>
    tpu.vector_store %arg2[%c56, %100, %c0_32], %103 {strides = array<i32>} : memref<81x8x128xf32, #tpu.memory_space<vmem>>, vector<1x8x128xf32>,
    %cst_33 = arith.constant 1.875000e+00 : f32
    %104 = vector.broadcast %cst_33 : f32 to vector<8x128xf32>
    %105 = arith.mulf %104, %19 : vector<8x128xf32>
    %106 = arith.mulf %105, %97 : vector<8x128xf32>
    %cst_34 = arith.constant 8.750000e-01 : f32
    %107 = vector.broadcast %cst_34 : f32 to vector<8x128xf32>
    %108 = arith.mulf %107, %85 : vector<8x128xf32>
    %109 = arith.subf %106, %108 : vector<8x128xf32>
    %cst_35 = arith.constant 1.16310668 : f32
    %110 = vector.broadcast %cst_35 : f32 to vector<8x128xf32>
    %111 = arith.mulf %110, %109 : vector<8x128xf32>
    %c72 = arith.constant 72 : index
    %112 = arith.index_cast %1 : i32 to index
    %c0_36 = arith.constant 0 : index
    %113 = vector.load %arg2[%c72, %112, %c0_36] : memref<81x8x128xf32, #tpu.memory_space<vmem>>, vector<1x8x128xf32>
    %114 = vector.shape_cast %113 : vector<1x8x128xf32> to vector<8x128xf32>
    %115 = vector.shape_cast %111 : vector<8x128xf32> to vector<1x8x128xf32>
    tpu.vector_store %arg2[%c72, %112, %c0_36], %115 {strides = array<i32>} : memref<81x8x128xf32, #tpu.memory_space<vmem>>, vector<1x8x128xf32>,
    %cst_37 = arith.constant 0.488602519 : f32
    %116 = vector.broadcast %cst_37 : f32 to vector<8x128xf32>
    %117 = arith.mulf %116, %17 : vector<8x128xf32>
    %c3 = arith.constant 3 : index
    %118 = arith.index_cast %1 : i32 to index
    %c0_38 = arith.constant 0 : index
    %119 = vector.load %arg2[%c3, %118, %c0_38] : memref<81x8x128xf32, #tpu.memory_space<vmem>>, vector<1x8x128xf32>
    %120 = vector.shape_cast %119 : vector<1x8x128xf32> to vector<8x128xf32>
    %121 = vector.shape_cast %117 : vector<8x128xf32> to vector<1x8x128xf32>
    tpu.vector_store %arg2[%c3, %118, %c0_38], %121 {strides = array<i32>} : memref<81x8x128xf32, #tpu.memory_space<vmem>>, vector<1x8x128xf32>,
    %cst_39 = arith.constant 0.488602519 : f32
    %122 = vector.broadcast %cst_39 : f32 to vector<8x128xf32>
    %123 = arith.mulf %122, %18 : vector<8x128xf32>
    %c1_40 = arith.constant 1 : index
    %124 = arith.index_cast %1 : i32 to index
    %c0_41 = arith.constant 0 : index
    %125 = vector.load %arg2[%c1_40, %124, %c0_41] : memref<81x8x128xf32, #tpu.memory_space<vmem>>, vector<1x8x128xf32>
    %126 = vector.shape_cast %125 : vector<1x8x128xf32> to vector<8x128xf32>
    %127 = vector.shape_cast %123 : vector<8x128xf32> to vector<1x8x128xf32>
    tpu.vector_store %arg2[%c1_40, %124, %c0_41], %127 {strides = array<i32>} : memref<81x8x128xf32, #tpu.memory_space<vmem>>, vector<1x8x128xf32>,
    %cst_42 = arith.constant 3.000000e+00 : f32
    %128 = vector.broadcast %cst_42 : f32 to vector<8x128xf32>
    %129 = arith.mulf %128, %19 : vector<8x128xf32>
    %cst_43 = arith.constant 0.3641828 : f32
    %130 = vector.broadcast %cst_43 : f32 to vector<8x128xf32>
    %131 = arith.mulf %130, %129 : vector<8x128xf32>
    %132 = arith.mulf %131, %17 : vector<8x128xf32>
    %c7 = arith.constant 7 : index
    %133 = arith.index_cast %1 : i32 to index
    %c0_44 = arith.constant 0 : index
    %134 = vector.load %arg2[%c7, %133, %c0_44] : memref<81x8x128xf32, #tpu.memory_space<vmem>>, vector<1x8x128xf32>
    %135 = vector.shape_cast %134 : vector<1x8x128xf32> to vector<8x128xf32>
    %136 = vector.shape_cast %132 : vector<8x128xf32> to vector<1x8x128xf32>
    tpu.vector_store %arg2[%c7, %133, %c0_44], %136 {strides = array<i32>} : memref<81x8x128xf32, #tpu.memory_space<vmem>>, vector<1x8x128xf32>,
    %137 = arith.mulf %131, %18 : vector<8x128xf32>
    %c5 = arith.constant 5 : index
    %138 = arith.index_cast %1 : i32 to index
    %c0_45 = arith.constant 0 : index
    %139 = vector.load %arg2[%c5, %138, %c0_45] : memref<81x8x128xf32, #tpu.memory_space<vmem>>, vector<1x8x128xf32>
    %140 = vector.shape_cast %139 : vector<1x8x128xf32> to vector<8x128xf32>
    %141 = vector.shape_cast %137 : vector<8x128xf32> to vector<1x8x128xf32>
    tpu.vector_store %arg2[%c5, %138, %c0_45], %141 {strides = array<i32>} : memref<81x8x128xf32, #tpu.memory_space<vmem>>, vector<1x8x128xf32>,
    %cst_46 = arith.constant 2.500000e+00 : f32
    %142 = vector.broadcast %cst_46 : f32 to vector<8x128xf32>
    %143 = arith.mulf %142, %19 : vector<8x128xf32>
    %144 = arith.mulf %143, %129 : vector<8x128xf32>
    %cst_47 = arith.constant 1.500000e+00 : f32
    %145 = vector.broadcast %cst_47 : f32 to vector<8x128xf32>
    %146 = arith.subf %144, %145 : vector<8x128xf32>
    %cst_48 = arith.constant 0.304697186 : f32
    %147 = vector.broadcast %cst_48 : f32 to vector<8x128xf32>
    %148 = arith.mulf %147, %146 : vector<8x128xf32>
    %149 = arith.mulf %148, %17 : vector<8x128xf32>
    %c13 = arith.constant 13 : index
    %150 = arith.index_cast %1 : i32 to index
    %c0_49 = arith.constant 0 : index
    %151 = vector.load %arg2[%c13, %150, %c0_49] : memref<81x8x128xf32, #tpu.memory_space<vmem>>, vector<1x8x128xf32>
    %152 = vector.shape_cast %151 : vector<1x8x128xf32> to vector<8x128xf32>
    %153 = vector.shape_cast %149 : vector<8x128xf32> to vector<1x8x128xf32>
    tpu.vector_store %arg2[%c13, %150, %c0_49], %153 {strides = array<i32>} : memref<81x8x128xf32, #tpu.memory_space<vmem>>, vector<1x8x128xf32>,
    %154 = arith.mulf %148, %18 : vector<8x128xf32>
    %c11 = arith.constant 11 : index
    %155 = arith.index_cast %1 : i32 to index
    %c0_50 = arith.constant 0 : index
    %156 = vector.load %arg2[%c11, %155, %c0_50] : memref<81x8x128xf32, #tpu.memory_space<vmem>>, vector<1x8x128xf32>
    %157 = vector.shape_cast %156 : vector<1x8x128xf32> to vector<8x128xf32>
    %158 = vector.shape_cast %154 : vector<8x128xf32> to vector<1x8x128xf32>
    tpu.vector_store %arg2[%c11, %155, %c0_50], %158 {strides = array<i32>} : memref<81x8x128xf32, #tpu.memory_space<vmem>>, vector<1x8x128xf32>,
    %cst_51 = arith.constant 2.33333325 : f32
    %159 = vector.broadcast %cst_51 : f32 to vector<8x128xf32>
    %160 = arith.mulf %159, %19 : vector<8x128xf32>
    %161 = arith.mulf %160, %146 : vector<8x128xf32>
    %cst_52 = arith.constant 1.33333337 : f32
    %162 = vector.broadcast %cst_52 : f32 to vector<8x128xf32>
    %163 = arith.mulf %162, %129 : vector<8x128xf32>
    %164 = arith.subf %161, %163 : vector<8x128xf32>
    %cst_53 = arith.constant 0.267618626 : f32
    %165 = vector.broadcast %cst_53 : f32 to vector<8x128xf32>
    %166 = arith.mulf %165, %164 : vector<8x128xf32>
    %167 = arith.mulf %166, %17 : vector<8x128xf32>
    %c21 = arith.constant 21 : index
    %168 = arith.index_cast %1 : i32 to index
    %c0_54 = arith.constant 0 : index
    %169 = vector.load %arg2[%c21, %168, %c0_54] : memref<81x8x128xf32, #tpu.memory_space<vmem>>, vector<1x8x128xf32>
    %170 = vector.shape_cast %169 : vector<1x8x128xf32> to vector<8x128xf32>
    %171 = vector.shape_cast %167 : vector<8x128xf32> to vector<1x8x128xf32>
    tpu.vector_store %arg2[%c21, %168, %c0_54], %171 {strides = array<i32>} : memref<81x8x128xf32, #tpu.memory_space<vmem>>, vector<1x8x128xf32>,
    %172 = arith.mulf %166, %18 : vector<8x128xf32>
    %c19 = arith.constant 19 : index
    %173 = arith.index_cast %1 : i32 to index
    %c0_55 = arith.constant 0 : index
    %174 = vector.load %arg2[%c19, %173, %c0_55] : memref<81x8x128xf32, #tpu.memory_space<vmem>>, vector<1x8x128xf32>
    %175 = vector.shape_cast %174 : vector<1x8x128xf32> to vector<8x128xf32>
    %176 = vector.shape_cast %172 : vector<8x128xf32> to vector<1x8x128xf32>
    tpu.vector_store %arg2[%c19, %173, %c0_55], %176 {strides = array<i32>} : memref<81x8x128xf32, #tpu.memory_space<vmem>>, vector<1x8x128xf32>,
    %cst_56 = arith.constant 2.250000e+00 : f32
    %177 = vector.broadcast %cst_56 : f32 to vector<8x128xf32>
    %178 = arith.mulf %177, %19 : vector<8x128xf32>
    %179 = arith.mulf %178, %164 : vector<8x128xf32>
    %cst_57 = arith.constant 1.250000e+00 : f32
    %180 = vector.broadcast %cst_57 : f32 to vector<8x128xf32>
    %181 = arith.mulf %180, %146 : vector<8x128xf32>
    %182 = arith.subf %179, %181 : vector<8x128xf32>
    %cst_58 = arith.constant 0.241571546 : f32
    %183 = vector.broadcast %cst_58 : f32 to vector<8x128xf32>
    %184 = arith.mulf %183, %182 : vector<8x128xf32>
    %185 = arith.mulf %184, %17 : vector<8x128xf32>
    %c31 = arith.constant 31 : index
    %186 = arith.index_cast %1 : i32 to index
    %c0_59 = arith.constant 0 : index
    %187 = vector.load %arg2[%c31, %186, %c0_59] : memref<81x8x128xf32, #tpu.memory_space<vmem>>, vector<1x8x128xf32>
    %188 = vector.shape_cast %187 : vector<1x8x128xf32> to vector<8x128xf32>
    %189 = vector.shape_cast %185 : vector<8x128xf32> to vector<1x8x128xf32>
    tpu.vector_store %arg2[%c31, %186, %c0_59], %189 {strides = array<i32>} : memref<81x8x128xf32, #tpu.memory_space<vmem>>, vector<1x8x128xf32>,
    %190 = arith.mulf %184, %18 : vector<8x128xf32>
    %c29 = arith.constant 29 : index
    %191 = arith.index_cast %1 : i32 to index
    %c0_60 = arith.constant 0 : index
    %192 = vector.load %arg2[%c29, %191, %c0_60] : memref<81x8x128xf32, #tpu.memory_space<vmem>>, vector<1x8x128xf32>
    %193 = vector.shape_cast %192 : vector<1x8x128xf32> to vector<8x128xf32>
    %194 = vector.shape_cast %190 : vector<8x128xf32> to vector<1x8x128xf32>
    tpu.vector_store %arg2[%c29, %191, %c0_60], %194 {strides = array<i32>} : memref<81x8x128xf32, #tpu.memory_space<vmem>>, vector<1x8x128xf32>,
    %cst_61 = arith.constant 2.200000e+00 : f32
    %195 = vector.broadcast %cst_61 : f32 to vector<8x128xf32>
    %196 = arith.mulf %195, %19 : vector<8x128xf32>
    %197 = arith.mulf %196, %182 : vector<8x128xf32>
    %cst_62 = arith.constant 1.200000e+00 : f32
    %198 = vector.broadcast %cst_62 : f32 to vector<8x128xf32>
    %199 = arith.mulf %198, %164 : vector<8x128xf32>
    %200 = arith.subf %197, %199 : vector<8x128xf32>
    %cst_63 = arith.constant 2.219510e-01 : f32
    %201 = vector.broadcast %cst_63 : f32 to vector<8x128xf32>
    %202 = arith.mulf %201, %200 : vector<8x128xf32>
    %203 = arith.mulf %202, %17 : vector<8x128xf32>
    %c43 = arith.constant 43 : index
    %204 = arith.index_cast %1 : i32 to index
    %c0_64 = arith.constant 0 : index
    %205 = vector.load %arg2[%c43, %204, %c0_64] : memref<81x8x128xf32, #tpu.memory_space<vmem>>, vector<1x8x128xf32>
    %206 = vector.shape_cast %205 : vector<1x8x128xf32> to vector<8x128xf32>
    %207 = vector.shape_cast %203 : vector<8x128xf32> to vector<1x8x128xf32>
    tpu.vector_store %arg2[%c43, %204, %c0_64], %207 {strides = array<i32>} : memref<81x8x128xf32, #tpu.memory_space<vmem>>, vector<1x8x128xf32>,
    %208 = arith.mulf %202, %18 : vector<8x128xf32>
    %c41 = arith.constant 41 : index
    %209 = arith.index_cast %1 : i32 to index
    %c0_65 = arith.constant 0 : index
    %210 = vector.load %arg2[%c41, %209, %c0_65] : memref<81x8x128xf32, #tpu.memory_space<vmem>>, vector<1x8x128xf32>
    %211 = vector.shape_cast %210 : vector<1x8x128xf32> to vector<8x128xf32>
    %212 = vector.shape_cast %208 : vector<8x128xf32> to vector<1x8x128xf32>
    tpu.vector_store %arg2[%c41, %209, %c0_65], %212 {strides = array<i32>} : memref<81x8x128xf32, #tpu.memory_space<vmem>>, vector<1x8x128xf32>,
    %cst_66 = arith.constant 2.16666675 : f32
    %213 = vector.broadcast %cst_66 : f32 to vector<8x128xf32>
    %214 = arith.mulf %213, %19 : vector<8x128xf32>
    %215 = arith.mulf %214, %200 : vector<8x128xf32>
    %cst_67 = arith.constant 1.16666663 : f32
    %216 = vector.broadcast %cst_67 : f32 to vector<8x128xf32>
    %217 = arith.mulf %216, %182 : vector<8x128xf32>
    %218 = arith.subf %215, %217 : vector<8x128xf32>
    %cst_68 = arith.constant 0.206472248 : f32
    %219 = vector.broadcast %cst_68 : f32 to vector<8x128xf32>
    %220 = arith.mulf %219, %218 : vector<8x128xf32>
    %221 = arith.mulf %220, %17 : vector<8x128xf32>
    %c57 = arith.constant 57 : index
    %222 = arith.index_cast %1 : i32 to index
    %c0_69 = arith.constant 0 : index
    %223 = vector.load %arg2[%c57, %222, %c0_69] : memref<81x8x128xf32, #tpu.memory_space<vmem>>, vector<1x8x128xf32>
    %224 = vector.shape_cast %223 : vector<1x8x128xf32> to vector<8x128xf32>
    %225 = vector.shape_cast %221 : vector<8x128xf32> to vector<1x8x128xf32>
    tpu.vector_store %arg2[%c57, %222, %c0_69], %225 {strides = array<i32>} : memref<81x8x128xf32, #tpu.memory_space<vmem>>, vector<1x8x128xf32>,
    %226 = arith.mulf %220, %18 : vector<8x128xf32>
    %c55 = arith.constant 55 : index
    %227 = arith.index_cast %1 : i32 to index
    %c0_70 = arith.constant 0 : index
    %228 = vector.load %arg2[%c55, %227, %c0_70] : memref<81x8x128xf32, #tpu.memory_space<vmem>>, vector<1x8x128xf32>
    %229 = vector.shape_cast %228 : vector<1x8x128xf32> to vector<8x128xf32>
    %230 = vector.shape_cast %226 : vector<8x128xf32> to vector<1x8x128xf32>
    tpu.vector_store %arg2[%c55, %227, %c0_70], %230 {strides = array<i32>} : memref<81x8x128xf32, #tpu.memory_space<vmem>>, vector<1x8x128xf32>,
    %cst_71 = arith.constant 2.14285707 : f32
    %231 = vector.broadcast %cst_71 : f32 to vector<8x128xf32>
    %232 = arith.mulf %231, %19 : vector<8x128xf32>
    %233 = arith.mulf %232, %218 : vector<8x128xf32>
    %cst_72 = arith.constant 1.14285719 : f32
    %234 = vector.broadcast %cst_72 : f32 to vector<8x128xf32>
    %235 = arith.mulf %234, %200 : vector<8x128xf32>
    %236 = arith.subf %233, %235 : vector<8x128xf32>
    %cst_73 = arith.constant 0.193851098 : f32
    %237 = vector.broadcast %cst_73 : f32 to vector<8x128xf32>
    %238 = arith.mulf %237, %236 : vector<8x128xf32>
    %239 = arith.mulf %238, %17 : vector<8x128xf32>
    %c73 = arith.constant 73 : index
    %240 = arith.index_cast %1 : i32 to index
    %c0_74 = arith.constant 0 : index
    %241 = vector.load %arg2[%c73, %240, %c0_74] : memref<81x8x128xf32, #tpu.memory_space<vmem>>, vector<1x8x128xf32>
    %242 = vector.shape_cast %241 : vector<1x8x128xf32> to vector<8x128xf32>
    %243 = vector.shape_cast %239 : vector<8x128xf32> to vector<1x8x128xf32>
    tpu.vector_store %arg2[%c73, %240, %c0_74], %243 {strides = array<i32>} : memref<81x8x128xf32, #tpu.memory_space<vmem>>, vector<1x8x128xf32>,
    %244 = arith.mulf %238, %18 : vector<8x128xf32>
    %c71 = arith.constant 71 : index
    %245 = arith.index_cast %1 : i32 to index
    %c0_75 = arith.constant 0 : index
    %246 = vector.load %arg2[%c71, %245, %c0_75] : memref<81x8x128xf32, #tpu.memory_space<vmem>>, vector<1x8x128xf32>
    %247 = vector.shape_cast %246 : vector<1x8x128xf32> to vector<8x128xf32>
    %248 = vector.shape_cast %244 : vector<8x128xf32> to vector<1x8x128xf32>
    tpu.vector_store %arg2[%c71, %245, %c0_75], %248 {strides = array<i32>} : memref<81x8x128xf32, #tpu.memory_space<vmem>>, vector<1x8x128xf32>,
    %249 = arith.mulf %17, %17 : vector<8x128xf32>
    %250 = arith.mulf %18, %18 : vector<8x128xf32>
    %251 = arith.subf %249, %250 : vector<8x128xf32>
    %252 = arith.mulf %17, %18 : vector<8x128xf32>
    %253 = arith.mulf %18, %17 : vector<8x128xf32>
    %254 = arith.addf %252, %253 : vector<8x128xf32>
    %cst_76 = arith.constant 0.546274245 : f32
    %255 = vector.broadcast %cst_76 : f32 to vector<8x128xf32>
    %256 = arith.mulf %255, %251 : vector<8x128xf32>
    %c8 = arith.constant 8 : index
    %257 = arith.index_cast %1 : i32 to index
    %c0_77 = arith.constant 0 : index
    %258 = vector.load %arg2[%c8, %257, %c0_77] : memref<81x8x128xf32, #tpu.memory_space<vmem>>, vector<1x8x128xf32>
    %259 = vector.shape_cast %258 : vector<1x8x128xf32> to vector<8x128xf32>
    %260 = vector.shape_cast %256 : vector<8x128xf32> to vector<1x8x128xf32>
    tpu.vector_store %arg2[%c8, %257, %c0_77], %260 {strides = array<i32>} : memref<81x8x128xf32, #tpu.memory_space<vmem>>, vector<1x8x128xf32>,
    %cst_78 = arith.constant 0.546274245 : f32
    %261 = vector.broadcast %cst_78 : f32 to vector<8x128xf32>
    %262 = arith.mulf %261, %254 : vector<8x128xf32>
    %c4 = arith.constant 4 : index
    %263 = arith.index_cast %1 : i32 to index
    %c0_79 = arith.constant 0 : index
    %264 = vector.load %arg2[%c4, %263, %c0_79] : memref<81x8x128xf32, #tpu.memory_space<vmem>>, vector<1x8x128xf32>
    %265 = vector.shape_cast %264 : vector<1x8x128xf32> to vector<8x128xf32>
    %266 = vector.shape_cast %262 : vector<8x128xf32> to vector<1x8x128xf32>
    tpu.vector_store %arg2[%c4, %263, %c0_79], %266 {strides = array<i32>} : memref<81x8x128xf32, #tpu.memory_space<vmem>>, vector<1x8x128xf32>,
    %cst_80 = arith.constant 1.500000e+01 : f32
    %267 = vector.broadcast %cst_80 : f32 to vector<8x128xf32>
    %268 = arith.mulf %267, %19 : vector<8x128xf32>
    %cst_81 = arith.constant 0.0963537171 : f32
    %269 = vector.broadcast %cst_81 : f32 to vector<8x128xf32>
    %270 = arith.mulf %269, %268 : vector<8x128xf32>
    %271 = arith.mulf %270, %251 : vector<8x128xf32>
    %c14 = arith.constant 14 : index
    %272 = arith.index_cast %1 : i32 to index
    %c0_82 = arith.constant 0 : index
    %273 = vector.load %arg2[%c14, %272, %c0_82] : memref<81x8x128xf32, #tpu.memory_space<vmem>>, vector<1x8x128xf32>
    %274 = vector.shape_cast %273 : vector<1x8x128xf32> to vector<8x128xf32>
    %275 = vector.shape_cast %271 : vector<8x128xf32> to vector<1x8x128xf32>
    tpu.vector_store %arg2[%c14, %272, %c0_82], %275 {strides = array<i32>} : memref<81x8x128xf32, #tpu.memory_space<vmem>>, vector<1x8x128xf32>,
    %276 = arith.mulf %270, %254 : vector<8x128xf32>
    %c10 = arith.constant 10 : index
    %277 = arith.index_cast %1 : i32 to index
    %c0_83 = arith.constant 0 : index
    %278 = vector.load %arg2[%c10, %277, %c0_83] : memref<81x8x128xf32, #tpu.memory_space<vmem>>, vector<1x8x128xf32>
    %279 = vector.shape_cast %278 : vector<1x8x128xf32> to vector<8x128xf32>
    %280 = vector.shape_cast %276 : vector<8x128xf32> to vector<1x8x128xf32>
    tpu.vector_store %arg2[%c10, %277, %c0_83], %280 {strides = array<i32>} : memref<81x8x128xf32, #tpu.memory_space<vmem>>, vector<1x8x128xf32>,
    %cst_84 = arith.constant 3.500000e+00 : f32
    %281 = vector.broadcast %cst_84 : f32 to vector<8x128xf32>
    %282 = arith.mulf %281, %19 : vector<8x128xf32>
    %283 = arith.mulf %282, %268 : vector<8x128xf32>
    %cst_85 = arith.constant 7.500000e+00 : f32
    %284 = vector.broadcast %cst_85 : f32 to vector<8x128xf32>
    %285 = arith.subf %283, %284 : vector<8x128xf32>
    %cst_86 = arith.constant 0.063078314 : f32
    %286 = vector.broadcast %cst_86 : f32 to vector<8x128xf32>
    %287 = arith.mulf %286, %285 : vector<8x128xf32>
    %288 = arith.mulf %287, %251 : vector<8x128xf32>
    %c22 = arith.constant 22 : index
    %289 = arith.index_cast %1 : i32 to index
    %c0_87 = arith.constant 0 : index
    %290 = vector.load %arg2[%c22, %289, %c0_87] : memref<81x8x128xf32, #tpu.memory_space<vmem>>, vector<1x8x128xf32>
    %291 = vector.shape_cast %290 : vector<1x8x128xf32> to vector<8x128xf32>
    %292 = vector.shape_cast %288 : vector<8x128xf32> to vector<1x8x128xf32>
    tpu.vector_store %arg2[%c22, %289, %c0_87], %292 {strides = array<i32>} : memref<81x8x128xf32, #tpu.memory_space<vmem>>, vector<1x8x128xf32>,
    %293 = arith.mulf %287, %254 : vector<8x128xf32>
    %c18 = arith.constant 18 : index
    %294 = arith.index_cast %1 : i32 to index
    %c0_88 = arith.constant 0 : index
    %295 = vector.load %arg2[%c18, %294, %c0_88] : memref<81x8x128xf32, #tpu.memory_space<vmem>>, vector<1x8x128xf32>
    %296 = vector.shape_cast %295 : vector<1x8x128xf32> to vector<8x128xf32>
    %297 = vector.shape_cast %293 : vector<8x128xf32> to vector<1x8x128xf32>
    tpu.vector_store %arg2[%c18, %294, %c0_88], %297 {strides = array<i32>} : memref<81x8x128xf32, #tpu.memory_space<vmem>>, vector<1x8x128xf32>,
    %cst_89 = arith.constant 3.000000e+00 : f32
    %298 = vector.broadcast %cst_89 : f32 to vector<8x128xf32>
    %299 = arith.mulf %298, %19 : vector<8x128xf32>
    %300 = arith.mulf %299, %285 : vector<8x128xf32>
    %cst_90 = arith.constant 2.000000e+00 : f32
    %301 = vector.broadcast %cst_90 : f32 to vector<8x128xf32>
    %302 = arith.mulf %301, %268 : vector<8x128xf32>
    %303 = arith.subf %300, %302 : vector<8x128xf32>
    %cst_91 = arith.constant 0.0456527323 : f32
    %304 = vector.broadcast %cst_91 : f32 to vector<8x128xf32>
    %305 = arith.mulf %304, %303 : vector<8x128xf32>
    %306 = arith.mulf %305, %251 : vector<8x128xf32>
    %c32 = arith.constant 32 : index
    %307 = arith.index_cast %1 : i32 to index
    %c0_92 = arith.constant 0 : index
    %308 = vector.load %arg2[%c32, %307, %c0_92] : memref<81x8x128xf32, #tpu.memory_space<vmem>>, vector<1x8x128xf32>
    %309 = vector.shape_cast %308 : vector<1x8x128xf32> to vector<8x128xf32>
    %310 = vector.shape_cast %306 : vector<8x128xf32> to vector<1x8x128xf32>
    tpu.vector_store %arg2[%c32, %307, %c0_92], %310 {strides = array<i32>} : memref<81x8x128xf32, #tpu.memory_space<vmem>>, vector<1x8x128xf32>,
    %311 = arith.mulf %305, %254 : vector<8x128xf32>
    %c28 = arith.constant 28 : index
    %312 = arith.index_cast %1 : i32 to index
    %c0_93 = arith.constant 0 : index
    %313 = vector.load %arg2[%c28, %312, %c0_93] : memref<81x8x128xf32, #tpu.memory_space<vmem>>, vector<1x8x128xf32>
    %314 = vector.shape_cast %313 : vector<1x8x128xf32> to vector<8x128xf32>
    %315 = vector.shape_cast %311 : vector<8x128xf32> to vector<1x8x128xf32>
    tpu.vector_store %arg2[%c28, %312, %c0_93], %315 {strides = array<i32>} : memref<81x8x128xf32, #tpu.memory_space<vmem>>, vector<1x8x128xf32>,
    %cst_94 = arith.constant 2.750000e+00 : f32
    %316 = vector.broadcast %cst_94 : f32 to vector<8x128xf32>
    %317 = arith.mulf %316, %19 : vector<8x128xf32>
    %318 = arith.mulf %317, %303 : vector<8x128xf32>
    %cst_95 = arith.constant 1.750000e+00 : f32
    %319 = vector.broadcast %cst_95 : f32 to vector<8x128xf32>
    %320 = arith.mulf %319, %285 : vector<8x128xf32>
    %321 = arith.subf %318, %320 : vector<8x128xf32>
    %cst_96 = arith.constant 0.0350935347 : f32
    %322 = vector.broadcast %cst_96 : f32 to vector<8x128xf32>
    %323 = arith.mulf %322, %321 : vector<8x128xf32>
    %324 = arith.mulf %323, %251 : vector<8x128xf32>
    %c44 = arith.constant 44 : index
    %325 = arith.index_cast %1 : i32 to index
    %c0_97 = arith.constant 0 : index
    %326 = vector.load %arg2[%c44, %325, %c0_97] : memref<81x8x128xf32, #tpu.memory_space<vmem>>, vector<1x8x128xf32>
    %327 = vector.shape_cast %326 : vector<1x8x128xf32> to vector<8x128xf32>
    %328 = vector.shape_cast %324 : vector<8x128xf32> to vector<1x8x128xf32>
    tpu.vector_store %arg2[%c44, %325, %c0_97], %328 {strides = array<i32>} : memref<81x8x128xf32, #tpu.memory_space<vmem>>, vector<1x8x128xf32>,
    %329 = arith.mulf %323, %254 : vector<8x128xf32>
    %c40 = arith.constant 40 : index
    %330 = arith.index_cast %1 : i32 to index
    %c0_98 = arith.constant 0 : index
    %331 = vector.load %arg2[%c40, %330, %c0_98] : memref<81x8x128xf32, #tpu.memory_space<vmem>>, vector<1x8x128xf32>
    %332 = vector.shape_cast %331 : vector<1x8x128xf32> to vector<8x128xf32>
    %333 = vector.shape_cast %329 : vector<8x128xf32> to vector<1x8x128xf32>
    tpu.vector_store %arg2[%c40, %330, %c0_98], %333 {strides = array<i32>} : memref<81x8x128xf32, #tpu.memory_space<vmem>>, vector<1x8x128xf32>,
    %cst_99 = arith.constant 2.600000e+00 : f32
    %334 = vector.broadcast %cst_99 : f32 to vector<8x128xf32>
    %335 = arith.mulf %334, %19 : vector<8x128xf32>
    %336 = arith.mulf %335, %321 : vector<8x128xf32>
    %cst_100 = arith.constant 1.600000e+00 : f32
    %337 = vector.broadcast %cst_100 : f32 to vector<8x128xf32>
    %338 = arith.mulf %337, %303 : vector<8x128xf32>
    %339 = arith.subf %336, %338 : vector<8x128xf32>
    %cst_101 = arith.constant 0.0280973129 : f32
    %340 = vector.broadcast %cst_101 : f32 to vector<8x128xf32>
    %341 = arith.mulf %340, %339 : vector<8x128xf32>
    %342 = arith.mulf %341, %251 : vector<8x128xf32>
    %c58 = arith.constant 58 : index
    %343 = arith.index_cast %1 : i32 to index
    %c0_102 = arith.constant 0 : index
    %344 = vector.load %arg2[%c58, %343, %c0_102] : memref<81x8x128xf32, #tpu.memory_space<vmem>>, vector<1x8x128xf32>
    %345 = vector.shape_cast %344 : vector<1x8x128xf32> to vector<8x128xf32>
    %346 = vector.shape_cast %342 : vector<8x128xf32> to vector<1x8x128xf32>
    tpu.vector_store %arg2[%c58, %343, %c0_102], %346 {strides = array<i32>} : memref<81x8x128xf32, #tpu.memory_space<vmem>>, vector<1x8x128xf32>,
    %347 = arith.mulf %341, %254 : vector<8x128xf32>
    %c54 = arith.constant 54 : index
    %348 = arith.index_cast %1 : i32 to index
    %c0_103 = arith.constant 0 : index
    %349 = vector.load %arg2[%c54, %348, %c0_103] : memref<81x8x128xf32, #tpu.memory_space<vmem>>, vector<1x8x128xf32>
    %350 = vector.shape_cast %349 : vector<1x8x128xf32> to vector<8x128xf32>
    %351 = vector.shape_cast %347 : vector<8x128xf32> to vector<1x8x128xf32>
    tpu.vector_store %arg2[%c54, %348, %c0_103], %351 {strides = array<i32>} : memref<81x8x128xf32, #tpu.memory_space<vmem>>, vector<1x8x128xf32>,
    %cst_104 = arith.constant 2.500000e+00 : f32
    %352 = vector.broadcast %cst_104 : f32 to vector<8x128xf32>
    %353 = arith.mulf %352, %19 : vector<8x128xf32>
    %354 = arith.mulf %353, %339 : vector<8x128xf32>
    %cst_105 = arith.constant 1.500000e+00 : f32
    %355 = vector.broadcast %cst_105 : f32 to vector<8x128xf32>
    %356 = arith.mulf %355, %321 : vector<8x128xf32>
    %357 = arith.subf %354, %356 : vector<8x128xf32>
    %cst_106 = arith.constant 0.0231696386 : f32
    %358 = vector.broadcast %cst_106 : f32 to vector<8x128xf32>
    %359 = arith.mulf %358, %357 : vector<8x128xf32>
    %360 = arith.mulf %359, %251 : vector<8x128xf32>
    %c74 = arith.constant 74 : index
    %361 = arith.index_cast %1 : i32 to index
    %c0_107 = arith.constant 0 : index
    %362 = vector.load %arg2[%c74, %361, %c0_107] : memref<81x8x128xf32, #tpu.memory_space<vmem>>, vector<1x8x128xf32>
    %363 = vector.shape_cast %362 : vector<1x8x128xf32> to vector<8x128xf32>
    %364 = vector.shape_cast %360 : vector<8x128xf32> to vector<1x8x128xf32>
    tpu.vector_store %arg2[%c74, %361, %c0_107], %364 {strides = array<i32>} : memref<81x8x128xf32, #tpu.memory_space<vmem>>, vector<1x8x128xf32>,
    %365 = arith.mulf %359, %254 : vector<8x128xf32>
    %c70 = arith.constant 70 : index
    %366 = arith.index_cast %1 : i32 to index
    %c0_108 = arith.constant 0 : index
    %367 = vector.load %arg2[%c70, %366, %c0_108] : memref<81x8x128xf32, #tpu.memory_space<vmem>>, vector<1x8x128xf32>
    %368 = vector.shape_cast %367 : vector<1x8x128xf32> to vector<8x128xf32>
    %369 = vector.shape_cast %365 : vector<8x128xf32> to vector<1x8x128xf32>
    tpu.vector_store %arg2[%c70, %366, %c0_108], %369 {strides = array<i32>} : memref<81x8x128xf32, #tpu.memory_space<vmem>>, vector<1x8x128xf32>,
    %370 = arith.mulf %251, %17 : vector<8x128xf32>
    %371 = arith.mulf %254, %18 : vector<8x128xf32>
    %372 = arith.subf %370, %371 : vector<8x128xf32>
    %373 = arith.mulf %251, %18 : vector<8x128xf32>
    %374 = arith.mulf %254, %17 : vector<8x128xf32>
    %375 = arith.addf %373, %374 : vector<8x128xf32>
    %cst_109 = arith.constant 0.590043604 : f32
    %376 = vector.broadcast %cst_109 : f32 to vector<8x128xf32>
    %377 = arith.mulf %376, %372 : vector<8x128xf32>
    %c15 = arith.constant 15 : index
    %378 = arith.index_cast %1 : i32 to index
    %c0_110 = arith.constant 0 : index
    %379 = vector.load %arg2[%c15, %378, %c0_110] : memref<81x8x128xf32, #tpu.memory_space<vmem>>, vector<1x8x128xf32>
    %380 = vector.shape_cast %379 : vector<1x8x128xf32> to vector<8x128xf32>
    %381 = vector.shape_cast %377 : vector<8x128xf32> to vector<1x8x128xf32>
    tpu.vector_store %arg2[%c15, %378, %c0_110], %381 {strides = array<i32>} : memref<81x8x128xf32, #tpu.memory_space<vmem>>, vector<1x8x128xf32>,
    %cst_111 = arith.constant 0.590043604 : f32
    %382 = vector.broadcast %cst_111 : f32 to vector<8x128xf32>
    %383 = arith.mulf %382, %375 : vector<8x128xf32>
    %c9 = arith.constant 9 : index
    %384 = arith.index_cast %1 : i32 to index
    %c0_112 = arith.constant 0 : index
    %385 = vector.load %arg2[%c9, %384, %c0_112] : memref<81x8x128xf32, #tpu.memory_space<vmem>>, vector<1x8x128xf32>
    %386 = vector.shape_cast %385 : vector<1x8x128xf32> to vector<8x128xf32>
    %387 = vector.shape_cast %383 : vector<8x128xf32> to vector<1x8x128xf32>
    tpu.vector_store %arg2[%c9, %384, %c0_112], %387 {strides = array<i32>} : memref<81x8x128xf32, #tpu.memory_space<vmem>>, vector<1x8x128xf32>,
    %cst_113 = arith.constant 1.050000e+02 : f32
    %388 = vector.broadcast %cst_113 : f32 to vector<8x128xf32>
    %389 = arith.mulf %388, %19 : vector<8x128xf32>
    %cst_114 = arith.constant 0.0168583877 : f32
    %390 = vector.broadcast %cst_114 : f32 to vector<8x128xf32>
    %391 = arith.mulf %390, %389 : vector<8x128xf32>
    %392 = arith.mulf %391, %372 : vector<8x128xf32>
    %c23 = arith.constant 23 : index
    %393 = arith.index_cast %1 : i32 to index
    %c0_115 = arith.constant 0 : index
    %394 = vector.load %arg2[%c23, %393, %c0_115] : memref<81x8x128xf32, #tpu.memory_space<vmem>>, vector<1x8x128xf32>
    %395 = vector.shape_cast %394 : vector<1x8x128xf32> to vector<8x128xf32>
    %396 = vector.shape_cast %392 : vector<8x128xf32> to vector<1x8x128xf32>
    tpu.vector_store %arg2[%c23, %393, %c0_115], %396 {strides = array<i32>} : memref<81x8x128xf32, #tpu.memory_space<vmem>>, vector<1x8x128xf32>,
    %397 = arith.mulf %391, %375 : vector<8x128xf32>
    %c17 = arith.constant 17 : index
    %398 = arith.index_cast %1 : i32 to index
    %c0_116 = arith.constant 0 : index
    %399 = vector.load %arg2[%c17, %398, %c0_116] : memref<81x8x128xf32, #tpu.memory_space<vmem>>, vector<1x8x128xf32>
    %400 = vector.shape_cast %399 : vector<1x8x128xf32> to vector<8x128xf32>
    %401 = vector.shape_cast %397 : vector<8x128xf32> to vector<1x8x128xf32>
    tpu.vector_store %arg2[%c17, %398, %c0_116], %401 {strides = array<i32>} : memref<81x8x128xf32, #tpu.memory_space<vmem>>, vector<1x8x128xf32>,
    %cst_117 = arith.constant 4.500000e+00 : f32
    %402 = vector.broadcast %cst_117 : f32 to vector<8x128xf32>
    %403 = arith.mulf %402, %19 : vector<8x128xf32>
    %404 = arith.mulf %403, %389 : vector<8x128xf32>
    %cst_118 = arith.constant 5.250000e+01 : f32
    %405 = vector.broadcast %cst_118 : f32 to vector<8x128xf32>
    %406 = arith.subf %404, %405 : vector<8x128xf32>
    %cst_119 = arith.constant 0.00931882485 : f32
    %407 = vector.broadcast %cst_119 : f32 to vector<8x128xf32>
    %408 = arith.mulf %407, %406 : vector<8x128xf32>
    %409 = arith.mulf %408, %372 : vector<8x128xf32>
    %c33 = arith.constant 33 : index
    %410 = arith.index_cast %1 : i32 to index
    %c0_120 = arith.constant 0 : index
    %411 = vector.load %arg2[%c33, %410, %c0_120] : memref<81x8x128xf32, #tpu.memory_space<vmem>>, vector<1x8x128xf32>
    %412 = vector.shape_cast %411 : vector<1x8x128xf32> to vector<8x128xf32>
    %413 = vector.shape_cast %409 : vector<8x128xf32> to vector<1x8x128xf32>
    tpu.vector_store %arg2[%c33, %410, %c0_120], %413 {strides = array<i32>} : memref<81x8x128xf32, #tpu.memory_space<vmem>>, vector<1x8x128xf32>,
    %414 = arith.mulf %408, %375 : vector<8x128xf32>
    %c27 = arith.constant 27 : index
    %415 = arith.index_cast %1 : i32 to index
    %c0_121 = arith.constant 0 : index
    %416 = vector.load %arg2[%c27, %415, %c0_121] : memref<81x8x128xf32, #tpu.memory_space<vmem>>, vector<1x8x128xf32>
    %417 = vector.shape_cast %416 : vector<1x8x128xf32> to vector<8x128xf32>
    %418 = vector.shape_cast %414 : vector<8x128xf32> to vector<1x8x128xf32>
    tpu.vector_store %arg2[%c27, %415, %c0_121], %418 {strides = array<i32>} : memref<81x8x128xf32, #tpu.memory_space<vmem>>, vector<1x8x128xf32>,
    %cst_122 = arith.constant 3.66666675 : f32
    %419 = vector.broadcast %cst_122 : f32 to vector<8x128xf32>
    %420 = arith.mulf %419, %19 : vector<8x128xf32>
    %421 = arith.mulf %420, %406 : vector<8x128xf32>
    %cst_123 = arith.constant 2.66666675 : f32
    %422 = vector.broadcast %cst_123 : f32 to vector<8x128xf32>
    %423 = arith.mulf %422, %389 : vector<8x128xf32>
    %424 = arith.subf %421, %423 : vector<8x128xf32>
    %cst_124 = arith.constant 0.0058489223 : f32
    %425 = vector.broadcast %cst_124 : f32 to vector<8x128xf32>
    %426 = arith.mulf %425, %424 : vector<8x128xf32>
    %427 = arith.mulf %426, %372 : vector<8x128xf32>
    %c45 = arith.constant 45 : index
    %428 = arith.index_cast %1 : i32 to index
    %c0_125 = arith.constant 0 : index
    %429 = vector.load %arg2[%c45, %428, %c0_125] : memref<81x8x128xf32, #tpu.memory_space<vmem>>, vector<1x8x128xf32>
    %430 = vector.shape_cast %429 : vector<1x8x128xf32> to vector<8x128xf32>
    %431 = vector.shape_cast %427 : vector<8x128xf32> to vector<1x8x128xf32>
    tpu.vector_store %arg2[%c45, %428, %c0_125], %431 {strides = array<i32>} : memref<81x8x128xf32, #tpu.memory_space<vmem>>, vector<1x8x128xf32>,
    %432 = arith.mulf %426, %375 : vector<8x128xf32>
    %c39 = arith.constant 39 : index
    %433 = arith.index_cast %1 : i32 to index
    %c0_126 = arith.constant 0 : index
    %434 = vector.load %arg2[%c39, %433, %c0_126] : memref<81x8x128xf32, #tpu.memory_space<vmem>>, vector<1x8x128xf32>
    %435 = vector.shape_cast %434 : vector<1x8x128xf32> to vector<8x128xf32>
    %436 = vector.shape_cast %432 : vector<8x128xf32> to vector<1x8x128xf32>
    tpu.vector_store %arg2[%c39, %433, %c0_126], %436 {strides = array<i32>} : memref<81x8x128xf32, #tpu.memory_space<vmem>>, vector<1x8x128xf32>,
    %cst_127 = arith.constant 3.250000e+00 : f32
    %437 = vector.broadcast %cst_127 : f32 to vector<8x128xf32>
    %438 = arith.mulf %437, %19 : vector<8x128xf32>
    %439 = arith.mulf %438, %424 : vector<8x128xf32>
    %cst_128 = arith.constant 2.250000e+00 : f32
    %440 = vector.broadcast %cst_128 : f32 to vector<8x128xf32>
    %441 = arith.mulf %440, %406 : vector<8x128xf32>
    %442 = arith.subf %439, %441 : vector<8x128xf32>
    %cst_129 = arith.constant 0.00397356041 : f32
    %443 = vector.broadcast %cst_129 : f32 to vector<8x128xf32>
    %444 = arith.mulf %443, %442 : vector<8x128xf32>
    %445 = arith.mulf %444, %372 : vector<8x128xf32>
    %c59 = arith.constant 59 : index
    %446 = arith.index_cast %1 : i32 to index
    %c0_130 = arith.constant 0 : index
    %447 = vector.load %arg2[%c59, %446, %c0_130] : memref<81x8x128xf32, #tpu.memory_space<vmem>>, vector<1x8x128xf32>
    %448 = vector.shape_cast %447 : vector<1x8x128xf32> to vector<8x128xf32>
    %449 = vector.shape_cast %445 : vector<8x128xf32> to vector<1x8x128xf32>
    tpu.vector_store %arg2[%c59, %446, %c0_130], %449 {strides = array<i32>} : memref<81x8x128xf32, #tpu.memory_space<vmem>>, vector<1x8x128xf32>,
    %450 = arith.mulf %444, %375 : vector<8x128xf32>
    %c53 = arith.constant 53 : index
    %451 = arith.index_cast %1 : i32 to index
    %c0_131 = arith.constant 0 : index
    %452 = vector.load %arg2[%c53, %451, %c0_131] : memref<81x8x128xf32, #tpu.memory_space<vmem>>, vector<1x8x128xf32>
    %453 = vector.shape_cast %452 : vector<1x8x128xf32> to vector<8x128xf32>
    %454 = vector.shape_cast %450 : vector<8x128xf32> to vector<1x8x128xf32>
    tpu.vector_store %arg2[%c53, %451, %c0_131], %454 {strides = array<i32>} : memref<81x8x128xf32, #tpu.memory_space<vmem>>, vector<1x8x128xf32>,
    %cst_132 = arith.constant 3.000000e+00 : f32
    %455 = vector.broadcast %cst_132 : f32 to vector<8x128xf32>
    %456 = arith.mulf %455, %19 : vector<8x128xf32>
    %457 = arith.mulf %456, %442 : vector<8x128xf32>
    %cst_133 = arith.constant 2.000000e+00 : f32
    %458 = vector.broadcast %cst_133 : f32 to vector<8x128xf32>
    %459 = arith.mulf %458, %424 : vector<8x128xf32>
    %460 = arith.subf %457, %459 : vector<8x128xf32>
    %cst_134 = arith.constant 0.00285198539 : f32
    %461 = vector.broadcast %cst_134 : f32 to vector<8x128xf32>
    %462 = arith.mulf %461, %460 : vector<8x128xf32>
    %463 = arith.mulf %462, %372 : vector<8x128xf32>
    %c75 = arith.constant 75 : index
    %464 = arith.index_cast %1 : i32 to index
    %c0_135 = arith.constant 0 : index
    %465 = vector.load %arg2[%c75, %464, %c0_135] : memref<81x8x128xf32, #tpu.memory_space<vmem>>, vector<1x8x128xf32>
    %466 = vector.shape_cast %465 : vector<1x8x128xf32> to vector<8x128xf32>
    %467 = vector.shape_cast %463 : vector<8x128xf32> to vector<1x8x128xf32>
    tpu.vector_store %arg2[%c75, %464, %c0_135], %467 {strides = array<i32>} : memref<81x8x128xf32, #tpu.memory_space<vmem>>, vector<1x8x128xf32>,
    %468 = arith.mulf %462, %375 : vector<8x128xf32>
    %c69 = arith.constant 69 : index
    %469 = arith.index_cast %1 : i32 to index
    %c0_136 = arith.constant 0 : index
    %470 = vector.load %arg2[%c69, %469, %c0_136] : memref<81x8x128xf32, #tpu.memory_space<vmem>>, vector<1x8x128xf32>
    %471 = vector.shape_cast %470 : vector<1x8x128xf32> to vector<8x128xf32>
    %472 = vector.shape_cast %468 : vector<8x128xf32> to vector<1x8x128xf32>
    tpu.vector_store %arg2[%c69, %469, %c0_136], %472 {strides = array<i32>} : memref<81x8x128xf32, #tpu.memory_space<vmem>>, vector<1x8x128xf32>,
    %473 = arith.mulf %372, %17 : vector<8x128xf32>
    %474 = arith.mulf %375, %18 : vector<8x128xf32>
    %475 = arith.subf %473, %474 : vector<8x128xf32>
    %476 = arith.mulf %372, %18 : vector<8x128xf32>
    %477 = arith.mulf %375, %17 : vector<8x128xf32>
    %478 = arith.addf %476, %477 : vector<8x128xf32>
    %cst_137 = arith.constant 0.625835716 : f32
    %479 = vector.broadcast %cst_137 : f32 to vector<8x128xf32>
    %480 = arith.mulf %479, %475 : vector<8x128xf32>
    %c24 = arith.constant 24 : index
    %481 = arith.index_cast %1 : i32 to index
    %c0_138 = arith.constant 0 : index
    %482 = vector.load %arg2[%c24, %481, %c0_138] : memref<81x8x128xf32, #tpu.memory_space<vmem>>, vector<1x8x128xf32>
    %483 = vector.shape_cast %482 : vector<1x8x128xf32> to vector<8x128xf32>
    %484 = vector.shape_cast %480 : vector<8x128xf32> to vector<1x8x128xf32>
    tpu.vector_store %arg2[%c24, %481, %c0_138], %484 {strides = array<i32>} : memref<81x8x128xf32, #tpu.memory_space<vmem>>, vector<1x8x128xf32>,
    %cst_139 = arith.constant 0.625835716 : f32
    %485 = vector.broadcast %cst_139 : f32 to vector<8x128xf32>
    %486 = arith.mulf %485, %478 : vector<8x128xf32>
    %c16 = arith.constant 16 : index
    %487 = arith.index_cast %1 : i32 to index
    %c0_140 = arith.constant 0 : index
    %488 = vector.load %arg2[%c16, %487, %c0_140] : memref<81x8x128xf32, #tpu.memory_space<vmem>>, vector<1x8x128xf32>
    %489 = vector.shape_cast %488 : vector<1x8x128xf32> to vector<8x128xf32>
    %490 = vector.shape_cast %486 : vector<8x128xf32> to vector<1x8x128xf32>
    tpu.vector_store %arg2[%c16, %487, %c0_140], %490 {strides = array<i32>} : memref<81x8x128xf32, #tpu.memory_space<vmem>>, vector<1x8x128xf32>,
    %cst_141 = arith.constant 9.450000e+02 : f32
    %491 = vector.broadcast %cst_141 : f32 to vector<8x128xf32>
    %492 = arith.mulf %491, %19 : vector<8x128xf32>
    %cst_142 = arith.constant 0.00219646795 : f32
    %493 = vector.broadcast %cst_142 : f32 to vector<8x128xf32>
    %494 = arith.mulf %493, %492 : vector<8x128xf32>
    %495 = arith.mulf %494, %475 : vector<8x128xf32>
    %c34 = arith.constant 34 : index
    %496 = arith.index_cast %1 : i32 to index
    %c0_143 = arith.constant 0 : index
    %497 = vector.load %arg2[%c34, %496, %c0_143] : memref<81x8x128xf32, #tpu.memory_space<vmem>>, vector<1x8x128xf32>
    %498 = vector.shape_cast %497 : vector<1x8x128xf32> to vector<8x128xf32>
    %499 = vector.shape_cast %495 : vector<8x128xf32> to vector<1x8x128xf32>
    tpu.vector_store %arg2[%c34, %496, %c0_143], %499 {strides = array<i32>} : memref<81x8x128xf32, #tpu.memory_space<vmem>>, vector<1x8x128xf32>,
    %500 = arith.mulf %494, %478 : vector<8x128xf32>
    %c26 = arith.constant 26 : index
    %501 = arith.index_cast %1 : i32 to index
    %c0_144 = arith.constant 0 : index
    %502 = vector.load %arg2[%c26, %501, %c0_144] : memref<81x8x128xf32, #tpu.memory_space<vmem>>, vector<1x8x128xf32>
    %503 = vector.shape_cast %502 : vector<1x8x128xf32> to vector<8x128xf32>
    %504 = vector.shape_cast %500 : vector<8x128xf32> to vector<1x8x128xf32>
    tpu.vector_store %arg2[%c26, %501, %c0_144], %504 {strides = array<i32>} : memref<81x8x128xf32, #tpu.memory_space<vmem>>, vector<1x8x128xf32>,
    %cst_145 = arith.constant 5.500000e+00 : f32
    %505 = vector.broadcast %cst_145 : f32 to vector<8x128xf32>
    %506 = arith.mulf %505, %19 : vector<8x128xf32>
    %507 = arith.mulf %506, %492 : vector<8x128xf32>
    %cst_146 = arith.constant 4.725000e+02 : f32
    %508 = vector.broadcast %cst_146 : f32 to vector<8x128xf32>
    %509 = arith.subf %507, %508 : vector<8x128xf32>
    %cst_147 = arith.constant 0.00106786226 : f32
    %510 = vector.broadcast %cst_147 : f32 to vector<8x128xf32>
    %511 = arith.mulf %510, %509 : vector<8x128xf32>
    %512 = arith.mulf %511, %475 : vector<8x128xf32>
    %c46 = arith.constant 46 : index
    %513 = arith.index_cast %1 : i32 to index
    %c0_148 = arith.constant 0 : index
    %514 = vector.load %arg2[%c46, %513, %c0_148] : memref<81x8x128xf32, #tpu.memory_space<vmem>>, vector<1x8x128xf32>
    %515 = vector.shape_cast %514 : vector<1x8x128xf32> to vector<8x128xf32>
    %516 = vector.shape_cast %512 : vector<8x128xf32> to vector<1x8x128xf32>
    tpu.vector_store %arg2[%c46, %513, %c0_148], %516 {strides = array<i32>} : memref<81x8x128xf32, #tpu.memory_space<vmem>>, vector<1x8x128xf32>,
    %517 = arith.mulf %511, %478 : vector<8x128xf32>
    %c38 = arith.constant 38 : index
    %518 = arith.index_cast %1 : i32 to index
    %c0_149 = arith.constant 0 : index
    %519 = vector.load %arg2[%c38, %518, %c0_149] : memref<81x8x128xf32, #tpu.memory_space<vmem>>, vector<1x8x128xf32>
    %520 = vector.shape_cast %519 : vector<1x8x128xf32> to vector<8x128xf32>
    %521 = vector.shape_cast %517 : vector<8x128xf32> to vector<1x8x128xf32>
    tpu.vector_store %arg2[%c38, %518, %c0_149], %521 {strides = array<i32>} : memref<81x8x128xf32, #tpu.memory_space<vmem>>, vector<1x8x128xf32>,
    %cst_150 = arith.constant 4.33333349 : f32
    %522 = vector.broadcast %cst_150 : f32 to vector<8x128xf32>
    %523 = arith.mulf %522, %19 : vector<8x128xf32>
    %524 = arith.mulf %523, %509 : vector<8x128xf32>
    %cst_151 = arith.constant 3.33333325 : f32
    %525 = vector.broadcast %cst_151 : f32 to vector<8x128xf32>
    %526 = arith.mulf %525, %492 : vector<8x128xf32>
    %527 = arith.subf %524, %526 : vector<8x128xf32>
    %cst_152 = arith.constant 5.9903675E-4 : f32
    %528 = vector.broadcast %cst_152 : f32 to vector<8x128xf32>
    %529 = arith.mulf %528, %527 : vector<8x128xf32>
    %530 = arith.mulf %529, %475 : vector<8x128xf32>
    %c60 = arith.constant 60 : index
    %531 = arith.index_cast %1 : i32 to index
    %c0_153 = arith.constant 0 : index
    %532 = vector.load %arg2[%c60, %531, %c0_153] : memref<81x8x128xf32, #tpu.memory_space<vmem>>, vector<1x8x128xf32>
    %533 = vector.shape_cast %532 : vector<1x8x128xf32> to vector<8x128xf32>
    %534 = vector.shape_cast %530 : vector<8x128xf32> to vector<1x8x128xf32>
    tpu.vector_store %arg2[%c60, %531, %c0_153], %534 {strides = array<i32>} : memref<81x8x128xf32, #tpu.memory_space<vmem>>, vector<1x8x128xf32>,
    %535 = arith.mulf %529, %478 : vector<8x128xf32>
    %c52 = arith.constant 52 : index
    %536 = arith.index_cast %1 : i32 to index
    %c0_154 = arith.constant 0 : index
    %537 = vector.load %arg2[%c52, %536, %c0_154] : memref<81x8x128xf32, #tpu.memory_space<vmem>>, vector<1x8x128xf32>
    %538 = vector.shape_cast %537 : vector<1x8x128xf32> to vector<8x128xf32>
    %539 = vector.shape_cast %535 : vector<8x128xf32> to vector<1x8x128xf32>
    tpu.vector_store %arg2[%c52, %536, %c0_154], %539 {strides = array<i32>} : memref<81x8x128xf32, #tpu.memory_space<vmem>>, vector<1x8x128xf32>,
    %cst_155 = arith.constant 3.750000e+00 : f32
    %540 = vector.broadcast %cst_155 : f32 to vector<8x128xf32>
    %541 = arith.mulf %540, %19 : vector<8x128xf32>
    %542 = arith.mulf %541, %527 : vector<8x128xf32>
    %cst_156 = arith.constant 2.750000e+00 : f32
    %543 = vector.broadcast %cst_156 : f32 to vector<8x128xf32>
    %544 = arith.mulf %543, %509 : vector<8x128xf32>
    %545 = arith.subf %542, %544 : vector<8x128xf32>
    %cst_157 = arith.constant 3.68189736E-4 : f32
    %546 = vector.broadcast %cst_157 : f32 to vector<8x128xf32>
    %547 = arith.mulf %546, %545 : vector<8x128xf32>
    %548 = arith.mulf %547, %475 : vector<8x128xf32>
    %c76 = arith.constant 76 : index
    %549 = arith.index_cast %1 : i32 to index
    %c0_158 = arith.constant 0 : index
    %550 = vector.load %arg2[%c76, %549, %c0_158] : memref<81x8x128xf32, #tpu.memory_space<vmem>>, vector<1x8x128xf32>
    %551 = vector.shape_cast %550 : vector<1x8x128xf32> to vector<8x128xf32>
    %552 = vector.shape_cast %548 : vector<8x128xf32> to vector<1x8x128xf32>
    tpu.vector_store %arg2[%c76, %549, %c0_158], %552 {strides = array<i32>} : memref<81x8x128xf32, #tpu.memory_space<vmem>>, vector<1x8x128xf32>,
    %553 = arith.mulf %547, %478 : vector<8x128xf32>
    %c68 = arith.constant 68 : index
    %554 = arith.index_cast %1 : i32 to index
    %c0_159 = arith.constant 0 : index
    %555 = vector.load %arg2[%c68, %554, %c0_159] : memref<81x8x128xf32, #tpu.memory_space<vmem>>, vector<1x8x128xf32>
    %556 = vector.shape_cast %555 : vector<1x8x128xf32> to vector<8x128xf32>
    %557 = vector.shape_cast %553 : vector<8x128xf32> to vector<1x8x128xf32>
    tpu.vector_store %arg2[%c68, %554, %c0_159], %557 {strides = array<i32>} : memref<81x8x128xf32, #tpu.memory_space<vmem>>, vector<1x8x128xf32>,
    %558 = arith.mulf %475, %17 : vector<8x128xf32>
    %559 = arith.mulf %478, %18 : vector<8x128xf32>
    %560 = arith.subf %558, %559 : vector<8x128xf32>
    %561 = arith.mulf %475, %18 : vector<8x128xf32>
    %562 = arith.mulf %478, %17 : vector<8x128xf32>
    %563 = arith.addf %561, %562 : vector<8x128xf32>
    %cst_160 = arith.constant 0.656382083 : f32
    %564 = vector.broadcast %cst_160 : f32 to vector<8x128xf32>
    %565 = arith.mulf %564, %560 : vector<8x128xf32>
    %c35 = arith.constant 35 : index
    %566 = arith.index_cast %1 : i32 to index
    %c0_161 = arith.constant 0 : index
    %567 = vector.load %arg2[%c35, %566, %c0_161] : memref<81x8x128xf32, #tpu.memory_space<vmem>>, vector<1x8x128xf32>
    %568 = vector.shape_cast %567 : vector<1x8x128xf32> to vector<8x128xf32>
    %569 = vector.shape_cast %565 : vector<8x128xf32> to vector<1x8x128xf32>
    tpu.vector_store %arg2[%c35, %566, %c0_161], %569 {strides = array<i32>} : memref<81x8x128xf32, #tpu.memory_space<vmem>>, vector<1x8x128xf32>,
    %cst_162 = arith.constant 0.656382083 : f32
    %570 = vector.broadcast %cst_162 : f32 to vector<8x128xf32>
    %571 = arith.mulf %570, %563 : vector<8x128xf32>
    %c25 = arith.constant 25 : index
    %572 = arith.index_cast %1 : i32 to index
    %c0_163 = arith.constant 0 : index
    %573 = vector.load %arg2[%c25, %572, %c0_163] : memref<81x8x128xf32, #tpu.memory_space<vmem>>, vector<1x8x128xf32>
    %574 = vector.shape_cast %573 : vector<1x8x128xf32> to vector<8x128xf32>
    %575 = vector.shape_cast %571 : vector<8x128xf32> to vector<1x8x128xf32>
    tpu.vector_store %arg2[%c25, %572, %c0_163], %575 {strides = array<i32>} : memref<81x8x128xf32, #tpu.memory_space<vmem>>, vector<1x8x128xf32>,
    %cst_164 = arith.constant 1.039500e+04 : f32
    %576 = vector.broadcast %cst_164 : f32 to vector<8x128xf32>
    %577 = arith.mulf %576, %19 : vector<8x128xf32>
    %cst_165 = arith.constant 2.27668992E-4 : f32
    %578 = vector.broadcast %cst_165 : f32 to vector<8x128xf32>
    %579 = arith.mulf %578, %577 : vector<8x128xf32>
    %580 = arith.mulf %579, %560 : vector<8x128xf32>
    %c47 = arith.constant 47 : index
    %581 = arith.index_cast %1 : i32 to index
    %c0_166 = arith.constant 0 : index
    %582 = vector.load %arg2[%c47, %581, %c0_166] : memref<81x8x128xf32, #tpu.memory_space<vmem>>, vector<1x8x128xf32>
    %583 = vector.shape_cast %582 : vector<1x8x128xf32> to vector<8x128xf32>
    %584 = vector.shape_cast %580 : vector<8x128xf32> to vector<1x8x128xf32>
    tpu.vector_store %arg2[%c47, %581, %c0_166], %584 {strides = array<i32>} : memref<81x8x128xf32, #tpu.memory_space<vmem>>, vector<1x8x128xf32>,
    %585 = arith.mulf %579, %563 : vector<8x128xf32>
    %c37 = arith.constant 37 : index
    %586 = arith.index_cast %1 : i32 to index
    %c0_167 = arith.constant 0 : index
    %587 = vector.load %arg2[%c37, %586, %c0_167] : memref<81x8x128xf32, #tpu.memory_space<vmem>>, vector<1x8x128xf32>
    %588 = vector.shape_cast %587 : vector<1x8x128xf32> to vector<8x128xf32>
    %589 = vector.shape_cast %585 : vector<8x128xf32> to vector<1x8x128xf32>
    tpu.vector_store %arg2[%c37, %586, %c0_167], %589 {strides = array<i32>} : memref<81x8x128xf32, #tpu.memory_space<vmem>>, vector<1x8x128xf32>,
    %cst_168 = arith.constant 6.500000e+00 : f32
    %590 = vector.broadcast %cst_168 : f32 to vector<8x128xf32>
    %591 = arith.mulf %590, %19 : vector<8x128xf32>
    %592 = arith.mulf %591, %577 : vector<8x128xf32>
    %cst_169 = arith.constant 5.197500e+03 : f32
    %593 = vector.broadcast %cst_169 : f32 to vector<8x128xf32>
    %594 = arith.subf %592, %593 : vector<8x128xf32>
    %cst_170 = arith.constant 9.98394607E-5 : f32
    %595 = vector.broadcast %cst_170 : f32 to vector<8x128xf32>
    %596 = arith.mulf %595, %594 : vector<8x128xf32>
    %597 = arith.mulf %596, %560 : vector<8x128xf32>
    %c61 = arith.constant 61 : index
    %598 = arith.index_cast %1 : i32 to index
    %c0_171 = arith.constant 0 : index
    %599 = vector.load %arg2[%c61, %598, %c0_171] : memref<81x8x128xf32, #tpu.memory_space<vmem>>, vector<1x8x128xf32>
    %600 = vector.shape_cast %599 : vector<1x8x128xf32> to vector<8x128xf32>
    %601 = vector.shape_cast %597 : vector<8x128xf32> to vector<1x8x128xf32>
    tpu.vector_store %arg2[%c61, %598, %c0_171], %601 {strides = array<i32>} : memref<81x8x128xf32, #tpu.memory_space<vmem>>, vector<1x8x128xf32>,
    %602 = arith.mulf %596, %563 : vector<8x128xf32>
    %c51 = arith.constant 51 : index
    %603 = arith.index_cast %1 : i32 to index
    %c0_172 = arith.constant 0 : index
    %604 = vector.load %arg2[%c51, %603, %c0_172] : memref<81x8x128xf32, #tpu.memory_space<vmem>>, vector<1x8x128xf32>
    %605 = vector.shape_cast %604 : vector<1x8x128xf32> to vector<8x128xf32>
    %606 = vector.shape_cast %602 : vector<8x128xf32> to vector<1x8x128xf32>
    tpu.vector_store %arg2[%c51, %603, %c0_172], %606 {strides = array<i32>} : memref<81x8x128xf32, #tpu.memory_space<vmem>>, vector<1x8x128xf32>,
    %cst_173 = arith.constant 5.000000e+00 : f32
    %607 = vector.broadcast %cst_173 : f32 to vector<8x128xf32>
    %608 = arith.mulf %607, %19 : vector<8x128xf32>
    %609 = arith.mulf %608, %594 : vector<8x128xf32>
    %cst_174 = arith.constant 4.000000e+00 : f32
    %610 = vector.broadcast %cst_174 : f32 to vector<8x128xf32>
    %611 = arith.mulf %610, %577 : vector<8x128xf32>
    %612 = arith.subf %609, %611 : vector<8x128xf32>
    %cst_175 = arith.constant 5.1058727E-5 : f32
    %613 = vector.broadcast %cst_175 : f32 to vector<8x128xf32>
    %614 = arith.mulf %613, %612 : vector<8x128xf32>
    %615 = arith.mulf %614, %560 : vector<8x128xf32>
    %c77 = arith.constant 77 : index
    %616 = arith.index_cast %1 : i32 to index
    %c0_176 = arith.constant 0 : index
    %617 = vector.load %arg2[%c77, %616, %c0_176] : memref<81x8x128xf32, #tpu.memory_space<vmem>>, vector<1x8x128xf32>
    %618 = vector.shape_cast %617 : vector<1x8x128xf32> to vector<8x128xf32>
    %619 = vector.shape_cast %615 : vector<8x128xf32> to vector<1x8x128xf32>
    tpu.vector_store %arg2[%c77, %616, %c0_176], %619 {strides = array<i32>} : memref<81x8x128xf32, #tpu.memory_space<vmem>>, vector<1x8x128xf32>,
    %620 = arith.mulf %614, %563 : vector<8x128xf32>
    %c67 = arith.constant 67 : index
    %621 = arith.index_cast %1 : i32 to index
    %c0_177 = arith.constant 0 : index
    %622 = vector.load %arg2[%c67, %621, %c0_177] : memref<81x8x128xf32, #tpu.memory_space<vmem>>, vector<1x8x128xf32>
    %623 = vector.shape_cast %622 : vector<1x8x128xf32> to vector<8x128xf32>
    %624 = vector.shape_cast %620 : vector<8x128xf32> to vector<1x8x128xf32>
    tpu.vector_store %arg2[%c67, %621, %c0_177], %624 {strides = array<i32>} : memref<81x8x128xf32, #tpu.memory_space<vmem>>, vector<1x8x128xf32>,
    %625 = arith.mulf %560, %17 : vector<8x128xf32>
    %626 = arith.mulf %563, %18 : vector<8x128xf32>
    %627 = arith.subf %625, %626 : vector<8x128xf32>
    %628 = arith.mulf %560, %18 : vector<8x128xf32>
    %629 = arith.mulf %563, %17 : vector<8x128xf32>
    %630 = arith.addf %628, %629 : vector<8x128xf32>
    %cst_178 = arith.constant 0.683184087 : f32
    %631 = vector.broadcast %cst_178 : f32 to vector<8x128xf32>
    %632 = arith.mulf %631, %627 : vector<8x128xf32>
    %c48 = arith.constant 48 : index
    %633 = arith.index_cast %1 : i32 to index
    %c0_179 = arith.constant 0 : index
    %634 = vector.load %arg2[%c48, %633, %c0_179] : memref<81x8x128xf32, #tpu.memory_space<vmem>>, vector<1x8x128xf32>
    %635 = vector.shape_cast %634 : vector<1x8x128xf32> to vector<8x128xf32>
    %636 = vector.shape_cast %632 : vector<8x128xf32> to vector<1x8x128xf32>
    tpu.vector_store %arg2[%c48, %633, %c0_179], %636 {strides = array<i32>} : memref<81x8x128xf32, #tpu.memory_space<vmem>>, vector<1x8x128xf32>,
    %cst_180 = arith.constant 0.683184087 : f32
    %637 = vector.broadcast %cst_180 : f32 to vector<8x128xf32>
    %638 = arith.mulf %637, %630 : vector<8x128xf32>
    %c36 = arith.constant 36 : index
    %639 = arith.index_cast %1 : i32 to index
    %c0_181 = arith.constant 0 : index
    %640 = vector.load %arg2[%c36, %639, %c0_181] : memref<81x8x128xf32, #tpu.memory_space<vmem>>, vector<1x8x128xf32>
    %641 = vector.shape_cast %640 : vector<1x8x128xf32> to vector<8x128xf32>
    %642 = vector.shape_cast %638 : vector<8x128xf32> to vector<1x8x128xf32>
    tpu.vector_store %arg2[%c36, %639, %c0_181], %642 {strides = array<i32>} : memref<81x8x128xf32, #tpu.memory_space<vmem>>, vector<1x8x128xf32>,
    %cst_182 = arith.constant 1.351350e+05 : f32
    %643 = vector.broadcast %cst_182 : f32 to vector<8x128xf32>
    %644 = arith.mulf %643, %19 : vector<8x128xf32>
    %cst_183 = arith.constant 1.95801276E-5 : f32
    %645 = vector.broadcast %cst_183 : f32 to vector<8x128xf32>
    %646 = arith.mulf %645, %644 : vector<8x128xf32>
    %647 = arith.mulf %646, %627 : vector<8x128xf32>
    %c62 = arith.constant 62 : index
    %648 = arith.index_cast %1 : i32 to index
    %c0_184 = arith.constant 0 : index
    %649 = vector.load %arg2[%c62, %648, %c0_184] : memref<81x8x128xf32, #tpu.memory_space<vmem>>, vector<1x8x128xf32>
    %650 = vector.shape_cast %649 : vector<1x8x128xf32> to vector<8x128xf32>
    %651 = vector.shape_cast %647 : vector<8x128xf32> to vector<1x8x128xf32>
    tpu.vector_store %arg2[%c62, %648, %c0_184], %651 {strides = array<i32>} : memref<81x8x128xf32, #tpu.memory_space<vmem>>, vector<1x8x128xf32>,
    %652 = arith.mulf %646, %630 : vector<8x128xf32>
    %c50 = arith.constant 50 : index
    %653 = arith.index_cast %1 : i32 to index
    %c0_185 = arith.constant 0 : index
    %654 = vector.load %arg2[%c50, %653, %c0_185] : memref<81x8x128xf32, #tpu.memory_space<vmem>>, vector<1x8x128xf32>
    %655 = vector.shape_cast %654 : vector<1x8x128xf32> to vector<8x128xf32>
    %656 = vector.shape_cast %652 : vector<8x128xf32> to vector<1x8x128xf32>
    tpu.vector_store %arg2[%c50, %653, %c0_185], %656 {strides = array<i32>} : memref<81x8x128xf32, #tpu.memory_space<vmem>>, vector<1x8x128xf32>,
    %cst_186 = arith.constant 7.500000e+00 : f32
    %657 = vector.broadcast %cst_186 : f32 to vector<8x128xf32>
    %658 = arith.mulf %657, %19 : vector<8x128xf32>
    %659 = arith.mulf %658, %644 : vector<8x128xf32>
    %cst_187 = arith.constant 6.756750e+04 : f32
    %660 = vector.broadcast %cst_187 : f32 to vector<8x128xf32>
    %661 = arith.subf %659, %660 : vector<8x128xf32>
    %cst_188 = arith.constant 7.87853241E-6 : f32
    %662 = vector.broadcast %cst_188 : f32 to vector<8x128xf32>
    %663 = arith.mulf %662, %661 : vector<8x128xf32>
    %664 = arith.mulf %663, %627 : vector<8x128xf32>
    %c78 = arith.constant 78 : index
    %665 = arith.index_cast %1 : i32 to index
    %c0_189 = arith.constant 0 : index
    %666 = vector.load %arg2[%c78, %665, %c0_189] : memref<81x8x128xf32, #tpu.memory_space<vmem>>, vector<1x8x128xf32>
    %667 = vector.shape_cast %666 : vector<1x8x128xf32> to vector<8x128xf32>
    %668 = vector.shape_cast %664 : vector<8x128xf32> to vector<1x8x128xf32>
    tpu.vector_store %arg2[%c78, %665, %c0_189], %668 {strides = array<i32>} : memref<81x8x128xf32, #tpu.memory_space<vmem>>, vector<1x8x128xf32>,
    %669 = arith.mulf %663, %630 : vector<8x128xf32>
    %c66 = arith.constant 66 : index
    %670 = arith.index_cast %1 : i32 to index
    %c0_190 = arith.constant 0 : index
    %671 = vector.load %arg2[%c66, %670, %c0_190] : memref<81x8x128xf32, #tpu.memory_space<vmem>>, vector<1x8x128xf32>
    %672 = vector.shape_cast %671 : vector<1x8x128xf32> to vector<8x128xf32>
    %673 = vector.shape_cast %669 : vector<8x128xf32> to vector<1x8x128xf32>
    tpu.vector_store %arg2[%c66, %670, %c0_190], %673 {strides = array<i32>} : memref<81x8x128xf32, #tpu.memory_space<vmem>>, vector<1x8x128xf32>,
    %674 = arith.mulf %627, %17 : vector<8x128xf32>
    %675 = arith.mulf %630, %18 : vector<8x128xf32>
    %676 = arith.subf %674, %675 : vector<8x128xf32>
    %677 = arith.mulf %627, %18 : vector<8x128xf32>
    %678 = arith.mulf %630, %17 : vector<8x128xf32>
    %679 = arith.addf %677, %678 : vector<8x128xf32>
    %cst_191 = arith.constant 0.707162738 : f32
    %680 = vector.broadcast %cst_191 : f32 to vector<8x128xf32>
    %681 = arith.mulf %680, %676 : vector<8x128xf32>
    %c63 = arith.constant 63 : index
    %682 = arith.index_cast %1 : i32 to index
    %c0_192 = arith.constant 0 : index
    %683 = vector.load %arg2[%c63, %682, %c0_192] : memref<81x8x128xf32, #tpu.memory_space<vmem>>, vector<1x8x128xf32>
    %684 = vector.shape_cast %683 : vector<1x8x128xf32> to vector<8x128xf32>
    %685 = vector.shape_cast %681 : vector<8x128xf32> to vector<1x8x128xf32>
    tpu.vector_store %arg2[%c63, %682, %c0_192], %685 {strides = array<i32>} : memref<81x8x128xf32, #tpu.memory_space<vmem>>, vector<1x8x128xf32>,
    %cst_193 = arith.constant 0.707162738 : f32
    %686 = vector.broadcast %cst_193 : f32 to vector<8x128xf32>
    %687 = arith.mulf %686, %679 : vector<8x128xf32>
    %c49 = arith.constant 49 : index
    %688 = arith.index_cast %1 : i32 to index
    %c0_194 = arith.constant 0 : index
    %689 = vector.load %arg2[%c49, %688, %c0_194] : memref<81x8x128xf32, #tpu.memory_space<vmem>>, vector<1x8x128xf32>
    %690 = vector.shape_cast %689 : vector<1x8x128xf32> to vector<8x128xf32>
    %691 = vector.shape_cast %687 : vector<8x128xf32> to vector<1x8x128xf32>
    tpu.vector_store %arg2[%c49, %688, %c0_194], %691 {strides = array<i32>} : memref<81x8x128xf32, #tpu.memory_space<vmem>>, vector<1x8x128xf32>,
    %cst_195 = arith.constant 0x49F77088 : f32
    %692 = vector.broadcast %cst_195 : f32 to vector<8x128xf32>
    %693 = arith.mulf %692, %19 : vector<8x128xf32>
    %cst_196 = arith.constant 1.43841669E-6 : f32
    %694 = vector.broadcast %cst_196 : f32 to vector<8x128xf32>
    %695 = arith.mulf %694, %693 : vector<8x128xf32>
    %696 = arith.mulf %695, %676 : vector<8x128xf32>
    %c79 = arith.constant 79 : index
    %697 = arith.index_cast %1 : i32 to index
    %c0_197 = arith.constant 0 : index
    %698 = vector.load %arg2[%c79, %697, %c0_197] : memref<81x8x128xf32, #tpu.memory_space<vmem>>, vector<1x8x128xf32>
    %699 = vector.shape_cast %698 : vector<1x8x128xf32> to vector<8x128xf32>
    %700 = vector.shape_cast %696 : vector<8x128xf32> to vector<1x8x128xf32>
    tpu.vector_store %arg2[%c79, %697, %c0_197], %700 {strides = array<i32>} : memref<81x8x128xf32, #tpu.memory_space<vmem>>, vector<1x8x128xf32>,
    %701 = arith.mulf %695, %679 : vector<8x128xf32>
    %c65 = arith.constant 65 : index
    %702 = arith.index_cast %1 : i32 to index
    %c0_198 = arith.constant 0 : index
    %703 = vector.load %arg2[%c65, %702, %c0_198] : memref<81x8x128xf32, #tpu.memory_space<vmem>>, vector<1x8x128xf32>
    %704 = vector.shape_cast %703 : vector<1x8x128xf32> to vector<8x128xf32>
    %705 = vector.shape_cast %701 : vector<8x128xf32> to vector<1x8x128xf32>
    tpu.vector_store %arg2[%c65, %702, %c0_198], %705 {strides = array<i32>} : memref<81x8x128xf32, #tpu.memory_space<vmem>>, vector<1x8x128xf32>,
    %706 = arith.mulf %676, %17 : vector<8x128xf32>
    %707 = arith.mulf %679, %18 : vector<8x128xf32>
    %708 = arith.subf %706, %707 : vector<8x128xf32>
    %709 = arith.mulf %676, %18 : vector<8x128xf32>
    %710 = arith.mulf %679, %17 : vector<8x128xf32>
    %711 = arith.addf %709, %710 : vector<8x128xf32>
    %cst_199 = arith.constant 0.728926659 : f32
    %712 = vector.broadcast %cst_199 : f32 to vector<8x128xf32>
    %713 = arith.mulf %712, %708 : vector<8x128xf32>
    %c80 = arith.constant 80 : index
    %714 = arith.index_cast %1 : i32 to index
    %c0_200 = arith.constant 0 : index
    %715 = vector.load %arg2[%c80, %714, %c0_200] : memref<81x8x128xf32, #tpu.memory_space<vmem>>, vector<1x8x128xf32>
    %716 = vector.shape_cast %715 : vector<1x8x128xf32> to vector<8x128xf32>
    %717 = vector.shape_cast %713 : vector<8x128xf32> to vector<1x8x128xf32>
    tpu.vector_store %arg2[%c80, %714, %c0_200], %717 {strides = array<i32>} : memref<81x8x128xf32, #tpu.memory_space<vmem>>, vector<1x8x128xf32>,
    %cst_201 = arith.constant 0.728926659 : f32
    %718 = vector.broadcast %cst_201 : f32 to vector<8x128xf32>
    %719 = arith.mulf %718, %711 : vector<8x128xf32>
    %c64 = arith.constant 64 : index
    %720 = arith.index_cast %1 : i32 to index
    %c0_202 = arith.constant 0 : index
    %721 = vector.load %arg2[%c64, %720, %c0_202] : memref<81x8x128xf32, #tpu.memory_space<vmem>>, vector<1x8x128xf32>
    %722 = vector.shape_cast %721 : vector<1x8x128xf32> to vector<8x128xf32>
    %723 = vector.shape_cast %719 : vector<8x128xf32> to vector<1x8x128xf32>
    tpu.vector_store %arg2[%c64, %720, %c0_202], %723 {strides = array<i32>} : memref<81x8x128xf32, #tpu.memory_space<vmem>>, vector<1x8x128xf32>,
    %c1_i32 = arith.constant 1 : i32
    return
  }
  func.func @transform_0(%arg0: i32) -> (i32, i32, i32) {
    %c0_i32 = arith.constant 0 : i32
    %c0_i32_0 = arith.constant 0 : i32
    %c0_i32_1 = arith.constant 0 : i32
    return %c0_i32, %arg0, %c0_i32_0 : i32, i32, i32
  }
  func.func @transform_1(%arg0: i32) -> (i32, i32, i32) {
    %c0_i32 = arith.constant 0 : i32
    %c0_i32_0 = arith.constant 0 : i32
    %c0_i32_1 = arith.constant 0 : i32
    return %c0_i32, %arg0, %c0_i32_0 : i32, i32, i32
  }
}

</mosaic_0001>

<bundles_post_ra>
// kernel: tpu_custom_call.1
= control target key start
LH: loop header
LB: loop body
LE: loop exit
PB: predicated region body
PF: predicated region fallthrough
CT: control target
= control target key end

     0   :  { %6 = vsyncpa [#allocation4], 0  ;;  %s1436_s6 = smov [#allocation3]   ;;  %s2289_s0 = inlined_call_operand.hbm [shape: f32[3,8,128], index: 0, kind: input, shape index: {}]   ;;  %s2290_s1 = inlined_call_operand.vmem [shape: f32[1024,81], index: 1, kind: output, shape index: {}]  }
   0x1   :  { %s12_s7 = sshll.u32 %s1436_s6, 4  ;;  %s1412_s10 = scalar_lea.hbm %s2289_s0, 384  ;;  %s13_s7 = int_to_ptr.vmem [resolvable:$true] %s12_s7 }
   0x2   :  { %p1413_p0 = scmp.ne.s32.totalorder %s2289_s0, %s1412_s10  ;;  %p1416_p1 = scmp.lt.u32.totalorder %s1412_s10, %s2289_s0 }
   0x4   :  { %p1418_p2 = pnand %p1416_p1, %p1413_p0 }
   0x6   :  { %1421 = shalt.err (!%p1418_p2)
}
   0x7   :  { %s1422_s15 = scalar_lea.vmem %s13_s7, 384  ;;  %p1427_p4 = scmp.lt.s32.totalorder %s13_s7, %s13_s7 }
   0x8   :  { %p1423_p3 = scmp.ne.s32.totalorder %s13_s7, %s1422_s15  ;;  %p1428_p5 = scmp.lt.s32.totalorder %s1422_s15, %s1422_s15 }
   0xa   :  { %p1429_p6 = por %p1428_p5, %p1427_p4 }
   0xc   :  { %p1430_p7 = pnand %p1429_p6, %p1423_p3 }
   0xe   :  { %1433 = shalt.err (!%p1430_p7)
}
   0xf   :  { %s1437_s16 = smov 128   ;;  %s1438_s17 = smov 8  }
  0x10   :  { %18 = dma.hbm_to_vmem [thread:$0]  %s2289_s0, 384, %s13_s7, [#allocation4], %s1437_s16, %s1437_s16, %s1438_s17  }
  0x11   :  { %1434 = dma.done.wait [#allocation4], 384  }
  0x12   :  { %1435 = vsyncadd [#allocation4], 4294966912  ;;  %v1439_v0 = vmov 0.2820948   ;;  %v22_v1 = vld [vmem:[#allocation3] sm:$0xff]  ;;  %v25_v2 = vld [vmem:[#allocation3 + $0x8] sm:$0xff] }
  0x13   :  { %38 = vst [vmem:[#allocation2] sm:$0xff] %v1439_v0  ;;  %v28_v3 = vld [vmem:[#allocation3 + $0x10] sm:$0xff]  ;;  %v29_v4 = vmul.f32 %v22_v1, %v22_v1  ;;  %v30_v5 = vmul.f32 %v25_v2, %v25_v2  ;;  %vm472_vm0 = vcmask 662528  }
  0x14   :  { %v32_v6 = vmul.f32 %v28_v3, %v28_v3 }
  0x15   :  { %v31_v7 = vadd.f32 %v30_v5, %v29_v4 }
  0x17   :  { %v33_v8 = vadd.f32 %v32_v6, %v31_v7 }
  0x19   :  { %1410 = vrsqrt.f32 %v33_v8 }
  0x23   :  { %v1411_v9 = vpop.eup %1410 }
  0x24   :  { %v1462_v10 = vmul.f32 %v1411_v9, %v22_v1  ;;  %v1464_v11 = vmul.f32 %v1411_v9, %v25_v2  ;;  %v1466_v12 = vmul.f32 %v1411_v9, %v28_v3 }
  0x26   :  { %v39_v13 = vmul.f32 0.48860252, %v1466_v12  ;;  %v41_v14 = vmul.f32 1.5, %v1466_v12  ;;  %v82_v15 = vmul.f32 0.48860252, %v1462_v10  ;;  %v1472_v16 = vmul.f32 3.0, %v1466_v12 }
  0x27   :  { %v84_v17 = vmul.f32 0.48860252, %v1464_v11  ;;  %v148_v18 = vmul.f32 %v1464_v11, %v1462_v10  ;;  %v46_v19 = vmul.f32 1.6666666, %v1466_v12  ;;  %v48_v20 = vmul.f32 0.6666667, %v1466_v12 }
  0x28   :  { %40 = vst [vmem:[#allocation2 + $0x10] sm:$0xff] %v39_v13  ;;  %v42_v21 = vmul.f32 %v41_v14, %v1466_v12  ;;  %83 = vst [vmem:[#allocation2 + $0x18] sm:$0xff] %v82_v15  ;;  %v87_v22 = vmul.f32 0.3641828, %v1472_v16  ;;  %v1482_v23 = vmul.f32 2.5, %v1466_v12  ;;  %v145_v24 = vmul.f32 %v1462_v10, %v1462_v10 }
  0x29   :  { %85 = vst [vmem:[#allocation2 + $0x8] sm:$0xff] %v84_v17  ;;  %v1486_v25 = vadd.f32 %v148_v18, %v148_v18  ;;  %v146_v26 = vmul.f32 %v1464_v11, %v1464_v11  ;;  %v1491_v27 = vmul.f32 15.0, %v1466_v12  ;;  %v52_v28 = vmul.f32 1.75, %v1466_v12 }
  0x2a   :  { %v1287_v29 = vadd.f32 -0.5, %v42_v21  ;;  %v88_v30 = vmul.f32 %v87_v22, %v1462_v10  ;;  %v90_v31 = vmul.f32 %v87_v22, %v1464_v11  ;;  %v93_v32 = vmul.f32 %v1482_v23, %v1472_v16 }
  0x2b   :  { %v152_v33 = vmul.f32 0.54627424, %v1486_v25  ;;  %v1499_v34 = vsub.f32 %v145_v24, %v146_v26  ;;  %v155_v35 = vmul.f32 0.09635372, %v1491_v27  ;;  %v203_v36 = vmul.f32 %v1486_v25, %v1464_v11 }
  0x2c   :  { %v44_v37 = vmul.f32 0.63078314, %v1287_v29  ;;  %89 = vst [vmem:[#allocation2 + $0x38] sm:$0xff] %v88_v30  ;;  %91 = vst [vmem:[#allocation2 + $0x28] sm:$0xff] %v90_v31  ;;  %v47_v38 = vmul.f32 %v1287_v29, %v46_v19  ;;  %v1504_v39 = vadd.f32 -1.5, %v93_v32  ;;  %v206_v40 = vmul.f32 %v1486_v25, %v1462_v10 }
  0x2d   :  { %153 = vst [vmem:[#allocation2 + $0x20] sm:$0xff] %v152_v33  ;;  %v150_v41 = vmul.f32 0.54627424, %v1499_v34  ;;  %v156_v42 = vmul.f32 %v155_v35, %v1499_v34  ;;  %v158_v43 = vmul.f32 %v155_v35, %v1486_v25  ;;  %v202_v44 = vmul.f32 %v1499_v34, %v1462_v10 }
  0x2e   :  { %45 = vst [vmem:[#allocation2 + $0x30] sm:$0xff] %v44_v37  ;;  %v49_v45 = vsub.f32 %v47_v38, %v48_v20  ;;  %v95_v46 = vmul.f32 0.3046972, %v1504_v39  ;;  %v205_v47 = vmul.f32 %v1499_v34, %v1464_v11  ;;  %v54_v48 = vmul.f32 0.75, %v1287_v29 }
  0x2f   :  { %151 = vst [vmem:[#allocation2 + $0x40] sm:$0xff] %v150_v41  ;;  %157 = vst [vmem:[#allocation2 + $0x70] sm:$0xff] %v156_v42  ;;  %v1516_v49 = vsub.f32 %v202_v44, %v203_v36  ;;  %v100_v50 = vmul.f32 2.3333333, %v1466_v12  ;;  %v102_v51 = vmul.f32 1.3333334, %v1472_v16 }
  0x30   :  { %159 = vst [vmem:[#allocation2 + $0x50] sm:$0xff] %v158_v43  ;;  %v160_v52 = vmul.f32 3.5, %v1466_v12  ;;  %v96_v53 = vmul.f32 %v95_v46, %v1462_v10  ;;  %v98_v54 = vmul.f32 %v95_v46, %v1464_v11  ;;  %v1523_v55 = vadd.f32 %v206_v40, %v205_v47  ;;  %v490_v61 = vld [vmem:[#allocation2 + $0x1] ss:$8 sm:$0xf] }
  0x31   :  { %v53_v56 = vmul.f32 %v52_v28, %v49_v45  ;;  %v50_v57 = vmul.f32 0.7463527, %v49_v45  ;;  %v208_v58 = vmul.f32 0.5900436, %v1516_v49  ;;  %v101_v59 = vmul.f32 %v1504_v39, %v100_v50 }
  0x32   :  { %v161_v60 = vmul.f32 %v160_v52, %v1491_v27  ;;  %97 = vst [vmem:[#allocation2 + $0x68] sm:$0xff] %v96_v53  ;;  %99 = vst [vmem:[#allocation2 + $0x58] sm:$0xff] %v98_v54  ;;  %v210_v62 = vmul.f32 0.5900436, %v1523_v55  ;;  %v1532_v0 = vmul.f32 105.0, %v1466_v12  ;;  %v255_v1 = vmul.f32 %v1516_v49, %v1464_v11 }
  0x33   :  { %v1529_v63 = vsub.f32 %v53_v56, %v54_v48  ;;  %v377_v2 = vld [vmem:[#allocation2] ss:$8 sm:$0xf]  ;;  %51 = vst [vmem:[#allocation2 + $0x60] sm:$0xff] %v50_v57  ;;  %209 = vst [vmem:[#allocation2 + $0x78] sm:$0xff] %v208_v58  ;;  %v1536_v3 = vsub.f32 %v101_v59, %v102_v51  ;;  %v256_v5 = vmul.f32 %v1523_v55, %v1462_v10  ;;  %v109_v36 = vmul.f32 2.25, %v1466_v12 }
  0x34   :  { %v1538_v4 = vadd.f32 -7.5, %v161_v60  ;;  %v58_v6 = vmul.f32 1.8, %v1466_v12  ;;  %211 = vst [vmem:[#allocation2 + $0x48] sm:$0xff] %v210_v62  ;;  %v213_v8 = vmul.f32 0.016858388, %v1532_v0  ;;  %v252_v13 = vmul.f32 %v1516_v49, %v1462_v10 }
  0x35   :  { %v56_v7 = vmul.f32 0.8462844, %v1529_v63  ;;  %v60_v9 = vmul.f32 0.8, %v49_v45  ;;  %v1547_v17 = vadd.f32 %v256_v5, %v255_v1  ;;  %v253_v20 = vmul.f32 %v1523_v55, %v1464_v11 }
  0x36   :  { %v491_v14 = vld [vmem:[#allocation2 + $0x1] ss:$8 sm:$0xf0]  ;;  %v378_v15 = vld [vmem:[#allocation2] ss:$8 sm:$0xf0]  ;;  %v59_v18 = vmul.f32 %v58_v6, %v1529_v63  ;;  %v168_v19 = vmul.f32 %v1538_v4, %v1472_v16  ;;  %v214_v28 = vmul.f32 %v213_v8, %v1516_v49  ;;  %v216_v29 = vmul.f32 %v213_v8, %v1523_v55 }
  0x37   :  { %v492_v21 = vor.u32 %v491_v14, %v490_v61  ;;  %v379_v22 = vor.u32 %v378_v15, %v377_v2  ;;  %57 = vst [vmem:[#allocation2 + $0xa0] sm:$0xff] %v56_v7  ;;  %v104_v24 = vmul.f32 0.26761863, %v1536_v3  ;;  %v163_v26 = vmul.f32 0.063078314, %v1538_v4 }
  0x38   :  { %v260_v30 = vmul.f32 0.6258357, %v1547_v17  ;;  %v1559_v31 = vsub.f32 %v59_v18, %v60_v9  ;;  %215 = vst [vmem:[#allocation2 + $0xb8] sm:$0xff] %v214_v28  ;;  %217 = vst [vmem:[#allocation2 + $0x88] sm:$0xff] %v216_v29  ;;  %v111_v40 = vmul.f32 1.25, %v1504_v39  ;;  %v169_v41 = vmul.f32 2.0, %v1491_v27 }
  0x39   :  { %553 = vxpose.xlu1.b32.start [1/16] %v492_v21, 128  ;;  %440 = vxpose.xlu0.b32.start [1/16] %v379_v22, 128  ;;  %v105_v32 = vmul.f32 %v104_v24, %v1462_v10  ;;  %v107_v33 = vmul.f32 %v104_v24, %v1464_v11  ;;  %v164_v35 = vmul.f32 %v163_v26, %v1499_v34  ;;  %v218_v53 = vmul.f32 4.5, %v1466_v12 }
  0x3a   :  { %v166_v37 = vmul.f32 %v163_v26, %v1486_v25  ;;  %261 = vst [vmem:[#allocation2 + $0x80] sm:$0xff] %v260_v30  ;;  %v62_v38 = vmul.f32 0.9356026, %v1559_v31  ;;  %v495_v42 = vld [vmem:[#allocation2 + $0x41] ss:$8 sm:$0xf0]  ;;  %v110_v44 = vmul.f32 %v109_v36, %v1536_v3  ;;  %v1570_v45 = vsub.f32 %v252_v13, %v253_v20 }
  0x3b   :  { %v382_v43 = vld [vmem:[#allocation2 + $0x40] ss:$8 sm:$0xf0]  ;;  %106 = vst [vmem:[#allocation2 + $0xa8] sm:$0xff] %v105_v32  ;;  %108 = vst [vmem:[#allocation2 + $0x98] sm:$0xff] %v107_v33  ;;  %v1572_v48 = vsub.f32 %v168_v19, %v169_v41  ;;  %v298_v39 = vmul.f32 %v1547_v17, %v1462_v10  ;;  %v295_v27 = vmul.f32 %v1547_v17, %v1464_v11  ;;  %v1584_v57 = vmul.f32 945.0, %v1466_v12 }
  0x3c   :  { %165 = vst [vmem:[#allocation2 + $0xb0] sm:$0xff] %v164_v35  ;;  %v494_v46 = vld [vmem:[#allocation2 + $0x41] ss:$8 sm:$0xf]  ;;  %167 = vst [vmem:[#allocation2 + $0x90] sm:$0xff] %v166_v37  ;;  %v1578_v52 = vsub.f32 %v110_v44, %v111_v40  ;;  %v297_v58 = vmul.f32 %v1570_v45, %v1464_v11  ;;  %v219_v60 = vmul.f32 %v218_v53, %v1532_v0  ;;  %v268_v13 = vmul.f32 5.5, %v1466_v12 }
  0x3d   :  { %v381_v47 = vld [vmem:[#allocation2 + $0x40] ss:$8 sm:$0xf]  ;;  %63 = vst [vmem:[#allocation2 + $0xf0] sm:$0xff] %v62_v38  ;;  %v496_v50 = vor.u32 %v495_v42, %v494_v46  ;;  %v171_v54 = vmul.f32 0.045652732, %v1572_v48  ;;  %v294_v19 = vmul.f32 %v1570_v45, %v1462_v10 }
  0x3e   :  { %v383_v51 = vor.u32 %v382_v43, %v381_v47  ;;  %v258_v56 = vmul.f32 0.6258357, %v1570_v45  ;;  %v113_v59 = vmul.f32 0.24157155, %v1578_v52  ;;  %v226_v61 = vmul.f32 3.6666667, %v1466_v12 }
  0x3f   :  { %554 = vxpose.xlu1.b32.cont [2/16] %v496_v50, 128  ;;  %v228_v62 = vmul.f32 2.6666667, %v1532_v0  ;;  %v174_v1 = vmul.f32 %v171_v54, %v1486_v25  ;;  %v263_v2 = vmul.f32 0.002196468, %v1584_v57  ;;  %v1594_v5 = vadd.f32 %v298_v39, %v297_v58 }
  0x40   :  { %441 = vxpose.xlu0.b32.cont [2/16] %v383_v51, 128  ;;  %259 = vst [vmem:[#allocation2 + $0xc0] sm:$0xff] %v258_v56  ;;  %v172_v6 = vmul.f32 %v171_v54, %v1499_v34  ;;  %v114_v7 = vmul.f32 %v113_v59, %v1462_v10  ;;  %v116_v8 = vmul.f32 %v113_v59, %v1464_v11  ;;  %v1599_v9 = vadd.f32 -52.5, %v219_v60 }
  0x41   :  { %175 = vst [vmem:[#allocation2 + $0xe0] sm:$0xff] %v174_v1  ;;  %v266_v0 = vmul.f32 %v263_v2, %v1547_v17  ;;  %v264_v18 = vmul.f32 %v263_v2, %v1570_v45  ;;  %v269_v24 = vmul.f32 %v268_v13, %v1584_v57  ;;  %v331_v26 = vmul.f32 %v1594_v5, %v1462_v10 }
  0x42   :  { %173 = vst [vmem:[#allocation2 + $0x100] sm:$0xff] %v172_v6  ;;  %115 = vst [vmem:[#allocation2 + $0xf8] sm:$0xff] %v114_v7  ;;  %v227_v22 = vmul.f32 %v1599_v9, %v226_v61  ;;  %v1612_v28 = vmul.f32 %v1594_v5, %v1464_v11  ;;  %v221_v32 = vmul.f32 0.009318825, %v1599_v9  ;;  %v302_v33 = vmul.f32 0.6563821, %v1594_v5 }
  0x43   :  { %v499_v14 = vld [vmem:[#allocation2 + $0x81] ss:$8 sm:$0xf0]  ;;  %v386_v15 = vld [vmem:[#allocation2 + $0x80] ss:$8 sm:$0xf0]  ;;  %v1620_v37 = vsub.f32 %v294_v19, %v295_v27 }
  0x44   :  { %v498_v20 = vld [vmem:[#allocation2 + $0x81] ss:$8 sm:$0xf]  ;;  %v385_v21 = vld [vmem:[#allocation2 + $0x80] ss:$8 sm:$0xf]  ;;  %v1616_v35 = vsub.f32 %v227_v22, %v228_v62  ;;  %v224_v40 = vmul.f32 %v221_v32, %v1523_v55  ;;  %v222_v41 = vmul.f32 %v221_v32, %v1516_v49 }
  0x45   :  { %117 = vst [vmem:[#allocation2 + $0xe8] sm:$0xff] %v116_v8  ;;  %v500_v29 = vor.u32 %v499_v14, %v498_v20  ;;  %v387_v30 = vor.u32 %v386_v15, %v385_v21  ;;  %267 = vst [vmem:[#allocation2 + $0xd0] sm:$0xff] %v266_v0  ;;  %v1618_v36 = vadd.f32 -472.5, %v269_v24  ;;  %v1623_v38 = vmul.f32 10395.0, %v1466_v12 }
  0x46   :  { %265 = vst [vmem:[#allocation2 + $0x110] sm:$0xff] %v264_v18  ;;  %303 = vst [vmem:[#allocation2 + $0xc8] sm:$0xff] %v302_v33  ;;  %v64_v42 = vmul.f32 1.8333334, %v1466_v12  ;;  %v66_v43 = vmul.f32 0.8333333, %v1529_v63  ;;  %v330_v39 = vmul.f32 %v1620_v37, %v1464_v11 }
  0x47   :  { %555 = vxpose.xlu1.b32.cont [3/16] %v500_v29, 128  ;;  %442 = vxpose.xlu0.b32.cont [3/16] %v387_v30, 128  ;;  %v230_v44 = vmul.f32 0.0058489223, %v1616_v35  ;;  %v271_v46 = vmul.f32 0.0010678623, %v1618_v36  ;;  %v300_v47 = vmul.f32 0.6563821, %v1620_v37 }
  0x48   :  { %225 = vst [vmem:[#allocation2 + $0xd8] sm:$0xff] %v224_v40  ;;  %223 = vst [vmem:[#allocation2 + $0x108] sm:$0xff] %v222_v41  ;;  %v305_v27 = vmul.f32 0.00022766899, %v1623_v38  ;;  %v65_v50 = vmul.f32 %v64_v42, %v1559_v31  ;;  %v118_v51 = vmul.f32 2.2, %v1466_v12  ;;  %v1640_v56 = vadd.f32 %v331_v26, %v330_v39 }
  0x49   :  { %v120_v53 = vmul.f32 1.2, %v1536_v3  ;;  %v233_v63 = vmul.f32 %v230_v44, %v1523_v55  ;;  %v274_v54 = vmul.f32 %v271_v46, %v1547_v17  ;;  %301 = vst [vmem:[#allocation2 + $0x118] sm:$0xff] %v300_v47  ;;  %v176_v58 = vmul.f32 2.75, %v1466_v12 }
  0x4a   :  { %v308_v59 = vmul.f32 %v305_v27, %v1594_v5  ;;  %v1644_v60 = vsub.f32 %v65_v50, %v66_v43  ;;  %v119_v61 = vmul.f32 %v118_v51, %v1578_v52  ;;  %v231_v62 = vmul.f32 %v230_v44, %v1516_v49 }
  0x4b   :  { %234 = vst [vmem:[#allocation2 + $0x138] sm:$0xff] %v233_v63  ;;  %275 = vst [vmem:[#allocation2 + $0x130] sm:$0xff] %v274_v54  ;;  %v335_v3 = vmul.f32 0.6831841, %v1640_v56  ;;  %v177_v6 = vmul.f32 %v176_v58, %v1572_v48  ;;  %v178_v7 = vmul.f32 1.75, %v1538_v4  ;;  %v272_v8 = vmul.f32 %v271_v46, %v1570_v45 }
  0x4c   :  { %v503_v1 = vld [vmem:[#allocation2 + $0xc1] ss:$8 sm:$0xf0]  ;;  %v390_v2 = vld [vmem:[#allocation2 + $0xc0] ss:$8 sm:$0xf0]  ;;  %v1653_v14 = vsub.f32 %v119_v61, %v120_v53  ;;  %v306_v15 = vmul.f32 %v305_v27, %v1620_v37  ;;  %v1673_v33 = vmul.f32 %v1640_v56, %v1464_v11 }
  0x4d   :  { %309 = vst [vmem:[#allocation2 + $0x128] sm:$0xff] %v308_v59  ;;  %v68_v13 = vmul.f32 1.0171072, %v1644_v60  ;;  %232 = vst [vmem:[#allocation2 + $0x168] sm:$0xff] %v231_v62  ;;  %v127_v0 = vmul.f32 2.1666667, %v1466_v12  ;;  %v1657_v18 = vsub.f32 %v177_v6, %v178_v7 }
  0x4e   :  { %336 = vst [vmem:[#allocation2 + $0x120] sm:$0xff] %v335_v3  ;;  %273 = vst [vmem:[#allocation2 + $0x170] sm:$0xff] %v272_v8  ;;  %v129_v19 = vmul.f32 1.1666666, %v1578_v52  ;;  %v185_v4 = vmul.f32 2.6, %v1466_v12  ;;  %v327_v52 = vmul.f32 %v1620_v37, %v1462_v10 }
  0x4f   :  { %v187_v20 = vmul.f32 1.6, %v1572_v48  ;;  %69 = vst [vmem:[#allocation2 + $0x150] sm:$0xff] %v68_v13  ;;  %v122_v21 = vmul.f32 0.221951, %v1653_v14  ;;  %307 = vst [vmem:[#allocation2 + $0x178] sm:$0xff] %v306_v15  ;;  %v128_v22 = vmul.f32 %v127_v0, %v1653_v14  ;;  %v355_v48 = vmul.f32 %v1640_v56, %v1462_v10 }
  0x50   :  { %v235_v24 = vmul.f32 3.25, %v1466_v12  ;;  %v237_v26 = vmul.f32 2.25, %v1599_v9  ;;  %v502_v29 = vld [vmem:[#allocation2 + $0xc1] ss:$8 sm:$0xf]  ;;  %v186_v32 = vmul.f32 %v185_v4, %v1657_v18  ;;  %v310_v53 = vmul.f32 6.5, %v1466_v12 }
  0x51   :  { %v389_v30 = vld [vmem:[#allocation2 + $0xc0] ss:$8 sm:$0xf]  ;;  %v504_v40 = vor.u32 %v503_v1, %v502_v29  ;;  %v506_v42 = vld [vmem:[#allocation2 + $0x101] ss:$8 sm:$0xf]  ;;  %v123_v43 = vmul.f32 %v122_v21, %v1462_v10  ;;  %v125_v9 = vmul.f32 %v122_v21, %v1464_v11  ;;  %v1678_v47 = vsub.f32 %v128_v22, %v129_v19 }
  0x52   :  { %v391_v41 = vor.u32 %v390_v2, %v389_v30  ;;  %v393_v44 = vld [vmem:[#allocation2 + $0x100] ss:$8 sm:$0xf]  ;;  %v180_v46 = vmul.f32 0.035093535, %v1657_v18  ;;  %v1680_v39 = vsub.f32 %v186_v32, %v187_v20  ;;  %v236_v27 = vmul.f32 %v235_v24, %v1616_v35 }
  0x53   :  { %556 = vxpose.xlu1.b32.cont [4/16] %v504_v40, 128  ;;  %124 = vst [vmem:[#allocation2 + $0x158] sm:$0xff] %v123_v43  ;;  %126 = vst [vmem:[#allocation2 + $0x148] sm:$0xff] %v125_v9  ;;  %v276_v50 = vmul.f32 4.3333335, %v1466_v12  ;;  %v278_v51 = vmul.f32 3.3333333, %v1584_v57  ;;  %v1687_v63 = vsub.f32 %v327_v52, %v1612_v28  ;;  %v311_v57 = vmul.f32 %v310_v53, %v1623_v38 }
  0x54   :  { %443 = vxpose.xlu0.b32.cont [4/16] %v391_v41, 128  ;;  %v181_v54 = vmul.f32 %v180_v46, %v1499_v34  ;;  %v183_v58 = vmul.f32 %v180_v46, %v1486_v25  ;;  %v131_v59 = vmul.f32 0.20647225, %v1678_v47  ;;  %v189_v61 = vmul.f32 0.028097313, %v1680_v39 }
  0x55   :  { %v507_v62 = vld [vmem:[#allocation2 + $0x101] ss:$8 sm:$0xf0]  ;;  %v394_v1 = vld [vmem:[#allocation2 + $0x100] ss:$8 sm:$0xf0]  ;;  %v238_v2 = vsub.f32 %v236_v27, %v237_v26  ;;  %v277_v3 = vmul.f32 %v1618_v36, %v276_v50  ;;  %v354_v6 = vmul.f32 %v1687_v63, %v1464_v11 }
  0x56   :  { %v508_v28 = vor.u32 %v507_v62, %v506_v42  ;;  %v395_v7 = vor.u32 %v394_v1, %v393_v44  ;;  %182 = vst [vmem:[#allocation2 + $0x160] sm:$0xff] %v181_v54  ;;  %184 = vst [vmem:[#allocation2 + $0x140] sm:$0xff] %v183_v58  ;;  %v134_v8 = vmul.f32 %v131_v59, %v1464_v11  ;;  %v1701_v19 = vadd.f32 -5197.5, %v311_v57 }
  0x57   :  { %v192_v13 = vmul.f32 %v189_v61, %v1486_v25  ;;  %v239_v15 = vmul.f32 0.0039735604, %v238_v2  ;;  %v1699_v0 = vsub.f32 %v277_v3, %v278_v51  ;;  %v333_v4 = vmul.f32 0.6831841, %v1687_v63 }
  0x58   :  { %557 = vxpose.xlu1.b32.cont [5/16] %v508_v28, 128  ;;  %444 = vxpose.xlu0.b32.cont [5/16] %v395_v7, 128  ;;  %135 = vst [vmem:[#allocation2 + $0x1b8] sm:$0xff] %v134_v8  ;;  %v1705_v20 = vmul.f32 135135.0, %v1466_v12  ;;  %v1707_v21 = vadd.f32 %v355_v48, %v354_v6  ;;  %v70_v22 = vmul.f32 1.8571428, %v1466_v12  ;;  %v132_v32 = vmul.f32 %v131_v59, %v1462_v10 }
  0x59   :  { %193 = vst [vmem:[#allocation2 + $0x1b0] sm:$0xff] %v192_v13  ;;  %v72_v24 = vmul.f32 0.85714287, %v1559_v31  ;;  %v242_v26 = vmul.f32 %v239_v15, %v1523_v55  ;;  %v280_v29 = vmul.f32 0.00059903675, %v1699_v0  ;;  %334 = vst [vmem:[#allocation2 + $0x180] sm:$0xff] %v333_v4  ;;  %v190_v41 = vmul.f32 %v189_v61, %v1499_v34 }
  0x5a   :  { %v313_v30 = vmul.f32 9.983946e-05, %v1701_v19  ;;  %v338_v52 = vmul.f32 1.9580128e-05, %v1705_v20  ;;  %v359_v40 = vmul.f32 0.70716274, %v1707_v21  ;;  %v71_v48 = vmul.f32 %v70_v22, %v1644_v60 }
  0x5b   :  { %243 = vst [vmem:[#allocation2 + $0x1a8] sm:$0xff] %v242_v26  ;;  %v283_v31 = vmul.f32 %v280_v29, %v1547_v17  ;;  %133 = vst [vmem:[#allocation2 + $0x1c8] sm:$0xff] %v132_v32  ;;  %v240_v43 = vmul.f32 %v239_v15, %v1516_v49  ;;  %v281_v9 = vmul.f32 %v280_v29, %v1570_v45  ;;  %v136_v7 = vmul.f32 2.142857, %v1466_v12 }
  0x5c   :  { %v316_v42 = vmul.f32 %v313_v30, %v1594_v5  ;;  %v341_v44 = vmul.f32 %v338_v52, %v1640_v56  ;;  %360 = vst [vmem:[#allocation2 + $0x188] sm:$0xff] %v359_v40  ;;  %v1724_v46 = vsub.f32 %v71_v48, %v72_v24  ;;  %191 = vst [vmem:[#allocation2 + $0x1d0] sm:$0xff] %v190_v41  ;;  %v138_v8 = vmul.f32 1.1428572, %v1653_v14 }
  0x5d   :  { %v314_v27 = vmul.f32 %v313_v30, %v1620_v37  ;;  %v339_v50 = vmul.f32 %v338_v52, %v1687_v63  ;;  %v510_v51 = vld [vmem:[#allocation2 + $0x141] ss:$8 sm:$0xf]  ;;  %284 = vst [vmem:[#allocation2 + $0x1a0] sm:$0xff] %v283_v31  ;;  %241 = vst [vmem:[#allocation2 + $0x1d8] sm:$0xff] %v240_v43  ;;  %v351_v54 = vmul.f32 %v1687_v63, %v1462_v10  ;;  %v195_v13 = vmul.f32 1.5, %v1657_v18 }
  0x5e   :  { %v511_v53 = vld [vmem:[#allocation2 + $0x141] ss:$8 sm:$0xf0]  ;;  %317 = vst [vmem:[#allocation2 + $0x198] sm:$0xff] %v316_v42  ;;  %282 = vst [vmem:[#allocation2 + $0x1e0] sm:$0xff] %v281_v9  ;;  %v194_v62 = vmul.f32 %v1680_v39, %v1482_v23  ;;  %v244_v1 = vmul.f32 %v238_v2, %v1472_v16  ;;  %v371_v3 = vmul.f32 %v1707_v21, %v1462_v10  ;;  %v245_v23 = vmul.f32 2.0, %v1616_v35 }
  0x5f   :  { %v512_v58 = vor.u32 %v511_v53, %v510_v51  ;;  %v397_v59 = vld [vmem:[#allocation2 + $0x140] ss:$8 sm:$0xf]  ;;  %342 = vst [vmem:[#allocation2 + $0x190] sm:$0xff] %v341_v44  ;;  %315 = vst [vmem:[#allocation2 + $0x1e8] sm:$0xff] %v314_v27  ;;  %v1737_v28 = vsub.f32 %v351_v54, %v1673_v33  ;;  %v285_v16 = vmul.f32 3.75, %v1466_v12  ;;  %v137_v2 = vmul.f32 %v136_v7, %v1678_v47 }
  0x60   :  { %v398_v61 = vld [vmem:[#allocation2 + $0x140] ss:$8 sm:$0xf0]  ;;  %340 = vst [vmem:[#allocation2 + $0x1f0] sm:$0xff] %v339_v50  ;;  %v74_v6 = vmul.f32 1.0925485, %v1724_v46  ;;  %v196_v4 = vsub.f32 %v194_v62, %v195_v13  ;;  %v246_v22 = vsub.f32 %v244_v1, %v245_v23 }
  0x61   :  { %v399_v57 = vor.u32 %v398_v61, %v397_v59  ;;  %558 = vxpose.xlu1.b32.cont [6/16] %v512_v58, 128  ;;  %v357_v39 = vmul.f32 0.70716274, %v1737_v28  ;;  %v287_v33 = vmul.f32 2.75, %v1618_v36  ;;  %v318_v15 = vmul.f32 5.0, %v1466_v12 }
  0x62   :  { %75 = vst [vmem:[#allocation2 + $0x1c0] sm:$0xff] %v74_v6  ;;  %v286_v14 = vmul.f32 %v285_v16, %v1699_v0  ;;  %v320_v18 = vmul.f32 4.0, %v1623_v38  ;;  %v139_v35 = vsub.f32 %v137_v2, %v138_v8  ;;  %v343_v26 = vmul.f32 7.5, %v1466_v12 }
  0x63   :  { %445 = vxpose.xlu0.b32.cont [6/16] %v399_v57, 128  ;;  %358 = vst [vmem:[#allocation2 + $0x1f8] sm:$0xff] %v357_v39  ;;  %v319_v24 = vmul.f32 %v1701_v19, %v318_v15  ;;  %v361_v29 = vmul.f32 2027025.0, %v1466_v12  ;;  %v370_v36 = vmul.f32 %v1737_v28, %v1464_v11  ;;  %v367_v38 = vmul.f32 %v1737_v28, %v1462_v10 }
  0x64   :  { %v515_v30 = vld [vmem:[#allocation2 + $0x181] ss:$8 sm:$0xf0]  ;;  %v402_v47 = vld [vmem:[#allocation2 + $0x180] ss:$8 sm:$0xf0]  ;;  %v288_v32 = vsub.f32 %v286_v14, %v287_v33  ;;  %v344_v0 = vmul.f32 %v343_v26, %v1705_v20  ;;  %v368_v19 = vmul.f32 %v1707_v21, %v1464_v11 }
  0x65   :  { %v321_v48 = vsub.f32 %v319_v24, %v320_v18  ;;  %v140_v42 = vmul.f32 0.1938511, %v139_v35  ;;  %v197_v43 = vmul.f32 0.023169639, %v196_v4  ;;  %v247_v9 = vmul.f32 0.0028519854, %v246_v22 }
  0x66   :  { %v514_v52 = vld [vmem:[#allocation2 + $0x181] ss:$8 sm:$0xf]  ;;  %v401_v40 = vld [vmem:[#allocation2 + $0x180] ss:$8 sm:$0xf]  ;;  %v372_v50 = vadd.f32 %v371_v3, %v370_v36 }
  0x67   :  { %v516_v41 = vor.u32 %v515_v30, %v514_v52  ;;  %v403_v31 = vor.u32 %v402_v47, %v401_v40  ;;  %v289_v44 = vmul.f32 0.00036818974, %v288_v32  ;;  %v322_v27 = vmul.f32 5.1058727e-05, %v321_v48 }
  0x68   :  { %v143_v20 = vmul.f32 %v140_v42, %v1464_v11  ;;  %v200_v54 = vmul.f32 %v197_v43, %v1486_v25  ;;  %v141_v58 = vmul.f32 %v140_v42, %v1462_v10  ;;  %v250_v59 = vmul.f32 %v247_v9, %v1523_v55  ;;  %v418_v14 = vld [vmem:[#allocation2 + $0x280] ss:$8 sm:$0xf0]  ;;  %v534_v36 = vld [vmem:[#allocation2 + $0x2c1] ss:$8 sm:$0xf] }
  0x69   :  { %559 = vxpose.xlu1.b32.cont [7/16] %v516_v41, 128  ;;  %446 = vxpose.xlu0.b32.cont [7/16] %v403_v31, 128  ;;  %v518_v51 = vld [vmem:[#allocation2 + $0x1c1] ss:$8 sm:$0xf]  ;;  %v405_v53 = vld [vmem:[#allocation2 + $0x1c0] ss:$8 sm:$0xf]  ;;  %v292_v61 = vmul.f32 %v289_v44, %v1547_v17  ;;  %v325_v62 = vmul.f32 %v322_v27, %v1594_v5  ;;  %v198_v3 = vmul.f32 %v197_v43, %v1499_v34 }
  0x6a   :  { %v1293_v1 = vadd.f32 -67567.5, %v344_v0  ;;  %v519_v57 = vld [vmem:[#allocation2 + $0x1c1] ss:$8 sm:$0xf0]  ;;  %144 = vst [vmem:[#allocation2 + $0x238] sm:$0xff] %v143_v20  ;;  %v248_v11 = vmul.f32 %v247_v9, %v1516_v49  ;;  %v290_v25 = vmul.f32 %v289_v44, %v1570_v45  ;;  %v323_v10 = vmul.f32 %v322_v27, %v1620_v37 }
  0x6b   :  { %v406_v6 = vld [vmem:[#allocation2 + $0x1c0] ss:$8 sm:$0xf0]  ;;  %201 = vst [vmem:[#allocation2 + $0x230] sm:$0xff] %v200_v54  ;;  %142 = vst [vmem:[#allocation2 + $0x248] sm:$0xff] %v141_v58  ;;  %v520_v7 = vor.u32 %v519_v57, %v518_v51  ;;  %v76_v13 = vmul.f32 1.875, %v1466_v12  ;;  %v369_v34 = vsub.f32 %v367_v38, %v368_v19 }
  0x6c   :  { %v407_v55 = vor.u32 %v406_v6, %v405_v53  ;;  %251 = vst [vmem:[#allocation2 + $0x228] sm:$0xff] %v250_v59  ;;  %293 = vst [vmem:[#allocation2 + $0x220] sm:$0xff] %v292_v61  ;;  %v346_v17 = vmul.f32 7.878532e-06, %v1293_v1  ;;  %v362_v5 = vmul.f32 1.4384167e-06, %v361_v29 }
  0x6d   :  { %326 = vst [vmem:[#allocation2 + $0x218] sm:$0xff] %v325_v62  ;;  %v375_v8 = vmul.f32 0.72892666, %v372_v50  ;;  %v78_v23 = vmul.f32 0.875, %v1644_v60  ;;  %199 = vst [vmem:[#allocation2 + $0x250] sm:$0xff] %v198_v3  ;;  %560 = vxpose.xlu1.b32.cont [8/16] %v520_v7, 128  ;;  %v77_v16 = vmul.f32 %v76_v13, %v1724_v46 }
  0x6e   :  { %249 = vst [vmem:[#allocation2 + $0x258] sm:$0xff] %v248_v11  ;;  %291 = vst [vmem:[#allocation2 + $0x260] sm:$0xff] %v290_v25  ;;  %447 = vxpose.xlu0.b32.cont [8/16] %v407_v55, 128  ;;  %v349_v49 = vmul.f32 %v346_v17, %v1640_v56  ;;  %v365_v45 = vmul.f32 %v362_v5, %v1707_v21  ;;  %v347_v37 = vmul.f32 %v346_v17, %v1687_v63  ;;  %v535_v52 = vld [vmem:[#allocation2 + $0x2c1] ss:$8 sm:$0xf0] }
  0x6f   :  { %324 = vst [vmem:[#allocation2 + $0x268] sm:$0xff] %v323_v10  ;;  %376 = vst [vmem:[#allocation2 + $0x200] sm:$0xff] %v375_v8  ;;  %v363_v12 = vmul.f32 %v362_v5, %v1737_v28  ;;  %v373_v39 = vmul.f32 0.72892666, %v369_v34  ;;  %v79_v60 = vsub.f32 %v77_v16, %v78_v23  ;;  %v536_v0 = vor.u32 %v535_v52, %v534_v36 }
  0x70   :  { %350 = vst [vmem:[#allocation2 + $0x210] sm:$0xff] %v349_v49  ;;  %366 = vst [vmem:[#allocation2 + $0x208] sm:$0xff] %v365_v45  ;;  %v531_v28 = vld [vmem:[#allocation2 + $0x281] ss:$8 sm:$0xf0] }
  0x71   :  { %348 = vst [vmem:[#allocation2 + $0x270] sm:$0xff] %v347_v37  ;;  %364 = vst [vmem:[#allocation2 + $0x278] sm:$0xff] %v363_v12  ;;  %v80_v2 = vmul.f32 1.1631067, %v79_v60 }
  0x72   :  { %374 = vst [vmem:[#allocation2 + $0x280] sm:$0xff] %v373_v39  ;;  %v421_v40 = vld [vmem:[#allocation2 + $0x2c0] ss:$8 sm:$0xf] }
  0x73   :  { %v523_v33 = vld [vmem:[#allocation2 + $0x201] ss:$8 sm:$0xf0]  ;;  %v410_v15 = vld [vmem:[#allocation2 + $0x200] ss:$8 sm:$0xf0] }
  0x74   :  { %81 = vst [vmem:[#allocation2 + $0x240] sm:$0xff] %v80_v2  ;;  %v422_v48 = vld [vmem:[#allocation2 + $0x2c0] ss:$8 sm:$0xf0] }
  0x75   :  { %v423_v38 = vor.u32 %v422_v48, %v421_v40  ;;  %v538_v19 = vld [vmem:[#allocation2 + $0x301] ss:$8 sm:$0xf]  ;;  %v425_v31 = vld [vmem:[#allocation2 + $0x300] ss:$8 sm:$0xf] }
  0x76   :  { %v539_v41 = vld [vmem:[#allocation2 + $0x301] ss:$8 sm:$0xf0]  ;;  %v426_v42 = vld [vmem:[#allocation2 + $0x300] ss:$8 sm:$0xf0] }
  0x77   :  { %v522_v56 = vld [vmem:[#allocation2 + $0x201] ss:$8 sm:$0xf]  ;;  %v409_v21 = vld [vmem:[#allocation2 + $0x200] ss:$8 sm:$0xf]  ;;  %v540_v43 = vor.u32 %v539_v41, %v538_v19  ;;  %v427_v9 = vor.u32 %v426_v42, %v425_v31 }
  0x78   :  { %v524_v4 = vor.u32 %v523_v33, %v522_v56  ;;  %v411_v63 = vor.u32 %v410_v15, %v409_v21  ;;  %v527_v46 = vld [vmem:[#allocation2 + $0x241] ss:$8 sm:$0xf0]  ;;  %v414_v22 = vld [vmem:[#allocation2 + $0x240] ss:$8 sm:$0xf0] }
  0x79   :  { %v530_v18 = vld [vmem:[#allocation2 + $0x281] ss:$8 sm:$0xf]  ;;  %v417_v35 = vld [vmem:[#allocation2 + $0x280] ss:$8 sm:$0xf] }
  0x7a   :  { %561 = vxpose.xlu1.b32.cont [9/16] %v524_v4, 128  ;;  %448 = vxpose.xlu0.b32.cont [9/16] %v411_v63, 128  ;;  %v532_v47 = vor.u32 %v531_v28, %v530_v18  ;;  %v419_v32 = vor.u32 %v418_v14, %v417_v35  ;;  %v542_v44 = vld [vmem:[#allocation2 + $0x341] ss:$8 sm:$0xf]  ;;  %v429_v50 = vld [vmem:[#allocation2 + $0x340] ss:$8 sm:$0xf] }
  0x7b   :  { %v526_v24 = vld [vmem:[#allocation2 + $0x241] ss:$8 sm:$0xf]  ;;  %v413_v26 = vld [vmem:[#allocation2 + $0x240] ss:$8 sm:$0xf] }
  0x7c   :  { %v528_v29 = vor.u32 %v527_v46, %v526_v24  ;;  %v415_v30 = vor.u32 %v414_v22, %v413_v26  ;;  %v543_v27 = vld [vmem:[#allocation2 + $0x341] ss:$8 sm:$0xf0]  ;;  %v430_v51 = vld [vmem:[#allocation2 + $0x340] ss:$8 sm:$0xf0] }
  0x7d   :  { %v544_v53 = vor.u32 %v543_v27, %v542_v44  ;;  %v431_v20 = vor.u32 %v430_v51, %v429_v50  ;;  %v546_v54 = vld [vmem:[#allocation2 + $0x381] ss:$8 sm:$0xf]  ;;  %v433_v59 = vld [vmem:[#allocation2 + $0x380] ss:$8 sm:$0xf] }
  0x7e   :  { %562 = vxpose.xlu1.b32.cont [10/16] %v528_v29, 128  ;;  %449 = vxpose.xlu0.b32.cont [10/16] %v415_v30, 128  ;;  %v547_v58 = vld [vmem:[#allocation2 + $0x381] ss:$8 sm:$0xf0]  ;;  %v434_v61 = vld [vmem:[#allocation2 + $0x380] ss:$8 sm:$0xf0] }
  0x7f   :  { %v548_v62 = vor.u32 %v547_v58, %v546_v54  ;;  %v435_v1 = vor.u32 %v434_v61, %v433_v59  ;;  %v550_v57 = vld [vmem:[#allocation2 + $0x3c1] ss:$8 sm:$0xf]  ;;  %v437_v3 = vld [vmem:[#allocation2 + $0x3c0] ss:$8 sm:$0xf] }
  0x80   :  { %v551_v6 = vld [vmem:[#allocation2 + $0x3c1] ss:$8 sm:$0xf0]  ;;  %v438_v11 = vld [vmem:[#allocation2 + $0x3c0] ss:$8 sm:$0xf0] }
  0x81   :  { %v552_v25 = vor.u32 %v551_v6, %v550_v57  ;;  %v439_v10 = vor.u32 %v438_v11, %v437_v3  ;;  %v716_v7 = vld [vmem:[#allocation2 + $0x3] ss:$8 sm:$0xf]  ;;  %v603_v55 = vld [vmem:[#allocation2 + $0x2] ss:$8 sm:$0xf] }
  0x82   :  { %563 = vxpose.xlu1.b32.cont [11/16] %v532_v47, 128  ;;  %450 = vxpose.xlu0.b32.cont [11/16] %v419_v32, 128  ;;  %v717_v17 = vld [vmem:[#allocation2 + $0x3] ss:$8 sm:$0xf0]  ;;  %v604_v5 = vld [vmem:[#allocation2 + $0x2] ss:$8 sm:$0xf0] }
  0x83   :  { %v718_v8 = vor.u32 %v717_v17, %v716_v7  ;;  %v605_v13 = vor.u32 %v604_v5, %v603_v55  ;;  %v720_v23 = vld [vmem:[#allocation2 + $0x43] ss:$8 sm:$0xf]  ;;  %v607_v49 = vld [vmem:[#allocation2 + $0x42] ss:$8 sm:$0xf] }
  0x84   :  { %v721_v34 = vld [vmem:[#allocation2 + $0x43] ss:$8 sm:$0xf0]  ;;  %v608_v45 = vld [vmem:[#allocation2 + $0x42] ss:$8 sm:$0xf0] }
  0x85   :  { %v722_v37 = vor.u32 %v721_v34, %v720_v23  ;;  %v609_v16 = vor.u32 %v608_v45, %v607_v49  ;;  %v724_v12 = vld [vmem:[#allocation2 + $0x83] ss:$8 sm:$0xf]  ;;  %v611_v60 = vld [vmem:[#allocation2 + $0x82] ss:$8 sm:$0xf] }
  0x86   :  { %564 = vxpose.xlu1.b32.cont [12/16] %v536_v0, 128  ;;  %451 = vxpose.xlu0.b32.cont [12/16] %v423_v38, 128  ;;  %v725_v39 = vld [vmem:[#allocation2 + $0x83] ss:$8 sm:$0xf0]  ;;  %v612_v2 = vld [vmem:[#allocation2 + $0x82] ss:$8 sm:$0xf0] }
  0x87   :  { %v726_v33 = vor.u32 %v725_v39, %v724_v12  ;;  %v613_v15 = vor.u32 %v612_v2, %v611_v60  ;;  %v728_v56 = vld [vmem:[#allocation2 + $0xc3] ss:$8 sm:$0xf]  ;;  %v615_v4 = vld [vmem:[#allocation2 + $0xc2] ss:$8 sm:$0xf] }
  0x88   :  { %v729_v21 = vld [vmem:[#allocation2 + $0xc3] ss:$8 sm:$0xf0]  ;;  %v616_v63 = vld [vmem:[#allocation2 + $0xc2] ss:$8 sm:$0xf0] }
  0x89   :  { %v730_v46 = vor.u32 %v729_v21, %v728_v56  ;;  %v617_v22 = vor.u32 %v616_v63, %v615_v4  ;;  %v732_v28 = vld [vmem:[#allocation2 + $0x103] ss:$8 sm:$0xf]  ;;  %v619_v18 = vld [vmem:[#allocation2 + $0x102] ss:$8 sm:$0xf] }
  0x8a   :  { %565 = vxpose.xlu1.b32.cont [13/16] %v540_v43, 128  ;;  %452 = vxpose.xlu0.b32.cont [13/16] %v427_v9, 128  ;;  %v733_v14 = vld [vmem:[#allocation2 + $0x103] ss:$8 sm:$0xf0]  ;;  %v620_v35 = vld [vmem:[#allocation2 + $0x102] ss:$8 sm:$0xf0] }
  0x8b   :  { %v734_v24 = vor.u32 %v733_v14, %v732_v28  ;;  %v621_v26 = vor.u32 %v620_v35, %v619_v18  ;;  %v736_v29 = vld [vmem:[#allocation2 + $0x143] ss:$8 sm:$0xf]  ;;  %v623_v47 = vld [vmem:[#allocation2 + $0x142] ss:$8 sm:$0xf] }
  0x8c   :  { %v737_v30 = vld [vmem:[#allocation2 + $0x143] ss:$8 sm:$0xf0]  ;;  %v624_v32 = vld [vmem:[#allocation2 + $0x142] ss:$8 sm:$0xf0] }
  0x8d   :  { %v738_v36 = vor.u32 %v737_v30, %v736_v29  ;;  %v625_v52 = vor.u32 %v624_v32, %v623_v47  ;;  %v740_v40 = vld [vmem:[#allocation2 + $0x183] ss:$8 sm:$0xf]  ;;  %v627_v0 = vld [vmem:[#allocation2 + $0x182] ss:$8 sm:$0xf] }
  0x8e   :  { %566 = vxpose.xlu1.b32.cont [14/16] %v544_v53, 128  ;;  %453 = vxpose.xlu0.b32.cont [14/16] %v431_v20, 128  ;;  %v741_v48 = vld [vmem:[#allocation2 + $0x183] ss:$8 sm:$0xf0]  ;;  %v628_v38 = vld [vmem:[#allocation2 + $0x182] ss:$8 sm:$0xf0] }
  0x8f   :  { %v742_v19 = vor.u32 %v741_v48, %v740_v40  ;;  %v629_v41 = vor.u32 %v628_v38, %v627_v0  ;;  %v744_v31 = vld [vmem:[#allocation2 + $0x1c3] ss:$8 sm:$0xf]  ;;  %v631_v43 = vld [vmem:[#allocation2 + $0x1c2] ss:$8 sm:$0xf] }
  0x90   :  { %v745_v42 = vld [vmem:[#allocation2 + $0x1c3] ss:$8 sm:$0xf0]  ;;  %v632_v9 = vld [vmem:[#allocation2 + $0x1c2] ss:$8 sm:$0xf0] }
  0x91   :  { %v746_v44 = vor.u32 %v745_v42, %v744_v31  ;;  %v633_v27 = vor.u32 %v632_v9, %v631_v43  ;;  %v749_v50 = vld [vmem:[#allocation2 + $0x203] ss:$8 sm:$0xf0]  ;;  %v636_v51 = vld [vmem:[#allocation2 + $0x202] ss:$8 sm:$0xf0] }
  0x92   :  { %567 = vxpose.xlu1.b32.cont [15/16] %v548_v62, 128  ;;  %454 = vxpose.xlu0.b32.cont [15/16] %v435_v1, 128  ;;  %v748_v53 = vld [vmem:[#allocation2 + $0x203] ss:$8 sm:$0xf]  ;;  %v635_v20 = vld [vmem:[#allocation2 + $0x202] ss:$8 sm:$0xf] }
  0x93   :  { %v750_v54 = vor.u32 %v749_v50, %v748_v53  ;;  %v637_v58 = vor.u32 %v636_v51, %v635_v20  ;;  %v753_v59 = vld [vmem:[#allocation2 + $0x243] ss:$8 sm:$0xf0]  ;;  %v640_v61 = vld [vmem:[#allocation2 + $0x242] ss:$8 sm:$0xf0] }
  0x94   :  { %v752_v62 = vld [vmem:[#allocation2 + $0x243] ss:$8 sm:$0xf]  ;;  %v639_v1 = vld [vmem:[#allocation2 + $0x242] ss:$8 sm:$0xf] }
  0x95   :  { %v754_v57 = vor.u32 %v753_v59, %v752_v62  ;;  %v641_v6 = vor.u32 %v640_v61, %v639_v1  ;;  %v756_v3 = vld [vmem:[#allocation2 + $0x283] ss:$8 sm:$0xf]  ;;  %v942_v47 = vld [vmem:[#allocation2 + $0x5] ss:$8 sm:$0xf] }
  0x96   :  { %568 = vxpose.xlu1.b32.end [16/16] %v552_v25, 128  ;;  %455 = vxpose.xlu0.b32.end [16/16] %v439_v10, 128  ;;  %v757_v11 = vld [vmem:[#allocation2 + $0x283] ss:$8 sm:$0xf0]  ;;  %v643_v25 = vld [vmem:[#allocation2 + $0x282] ss:$8 sm:$0xf] }
  0x97   :  { %v644_v10 = vld [vmem:[#allocation2 + $0x282] ss:$8 sm:$0xf0]  ;;  %v758_v7 = vor.u32 %v757_v11, %v756_v3  ;;  %v760_v17 = vld [vmem:[#allocation2 + $0x2c3] ss:$8 sm:$0xf] }
  0x98   :  { %v645_v55 = vor.u32 %v644_v10, %v643_v25  ;;  %v761_v5 = vld [vmem:[#allocation2 + $0x2c3] ss:$8 sm:$0xf0]  ;;  %v943_v32 = vld [vmem:[#allocation2 + $0x5] ss:$8 sm:$0xf0] }
  0x99   :  { %v762_v23 = vor.u32 %v761_v5, %v760_v17  ;;  %v764_v49 = vld [vmem:[#allocation2 + $0x303] ss:$8 sm:$0xf]  ;;  %v944_v40 = vor.u32 %v943_v32, %v942_v47  ;;  %v946_v0 = vld [vmem:[#allocation2 + $0x45] ss:$8 sm:$0xf] }
  0x9a   :  { %779 = vxpose.xlu1.b32.start [1/16] %v718_v8, 128  ;;  %666 = vxpose.xlu0.b32.start [1/16] %v605_v13, 128  ;;  %v647_v8 = vld [vmem:[#allocation2 + $0x2c2] ss:$8 sm:$0xf]  ;;  %v765_v45 = vld [vmem:[#allocation2 + $0x303] ss:$8 sm:$0xf0] }
  0x9b   :  { %v648_v13 = vld [vmem:[#allocation2 + $0x2c2] ss:$8 sm:$0xf0]  ;;  %v766_v12 = vor.u32 %v765_v45, %v764_v49  ;;  %v768_v60 = vld [vmem:[#allocation2 + $0x343] ss:$8 sm:$0xf] }
  0x9c   :  { %v649_v34 = vor.u32 %v648_v13, %v647_v8  ;;  %v769_v2 = vld [vmem:[#allocation2 + $0x343] ss:$8 sm:$0xf0]  ;;  %v947_v38 = vld [vmem:[#allocation2 + $0x45] ss:$8 sm:$0xf0] }
  0x9d   :  { %v770_v56 = vor.u32 %v769_v2, %v768_v60  ;;  %v772_v4 = vld [vmem:[#allocation2 + $0x383] ss:$8 sm:$0xf]  ;;  %v948_v43 = vor.u32 %v947_v38, %v946_v0  ;;  %v837_v50 = vld [vmem:[#allocation2 + $0x84] ss:$8 sm:$0xf] }
  0x9e   :  { %780 = vxpose.xlu1.b32.cont [2/16] %v722_v37, 128  ;;  %667 = vxpose.xlu0.b32.cont [2/16] %v609_v16, 128  ;;  %v651_v37 = vld [vmem:[#allocation2 + $0x302] ss:$8 sm:$0xf]  ;;  %v773_v63 = vld [vmem:[#allocation2 + $0x383] ss:$8 sm:$0xf0] }
  0x9f   :  { %v652_v16 = vld [vmem:[#allocation2 + $0x302] ss:$8 sm:$0xf0]  ;;  %v774_v28 = vor.u32 %v773_v63, %v772_v4  ;;  %v776_v18 = vld [vmem:[#allocation2 + $0x3c3] ss:$8 sm:$0xf] }
  0xa0   :  { %v653_v39 = vor.u32 %v652_v16, %v651_v37  ;;  %v777_v35 = vld [vmem:[#allocation2 + $0x3c3] ss:$8 sm:$0xf0]  ;;  %v838_v51 = vld [vmem:[#allocation2 + $0x84] ss:$8 sm:$0xf0] }
  0xa1   :  { %v778_v29 = vor.u32 %v777_v35, %v776_v18  ;;  %v954_v59 = vld [vmem:[#allocation2 + $0xc5] ss:$8 sm:$0xf]  ;;  %v841_v62 = vld [vmem:[#allocation2 + $0xc4] ss:$8 sm:$0xf] }
  0xa2   :  { %781 = vxpose.xlu1.b32.cont [3/16] %v726_v33, 128  ;;  %668 = vxpose.xlu0.b32.cont [3/16] %v613_v15, 128  ;;  %v655_v33 = vld [vmem:[#allocation2 + $0x342] ss:$8 sm:$0xf]  ;;  %v955_v61 = vld [vmem:[#allocation2 + $0xc5] ss:$8 sm:$0xf0] }
  0xa3   :  { %v656_v15 = vld [vmem:[#allocation2 + $0x342] ss:$8 sm:$0xf0]  ;;  %v842_v1 = vld [vmem:[#allocation2 + $0xc4] ss:$8 sm:$0xf0]  ;;  %v956_v3 = vor.u32 %v955_v61, %v954_v59 }
  0xa4   :  { %v657_v21 = vor.u32 %v656_v15, %v655_v33  ;;  %v843_v11 = vor.u32 %v842_v1, %v841_v62  ;;  %v958_v25 = vld [vmem:[#allocation2 + $0x105] ss:$8 sm:$0xf]  ;;  %v849_v49 = vld [vmem:[#allocation2 + $0x144] ss:$8 sm:$0xf] }
  0xa5   :  { %v959_v10 = vld [vmem:[#allocation2 + $0x105] ss:$8 sm:$0xf0]  ;;  %v850_v45 = vld [vmem:[#allocation2 + $0x144] ss:$8 sm:$0xf0] }
  0xa6   :  { %782 = vxpose.xlu1.b32.cont [4/16] %v730_v46, 128  ;;  %669 = vxpose.xlu0.b32.cont [4/16] %v617_v22, 128  ;;  %v659_v46 = vld [vmem:[#allocation2 + $0x382] ss:$8 sm:$0xf]  ;;  %v960_v8 = vor.u32 %v959_v10, %v958_v25  ;;  %v966_v60 = vld [vmem:[#allocation2 + $0x185] ss:$8 sm:$0xf] }
  0xa7   :  { %v660_v22 = vld [vmem:[#allocation2 + $0x382] ss:$8 sm:$0xf0]  ;;  %v967_v2 = vld [vmem:[#allocation2 + $0x185] ss:$8 sm:$0xf0] }
  0xa8   :  { %v661_v14 = vor.u32 %v660_v22, %v659_v46  ;;  %v853_v33 = vld [vmem:[#allocation2 + $0x184] ss:$8 sm:$0xf]  ;;  %v968_v4 = vor.u32 %v967_v2, %v966_v60  ;;  %v970_v46 = vld [vmem:[#allocation2 + $0x1c5] ss:$8 sm:$0xf] }
  0xa9   :  { %v854_v15 = vld [vmem:[#allocation2 + $0x184] ss:$8 sm:$0xf0]  ;;  %v971_v22 = vld [vmem:[#allocation2 + $0x1c5] ss:$8 sm:$0xf0] }
  0xaa   :  { %783 = vxpose.xlu1.b32.cont [5/16] %v734_v24, 128  ;;  %670 = vxpose.xlu0.b32.cont [5/16] %v621_v26, 128  ;;  %v663_v24 = vld [vmem:[#allocation2 + $0x3c2] ss:$8 sm:$0xf]  ;;  %v855_v63 = vor.u32 %v854_v15, %v853_v33  ;;  %v861_v47 = vld [vmem:[#allocation2 + $0x204] ss:$8 sm:$0xf] }
  0xab   :  { %v664_v26 = vld [vmem:[#allocation2 + $0x3c2] ss:$8 sm:$0xf0]  ;;  %v862_v32 = vld [vmem:[#allocation2 + $0x204] ss:$8 sm:$0xf0] }
  0xac   :  { %v665_v30 = vor.u32 %v664_v26, %v663_v24  ;;  %v972_v24 = vor.u32 %v971_v22, %v970_v46  ;;  %v978_v0 = vld [vmem:[#allocation2 + $0x245] ss:$8 sm:$0xf]  ;;  %v873_v62 = vld [vmem:[#allocation2 + $0x2c4] ss:$8 sm:$0xf] }
  0xad   :  { %v979_v38 = vld [vmem:[#allocation2 + $0x245] ss:$8 sm:$0xf0]  ;;  %v874_v1 = vld [vmem:[#allocation2 + $0x2c4] ss:$8 sm:$0xf0] }
  0xae   :  { %784 = vxpose.xlu1.b32.cont [6/16] %v738_v36, 128  ;;  %671 = vxpose.xlu0.b32.cont [6/16] %v625_v52, 128  ;;  %v829_v36 = vld [vmem:[#allocation2 + $0x4] ss:$8 sm:$0xf]  ;;  %v986_v59 = vld [vmem:[#allocation2 + $0x2c5] ss:$8 sm:$0xf] }
  0xaf   :  { %v830_v52 = vld [vmem:[#allocation2 + $0x4] ss:$8 sm:$0xf0]  ;;  %v987_v61 = vld [vmem:[#allocation2 + $0x2c5] ss:$8 sm:$0xf0] }
  0xb0   :  { %v831_v48 = vor.u32 %v830_v52, %v829_v36  ;;  %v990_v25 = vld [vmem:[#allocation2 + $0x305] ss:$8 sm:$0xf]  ;;  %v885_v33 = vld [vmem:[#allocation2 + $0x384] ss:$8 sm:$0xf] }
  0xb1   :  { %v991_v10 = vld [vmem:[#allocation2 + $0x305] ss:$8 sm:$0xf0]  ;;  %v886_v15 = vld [vmem:[#allocation2 + $0x384] ss:$8 sm:$0xf0] }
  0xb2   :  { %785 = vxpose.xlu1.b32.cont [7/16] %v742_v19, 128  ;;  %672 = vxpose.xlu0.b32.cont [7/16] %v629_v41, 128  ;;  %v833_v19 = vld [vmem:[#allocation2 + $0x44] ss:$8 sm:$0xf]  ;;  %v998_v60 = vld [vmem:[#allocation2 + $0x385] ss:$8 sm:$0xf] }
  0xb3   :  { %v834_v41 = vld [vmem:[#allocation2 + $0x44] ss:$8 sm:$0xf0]  ;;  %v999_v2 = vld [vmem:[#allocation2 + $0x385] ss:$8 sm:$0xf0] }
  0xb4   :  { %v835_v9 = vor.u32 %v834_v41, %v833_v19  ;;  %v865_v19 = vld [vmem:[#allocation2 + $0x244] ss:$8 sm:$0xf]  ;;  %v1002_v46 = vld [vmem:[#allocation2 + $0x3c5] ss:$8 sm:$0xf] }
  0xb5   :  { %v866_v41 = vld [vmem:[#allocation2 + $0x244] ss:$8 sm:$0xf0]  ;;  %v1003_v22 = vld [vmem:[#allocation2 + $0x3c5] ss:$8 sm:$0xf0] }
  0xb6   :  { %786 = vxpose.xlu1.b32.cont [8/16] %v746_v44, 128  ;;  %673 = vxpose.xlu0.b32.cont [8/16] %v633_v27, 128  ;;  %v950_v44 = vld [vmem:[#allocation2 + $0x85] ss:$8 sm:$0xf] }
  0xb7   :  { %v951_v27 = vld [vmem:[#allocation2 + $0x85] ss:$8 sm:$0xf0] }
  0xba   :  { %787 = vxpose.xlu1.b32.cont [9/16] %v750_v54, 128  ;;  %674 = vxpose.xlu0.b32.cont [9/16] %v637_v58, 128  ;;  %v952_v54 = vor.u32 %v951_v27, %v950_v44  ;;  %v839_v58 = vor.u32 %v838_v51, %v837_v50  ;;  %v982_v44 = vld [vmem:[#allocation2 + $0x285] ss:$8 sm:$0xf]  ;;  %v869_v50 = vld [vmem:[#allocation2 + $0x284] ss:$8 sm:$0xf] }
  0xbb   :  { %v983_v27 = vld [vmem:[#allocation2 + $0x285] ss:$8 sm:$0xf0]  ;;  %v870_v51 = vld [vmem:[#allocation2 + $0x284] ss:$8 sm:$0xf0] }
  0xbe   :  { %788 = vxpose.xlu1.b32.cont [10/16] %v754_v57, 128  ;;  %675 = vxpose.xlu0.b32.cont [10/16] %v641_v6, 128 }
  0xc2   :  { %789 = vxpose.xlu1.b32.cont [11/16] %v758_v7, 128  ;;  %676 = vxpose.xlu0.b32.cont [11/16] %v645_v55, 128  ;;  %v845_v7 = vld [vmem:[#allocation2 + $0x104] ss:$8 sm:$0xf] }
  0xc3   :  { %v846_v55 = vld [vmem:[#allocation2 + $0x104] ss:$8 sm:$0xf0] }
  0xc4   :  { %v847_v13 = vor.u32 %v846_v55, %v845_v7  ;;  %v877_v7 = vld [vmem:[#allocation2 + $0x304] ss:$8 sm:$0xf] }
  0xc5   :  { %v878_v55 = vld [vmem:[#allocation2 + $0x304] ss:$8 sm:$0xf0] }
  0xc6   :  { %790 = vxpose.xlu1.b32.cont [12/16] %v762_v23, 128  ;;  %677 = vxpose.xlu0.b32.cont [12/16] %v649_v34, 128  ;;  %v962_v23 = vld [vmem:[#allocation2 + $0x145] ss:$8 sm:$0xf] }
  0xc7   :  { %v963_v34 = vld [vmem:[#allocation2 + $0x145] ss:$8 sm:$0xf0] }
  0xca   :  { %791 = vxpose.xlu1.b32.cont [13/16] %v766_v12, 128  ;;  %678 = vxpose.xlu0.b32.cont [13/16] %v653_v39, 128  ;;  %v964_v12 = vor.u32 %v963_v34, %v962_v23  ;;  %v851_v39 = vor.u32 %v850_v45, %v849_v49  ;;  %v994_v23 = vld [vmem:[#allocation2 + $0x345] ss:$8 sm:$0xf]  ;;  %v881_v49 = vld [vmem:[#allocation2 + $0x344] ss:$8 sm:$0xf] }
  0xcb   :  { %v995_v34 = vld [vmem:[#allocation2 + $0x345] ss:$8 sm:$0xf0]  ;;  %v882_v45 = vld [vmem:[#allocation2 + $0x344] ss:$8 sm:$0xf0] }
  0xce   :  { %792 = vxpose.xlu1.b32.cont [14/16] %v770_v56, 128  ;;  %679 = vxpose.xlu0.b32.cont [14/16] %v657_v21, 128 }
  0xd2   :  { %793 = vxpose.xlu1.b32.cont [15/16] %v774_v28, 128  ;;  %680 = vxpose.xlu0.b32.cont [15/16] %v661_v14, 128  ;;  %v857_v28 = vld [vmem:[#allocation2 + $0x1c4] ss:$8 sm:$0xf] }
  0xd3   :  { %v858_v14 = vld [vmem:[#allocation2 + $0x1c4] ss:$8 sm:$0xf0] }
  0xd4   :  { %v859_v26 = vor.u32 %v858_v14, %v857_v28  ;;  %v889_v28 = vld [vmem:[#allocation2 + $0x3c4] ss:$8 sm:$0xf] }
  0xd5   :  { %v890_v14 = vld [vmem:[#allocation2 + $0x3c4] ss:$8 sm:$0xf0] }
  0xd6   :  { %794 = vxpose.xlu1.b32.end [16/16] %v778_v29, 128  ;;  %681 = vxpose.xlu0.b32.end [16/16] %v665_v30, 128  ;;  %v974_v29 = vld [vmem:[#allocation2 + $0x205] ss:$8 sm:$0xf] }
  0xd7   :  { %v975_v30 = vld [vmem:[#allocation2 + $0x205] ss:$8 sm:$0xf0] }
  0xda   :  { %1005 = vxpose.xlu1.b32.start [1/16] %v944_v40, 128  ;;  %v569_v31 = vpop.trf.xlu1  ;;  %892 = vxpose.xlu0.b32.start [1/16] %v831_v48, 128  ;;  %v456_v42 = vpop.trf.xlu0  ;;  %v976_v40 = vor.u32 %v975_v30, %v974_v29  ;;  %v863_v48 = vor.u32 %v862_v32, %v861_v47  ;;  %v1168_v29 = vld [vmem:[#allocation2 + $0x7] ss:$8 sm:$0xf]  ;;  %v1055_v47 = vld [vmem:[#allocation2 + $0x6] ss:$8 sm:$0xf] }
  0xdb   :  { %1294 = vst.msk [vmem:[%s2290_s1 + $0x80] sm:$0xff] %vm472_vm0, %v569_v31  ;;  %473 = vst.msk [vmem:[%s2290_s1] sm:$0xff] %vm472_vm0, %v456_v42  ;;  %v1169_v30 = vld [vmem:[#allocation2 + $0x7] ss:$8 sm:$0xf0] }
  0xdc   :  { %v1056_v32 = vld [vmem:[#allocation2 + $0x6] ss:$8 sm:$0xf0] }
  0xde   :  { %1006 = vxpose.xlu1.b32.cont [2/16] %v948_v43, 128  ;;  %v570_v53 = vpop.trf.xlu1  ;;  %893 = vxpose.xlu0.b32.cont [2/16] %v835_v9, 128  ;;  %v457_v20 = vpop.trf.xlu0  ;;  %v980_v43 = vor.u32 %v979_v38, %v978_v0  ;;  %v867_v9 = vor.u32 %v866_v41, %v865_v19  ;;  %v1172_v0 = vld [vmem:[#allocation2 + $0x47] ss:$8 sm:$0xf]  ;;  %v1059_v19 = vld [vmem:[#allocation2 + $0x46] ss:$8 sm:$0xf] }
  0xdf   :  { %1295 = vst.msk [vmem:[%s2290_s1 + $0x88] sm:$0xff] %vm472_vm0, %v570_v53  ;;  %474 = vst.msk [vmem:[%s2290_s1 + $0x8] sm:$0xff] %vm472_vm0, %v457_v20  ;;  %v1173_v38 = vld [vmem:[#allocation2 + $0x47] ss:$8 sm:$0xf0] }
  0xe0   :  { %v1060_v41 = vld [vmem:[#allocation2 + $0x46] ss:$8 sm:$0xf0] }
  0xe2   :  { %1007 = vxpose.xlu1.b32.cont [3/16] %v952_v54, 128  ;;  %v571_v57 = vpop.trf.xlu1  ;;  %894 = vxpose.xlu0.b32.cont [3/16] %v839_v58, 128  ;;  %v458_v6 = vpop.trf.xlu0  ;;  %v984_v54 = vor.u32 %v983_v27, %v982_v44  ;;  %v871_v58 = vor.u32 %v870_v51, %v869_v50  ;;  %v1176_v44 = vld [vmem:[#allocation2 + $0x87] ss:$8 sm:$0xf]  ;;  %v1063_v50 = vld [vmem:[#allocation2 + $0x86] ss:$8 sm:$0xf] }
  0xe3   :  { %1296 = vst.msk [vmem:[%s2290_s1 + $0x90] sm:$0xff] %vm472_vm0, %v571_v57  ;;  %475 = vst.msk [vmem:[%s2290_s1 + $0x10] sm:$0xff] %vm472_vm0, %v458_v6  ;;  %v1177_v27 = vld [vmem:[#allocation2 + $0x87] ss:$8 sm:$0xf0] }
  0xe4   :  { %v1064_v51 = vld [vmem:[#allocation2 + $0x86] ss:$8 sm:$0xf0] }
  0xe6   :  { %1008 = vxpose.xlu1.b32.cont [4/16] %v956_v3, 128  ;;  %v572_v17 = vpop.trf.xlu1  ;;  %895 = vxpose.xlu0.b32.cont [4/16] %v843_v11, 128  ;;  %v459_v5 = vpop.trf.xlu0  ;;  %v988_v3 = vor.u32 %v987_v61, %v986_v59  ;;  %v875_v11 = vor.u32 %v874_v1, %v873_v62  ;;  %v1180_v59 = vld [vmem:[#allocation2 + $0xc7] ss:$8 sm:$0xf]  ;;  %v1067_v62 = vld [vmem:[#allocation2 + $0xc6] ss:$8 sm:$0xf] }
  0xe7   :  { %1297 = vst.msk [vmem:[%s2290_s1 + $0x98] sm:$0xff] %vm472_vm0, %v572_v17  ;;  %476 = vst.msk [vmem:[%s2290_s1 + $0x18] sm:$0xff] %vm472_vm0, %v459_v5  ;;  %v1181_v61 = vld [vmem:[#allocation2 + $0xc7] ss:$8 sm:$0xf0] }
  0xe8   :  { %v1068_v1 = vld [vmem:[#allocation2 + $0xc6] ss:$8 sm:$0xf0] }
  0xea   :  { %1009 = vxpose.xlu1.b32.cont [5/16] %v960_v8, 128  ;;  %v573_v37 = vpop.trf.xlu1  ;;  %896 = vxpose.xlu0.b32.cont [5/16] %v847_v13, 128  ;;  %v460_v16 = vpop.trf.xlu0  ;;  %v992_v8 = vor.u32 %v991_v10, %v990_v25  ;;  %v879_v13 = vor.u32 %v878_v55, %v877_v7  ;;  %v1184_v25 = vld [vmem:[#allocation2 + $0x107] ss:$8 sm:$0xf]  ;;  %v1071_v7 = vld [vmem:[#allocation2 + $0x106] ss:$8 sm:$0xf] }
  0xeb   :  { %1298 = vst.msk [vmem:[%s2290_s1 + $0xa0] sm:$0xff] %vm472_vm0, %v573_v37  ;;  %477 = vst.msk [vmem:[%s2290_s1 + $0x20] sm:$0xff] %vm472_vm0, %v460_v16  ;;  %v1185_v10 = vld [vmem:[#allocation2 + $0x107] ss:$8 sm:$0xf0] }
  0xec   :  { %v1072_v55 = vld [vmem:[#allocation2 + $0x106] ss:$8 sm:$0xf0] }
  0xee   :  { %1010 = vxpose.xlu1.b32.cont [6/16] %v964_v12, 128  ;;  %v574_v56 = vpop.trf.xlu1  ;;  %897 = vxpose.xlu0.b32.cont [6/16] %v851_v39, 128  ;;  %v461_v21 = vpop.trf.xlu0  ;;  %v996_v12 = vor.u32 %v995_v34, %v994_v23  ;;  %v883_v39 = vor.u32 %v882_v45, %v881_v49  ;;  %v1188_v23 = vld [vmem:[#allocation2 + $0x147] ss:$8 sm:$0xf]  ;;  %v1075_v49 = vld [vmem:[#allocation2 + $0x146] ss:$8 sm:$0xf] }
  0xef   :  { %1299 = vst.msk [vmem:[%s2290_s1 + $0xa8] sm:$0xff] %vm472_vm0, %v574_v56  ;;  %478 = vst.msk [vmem:[%s2290_s1 + $0x28] sm:$0xff] %vm472_vm0, %v461_v21  ;;  %v1189_v34 = vld [vmem:[#allocation2 + $0x147] ss:$8 sm:$0xf0] }
  0xf0   :  { %v1076_v45 = vld [vmem:[#allocation2 + $0x146] ss:$8 sm:$0xf0] }
  0xf2   :  { %1011 = vxpose.xlu1.b32.cont [7/16] %v968_v4, 128  ;;  %v575_v18 = vpop.trf.xlu1  ;;  %898 = vxpose.xlu0.b32.cont [7/16] %v855_v63, 128  ;;  %v462_v35 = vpop.trf.xlu0  ;;  %v1000_v4 = vor.u32 %v999_v2, %v998_v60  ;;  %v887_v63 = vor.u32 %v886_v15, %v885_v33  ;;  %v1192_v60 = vld [vmem:[#allocation2 + $0x187] ss:$8 sm:$0xf]  ;;  %v1079_v33 = vld [vmem:[#allocation2 + $0x186] ss:$8 sm:$0xf] }
  0xf3   :  { %1300 = vst.msk [vmem:[%s2290_s1 + $0xb0] sm:$0xff] %vm472_vm0, %v575_v18  ;;  %479 = vst.msk [vmem:[%s2290_s1 + $0x30] sm:$0xff] %vm472_vm0, %v462_v35  ;;  %v1193_v2 = vld [vmem:[#allocation2 + $0x187] ss:$8 sm:$0xf0] }
  0xf4   :  { %v1080_v15 = vld [vmem:[#allocation2 + $0x186] ss:$8 sm:$0xf0] }
  0xf6   :  { %1012 = vxpose.xlu1.b32.cont [8/16] %v972_v24, 128  ;;  %v576_v36 = vpop.trf.xlu1  ;;  %899 = vxpose.xlu0.b32.cont [8/16] %v859_v26, 128  ;;  %v463_v52 = vpop.trf.xlu0  ;;  %v1004_v24 = vor.u32 %v1003_v22, %v1002_v46  ;;  %v891_v26 = vor.u32 %v890_v14, %v889_v28  ;;  %v1196_v46 = vld [vmem:[#allocation2 + $0x1c7] ss:$8 sm:$0xf]  ;;  %v1083_v28 = vld [vmem:[#allocation2 + $0x1c6] ss:$8 sm:$0xf] }
  0xf7   :  { %1301 = vst.msk [vmem:[%s2290_s1 + $0xb8] sm:$0xff] %vm472_vm0, %v576_v36  ;;  %480 = vst.msk [vmem:[%s2290_s1 + $0x38] sm:$0xff] %vm472_vm0, %v463_v52  ;;  %v1197_v22 = vld [vmem:[#allocation2 + $0x1c7] ss:$8 sm:$0xf0] }
  0xf8   :  { %v1084_v14 = vld [vmem:[#allocation2 + $0x1c6] ss:$8 sm:$0xf0] }
  0xfa   :  { %1013 = vxpose.xlu1.b32.cont [9/16] %v976_v40, 128  ;;  %v577_v31 = vpop.trf.xlu1  ;;  %900 = vxpose.xlu0.b32.cont [9/16] %v863_v48, 128  ;;  %v464_v42 = vpop.trf.xlu0  ;;  %v1170_v40 = vor.u32 %v1169_v30, %v1168_v29  ;;  %v1057_v48 = vor.u32 %v1056_v32, %v1055_v47  ;;  %v1200_v29 = vld [vmem:[#allocation2 + $0x207] ss:$8 sm:$0xf]  ;;  %v1087_v47 = vld [vmem:[#allocation2 + $0x206] ss:$8 sm:$0xf] }
  0xfb   :  { %1302 = vst.msk [vmem:[%s2290_s1 + $0xc0] sm:$0xff] %vm472_vm0, %v577_v31  ;;  %481 = vst.msk [vmem:[%s2290_s1 + $0x40] sm:$0xff] %vm472_vm0, %v464_v42  ;;  %v1201_v30 = vld [vmem:[#allocation2 + $0x207] ss:$8 sm:$0xf0] }
  0xfc   :  { %v1088_v32 = vld [vmem:[#allocation2 + $0x206] ss:$8 sm:$0xf0] }
  0xfe   :  { %1014 = vxpose.xlu1.b32.cont [10/16] %v980_v43, 128  ;;  %v578_v53 = vpop.trf.xlu1  ;;  %901 = vxpose.xlu0.b32.cont [10/16] %v867_v9, 128  ;;  %v465_v20 = vpop.trf.xlu0  ;;  %v1174_v43 = vor.u32 %v1173_v38, %v1172_v0  ;;  %v1061_v9 = vor.u32 %v1060_v41, %v1059_v19  ;;  %v1204_v0 = vld [vmem:[#allocation2 + $0x247] ss:$8 sm:$0xf]  ;;  %v1091_v19 = vld [vmem:[#allocation2 + $0x246] ss:$8 sm:$0xf] }
  0xff   :  { %1303 = vst.msk [vmem:[%s2290_s1 + $0xc8] sm:$0xff] %vm472_vm0, %v578_v53  ;;  %482 = vst.msk [vmem:[%s2290_s1 + $0x48] sm:$0xff] %vm472_vm0, %v465_v20  ;;  %v1205_v38 = vld [vmem:[#allocation2 + $0x247] ss:$8 sm:$0xf0] }
 0x100   :  { %v1092_v41 = vld [vmem:[#allocation2 + $0x246] ss:$8 sm:$0xf0] }
 0x102   :  { %1015 = vxpose.xlu1.b32.cont [11/16] %v984_v54, 128  ;;  %v579_v57 = vpop.trf.xlu1  ;;  %902 = vxpose.xlu0.b32.cont [11/16] %v871_v58, 128  ;;  %v466_v6 = vpop.trf.xlu0  ;;  %v1178_v54 = vor.u32 %v1177_v27, %v1176_v44  ;;  %v1065_v58 = vor.u32 %v1064_v51, %v1063_v50  ;;  %v1208_v44 = vld [vmem:[#allocation2 + $0x287] ss:$8 sm:$0xf]  ;;  %v1095_v50 = vld [vmem:[#allocation2 + $0x286] ss:$8 sm:$0xf] }
 0x103   :  { %1304 = vst.msk [vmem:[%s2290_s1 + $0xd0] sm:$0xff] %vm472_vm0, %v579_v57  ;;  %483 = vst.msk [vmem:[%s2290_s1 + $0x50] sm:$0xff] %vm472_vm0, %v466_v6  ;;  %v1209_v27 = vld [vmem:[#allocation2 + $0x287] ss:$8 sm:$0xf0] }
 0x104   :  { %v1096_v51 = vld [vmem:[#allocation2 + $0x286] ss:$8 sm:$0xf0] }
 0x106   :  { %1016 = vxpose.xlu1.b32.cont [12/16] %v988_v3, 128  ;;  %v580_v17 = vpop.trf.xlu1  ;;  %903 = vxpose.xlu0.b32.cont [12/16] %v875_v11, 128  ;;  %v467_v5 = vpop.trf.xlu0  ;;  %v1182_v3 = vor.u32 %v1181_v61, %v1180_v59  ;;  %v1069_v11 = vor.u32 %v1068_v1, %v1067_v62  ;;  %v1212_v59 = vld [vmem:[#allocation2 + $0x2c7] ss:$8 sm:$0xf]  ;;  %v1099_v62 = vld [vmem:[#allocation2 + $0x2c6] ss:$8 sm:$0xf] }
 0x107   :  { %1305 = vst.msk [vmem:[%s2290_s1 + $0xd8] sm:$0xff] %vm472_vm0, %v580_v17  ;;  %484 = vst.msk [vmem:[%s2290_s1 + $0x58] sm:$0xff] %vm472_vm0, %v467_v5  ;;  %v1213_v61 = vld [vmem:[#allocation2 + $0x2c7] ss:$8 sm:$0xf0] }
 0x108   :  { %v1100_v1 = vld [vmem:[#allocation2 + $0x2c6] ss:$8 sm:$0xf0] }
 0x10a   :  { %1017 = vxpose.xlu1.b32.cont [13/16] %v992_v8, 128  ;;  %v581_v37 = vpop.trf.xlu1  ;;  %904 = vxpose.xlu0.b32.cont [13/16] %v879_v13, 128  ;;  %v468_v16 = vpop.trf.xlu0  ;;  %v1186_v8 = vor.u32 %v1185_v10, %v1184_v25  ;;  %v1073_v13 = vor.u32 %v1072_v55, %v1071_v7  ;;  %v1216_v25 = vld [vmem:[#allocation2 + $0x307] ss:$8 sm:$0xf]  ;;  %v1103_v7 = vld [vmem:[#allocation2 + $0x306] ss:$8 sm:$0xf] }
 0x10b   :  { %1306 = vst.msk [vmem:[%s2290_s1 + $0xe0] sm:$0xff] %vm472_vm0, %v581_v37  ;;  %485 = vst.msk [vmem:[%s2290_s1 + $0x60] sm:$0xff] %vm472_vm0, %v468_v16  ;;  %v1217_v10 = vld [vmem:[#allocation2 + $0x307] ss:$8 sm:$0xf0] }
 0x10c   :  { %v1104_v55 = vld [vmem:[#allocation2 + $0x306] ss:$8 sm:$0xf0] }
 0x10e   :  { %1018 = vxpose.xlu1.b32.cont [14/16] %v996_v12, 128  ;;  %v582_v56 = vpop.trf.xlu1  ;;  %905 = vxpose.xlu0.b32.cont [14/16] %v883_v39, 128  ;;  %v469_v21 = vpop.trf.xlu0  ;;  %v1190_v12 = vor.u32 %v1189_v34, %v1188_v23  ;;  %v1077_v39 = vor.u32 %v1076_v45, %v1075_v49  ;;  %v1220_v23 = vld [vmem:[#allocation2 + $0x347] ss:$8 sm:$0xf]  ;;  %v1107_v49 = vld [vmem:[#allocation2 + $0x346] ss:$8 sm:$0xf] }
 0x10f   :  { %1307 = vst.msk [vmem:[%s2290_s1 + $0xe8] sm:$0xff] %vm472_vm0, %v582_v56  ;;  %486 = vst.msk [vmem:[%s2290_s1 + $0x68] sm:$0xff] %vm472_vm0, %v469_v21  ;;  %v1221_v34 = vld [vmem:[#allocation2 + $0x347] ss:$8 sm:$0xf0] }
 0x110   :  { %v1108_v45 = vld [vmem:[#allocation2 + $0x346] ss:$8 sm:$0xf0] }
 0x112   :  { %1019 = vxpose.xlu1.b32.cont [15/16] %v1000_v4, 128  ;;  %v583_v18 = vpop.trf.xlu1  ;;  %906 = vxpose.xlu0.b32.cont [15/16] %v887_v63, 128  ;;  %v470_v35 = vpop.trf.xlu0  ;;  %v1194_v4 = vor.u32 %v1193_v2, %v1192_v60  ;;  %v1081_v63 = vor.u32 %v1080_v15, %v1079_v33  ;;  %v1224_v60 = vld [vmem:[#allocation2 + $0x387] ss:$8 sm:$0xf]  ;;  %v1111_v33 = vld [vmem:[#allocation2 + $0x386] ss:$8 sm:$0xf] }
 0x113   :  { %1308 = vst.msk [vmem:[%s2290_s1 + $0xf0] sm:$0xff] %vm472_vm0, %v583_v18  ;;  %487 = vst.msk [vmem:[%s2290_s1 + $0x70] sm:$0xff] %vm472_vm0, %v470_v35  ;;  %v1225_v2 = vld [vmem:[#allocation2 + $0x387] ss:$8 sm:$0xf0] }
 0x114   :  { %v1112_v15 = vld [vmem:[#allocation2 + $0x386] ss:$8 sm:$0xf0] }
 0x116   :  { %1020 = vxpose.xlu1.b32.end [16/16] %v1004_v24, 128  ;;  %v584_v36 = vpop.trf.xlu1  ;;  %907 = vxpose.xlu0.b32.end [16/16] %v891_v26, 128  ;;  %v471_v52 = vpop.trf.xlu0  ;;  %v1198_v24 = vor.u32 %v1197_v22, %v1196_v46  ;;  %v1085_v26 = vor.u32 %v1084_v14, %v1083_v28  ;;  %v1228_v46 = vld [vmem:[#allocation2 + $0x3c7] ss:$8 sm:$0xf]  ;;  %v1115_v28 = vld [vmem:[#allocation2 + $0x3c6] ss:$8 sm:$0xf] }
 0x117   :  { %1309 = vst.msk [vmem:[%s2290_s1 + $0xf8] sm:$0xff] %vm472_vm0, %v584_v36  ;;  %488 = vst.msk [vmem:[%s2290_s1 + $0x78] sm:$0xff] %vm472_vm0, %v471_v52  ;;  %v1229_v22 = vld [vmem:[#allocation2 + $0x3c7] ss:$8 sm:$0xf0] }
 0x118   :  { %v1116_v14 = vld [vmem:[#allocation2 + $0x3c6] ss:$8 sm:$0xf0] }
 0x11a   :  { %1231 = vxpose.xlu1.b32.start [1/16] %v1170_v40, 128  ;;  %v795_v31 = vpop.trf.xlu1  ;;  %1118 = vxpose.xlu0.b32.start [1/16] %v1057_v48, 128  ;;  %v682_v42 = vpop.trf.xlu0  ;;  %v1202_v40 = vor.u32 %v1201_v30, %v1200_v29  ;;  %v1089_v48 = vor.u32 %v1088_v32, %v1087_v47 }
 0x11b   :  { %1326 = vst.msk [vmem:[%s2290_s1 + $0x180] sm:$0xff] %vm472_vm0, %v795_v31  ;;  %1310 = vst.msk [vmem:[%s2290_s1 + $0x100] sm:$0xff] %vm472_vm0, %v682_v42 }
 0x11e   :  { %1232 = vxpose.xlu1.b32.cont [2/16] %v1174_v43, 128  ;;  %v796_v53 = vpop.trf.xlu1  ;;  %1119 = vxpose.xlu0.b32.cont [2/16] %v1061_v9, 128  ;;  %v683_v20 = vpop.trf.xlu0  ;;  %v1206_v43 = vor.u32 %v1205_v38, %v1204_v0  ;;  %v1093_v9 = vor.u32 %v1092_v41, %v1091_v19 }
 0x11f   :  { %1327 = vst.msk [vmem:[%s2290_s1 + $0x188] sm:$0xff] %vm472_vm0, %v796_v53  ;;  %1311 = vst.msk [vmem:[%s2290_s1 + $0x108] sm:$0xff] %vm472_vm0, %v683_v20 }
 0x122   :  { %1233 = vxpose.xlu1.b32.cont [3/16] %v1178_v54, 128  ;;  %v797_v57 = vpop.trf.xlu1  ;;  %1120 = vxpose.xlu0.b32.cont [3/16] %v1065_v58, 128  ;;  %v684_v6 = vpop.trf.xlu0  ;;  %v1210_v54 = vor.u32 %v1209_v27, %v1208_v44  ;;  %v1097_v58 = vor.u32 %v1096_v51, %v1095_v50 }
 0x123   :  { %1328 = vst.msk [vmem:[%s2290_s1 + $0x190] sm:$0xff] %vm472_vm0, %v797_v57  ;;  %1312 = vst.msk [vmem:[%s2290_s1 + $0x110] sm:$0xff] %vm472_vm0, %v684_v6 }
 0x126   :  { %1234 = vxpose.xlu1.b32.cont [4/16] %v1182_v3, 128  ;;  %v798_v17 = vpop.trf.xlu1  ;;  %1121 = vxpose.xlu0.b32.cont [4/16] %v1069_v11, 128  ;;  %v685_v5 = vpop.trf.xlu0  ;;  %v1214_v3 = vor.u32 %v1213_v61, %v1212_v59  ;;  %v1101_v11 = vor.u32 %v1100_v1, %v1099_v62 }
 0x127   :  { %1329 = vst.msk [vmem:[%s2290_s1 + $0x198] sm:$0xff] %vm472_vm0, %v798_v17  ;;  %1313 = vst.msk [vmem:[%s2290_s1 + $0x118] sm:$0xff] %vm472_vm0, %v685_v5 }
 0x12a   :  { %1235 = vxpose.xlu1.b32.cont [5/16] %v1186_v8, 128  ;;  %v799_v37 = vpop.trf.xlu1  ;;  %1122 = vxpose.xlu0.b32.cont [5/16] %v1073_v13, 128  ;;  %v686_v16 = vpop.trf.xlu0  ;;  %v1218_v8 = vor.u32 %v1217_v10, %v1216_v25  ;;  %v1105_v13 = vor.u32 %v1104_v55, %v1103_v7 }
 0x12b   :  { %1330 = vst.msk [vmem:[%s2290_s1 + $0x1a0] sm:$0xff] %vm472_vm0, %v799_v37  ;;  %1314 = vst.msk [vmem:[%s2290_s1 + $0x120] sm:$0xff] %vm472_vm0, %v686_v16 }
 0x12e   :  { %1236 = vxpose.xlu1.b32.cont [6/16] %v1190_v12, 128  ;;  %v800_v56 = vpop.trf.xlu1  ;;  %1123 = vxpose.xlu0.b32.cont [6/16] %v1077_v39, 128  ;;  %v687_v21 = vpop.trf.xlu0  ;;  %v1222_v12 = vor.u32 %v1221_v34, %v1220_v23  ;;  %v1109_v39 = vor.u32 %v1108_v45, %v1107_v49 }
 0x12f   :  { %1331 = vst.msk [vmem:[%s2290_s1 + $0x1a8] sm:$0xff] %vm472_vm0, %v800_v56  ;;  %1315 = vst.msk [vmem:[%s2290_s1 + $0x128] sm:$0xff] %vm472_vm0, %v687_v21 }
 0x132   :  { %1237 = vxpose.xlu1.b32.cont [7/16] %v1194_v4, 128  ;;  %v801_v18 = vpop.trf.xlu1  ;;  %1124 = vxpose.xlu0.b32.cont [7/16] %v1081_v63, 128  ;;  %v688_v35 = vpop.trf.xlu0  ;;  %v1226_v4 = vor.u32 %v1225_v2, %v1224_v60  ;;  %v1113_v63 = vor.u32 %v1112_v15, %v1111_v33 }
 0x133   :  { %1332 = vst.msk [vmem:[%s2290_s1 + $0x1b0] sm:$0xff] %vm472_vm0, %v801_v18  ;;  %1316 = vst.msk [vmem:[%s2290_s1 + $0x130] sm:$0xff] %vm472_vm0, %v688_v35 }
 0x136   :  { %1238 = vxpose.xlu1.b32.cont [8/16] %v1198_v24, 128  ;;  %v802_v36 = vpop.trf.xlu1  ;;  %1125 = vxpose.xlu0.b32.cont [8/16] %v1085_v26, 128  ;;  %v689_v52 = vpop.trf.xlu0  ;;  %v1230_v24 = vor.u32 %v1229_v22, %v1228_v46  ;;  %v1117_v26 = vor.u32 %v1116_v14, %v1115_v28 }
 0x137   :  { %1333 = vst.msk [vmem:[%s2290_s1 + $0x1b8] sm:$0xff] %vm472_vm0, %v802_v36  ;;  %1317 = vst.msk [vmem:[%s2290_s1 + $0x138] sm:$0xff] %vm472_vm0, %v689_v52 }
 0x13a   :  { %1239 = vxpose.xlu1.b32.cont [9/16] %v1202_v40, 128  ;;  %v803_v31 = vpop.trf.xlu1  ;;  %1126 = vxpose.xlu0.b32.cont [9/16] %v1089_v48, 128  ;;  %v690_v42 = vpop.trf.xlu0 }
 0x13b   :  { %1334 = vst.msk [vmem:[%s2290_s1 + $0x1c0] sm:$0xff] %vm472_vm0, %v803_v31  ;;  %1318 = vst.msk [vmem:[%s2290_s1 + $0x140] sm:$0xff] %vm472_vm0, %v690_v42 }
 0x13e   :  { %1240 = vxpose.xlu1.b32.cont [10/16] %v1206_v43, 128  ;;  %v804_v53 = vpop.trf.xlu1  ;;  %1127 = vxpose.xlu0.b32.cont [10/16] %v1093_v9, 128  ;;  %v691_v20 = vpop.trf.xlu0 }
 0x13f   :  { %1335 = vst.msk [vmem:[%s2290_s1 + $0x1c8] sm:$0xff] %vm472_vm0, %v804_v53  ;;  %1319 = vst.msk [vmem:[%s2290_s1 + $0x148] sm:$0xff] %vm472_vm0, %v691_v20 }
 0x142   :  { %1241 = vxpose.xlu1.b32.cont [11/16] %v1210_v54, 128  ;;  %v805_v57 = vpop.trf.xlu1  ;;  %1128 = vxpose.xlu0.b32.cont [11/16] %v1097_v58, 128  ;;  %v692_v6 = vpop.trf.xlu0 }
 0x143   :  { %1336 = vst.msk [vmem:[%s2290_s1 + $0x1d0] sm:$0xff] %vm472_vm0, %v805_v57  ;;  %1320 = vst.msk [vmem:[%s2290_s1 + $0x150] sm:$0xff] %vm472_vm0, %v692_v6 }
 0x146   :  { %1242 = vxpose.xlu1.b32.cont [12/16] %v1214_v3, 128  ;;  %v806_v17 = vpop.trf.xlu1  ;;  %1129 = vxpose.xlu0.b32.cont [12/16] %v1101_v11, 128  ;;  %v693_v5 = vpop.trf.xlu0 }
 0x147   :  { %1337 = vst.msk [vmem:[%s2290_s1 + $0x1d8] sm:$0xff] %vm472_vm0, %v806_v17  ;;  %1321 = vst.msk [vmem:[%s2290_s1 + $0x158] sm:$0xff] %vm472_vm0, %v693_v5 }
 0x14a   :  { %1243 = vxpose.xlu1.b32.cont [13/16] %v1218_v8, 128  ;;  %v807_v37 = vpop.trf.xlu1  ;;  %1130 = vxpose.xlu0.b32.cont [13/16] %v1105_v13, 128  ;;  %v694_v16 = vpop.trf.xlu0 }
 0x14b   :  { %1338 = vst.msk [vmem:[%s2290_s1 + $0x1e0] sm:$0xff] %vm472_vm0, %v807_v37  ;;  %1322 = vst.msk [vmem:[%s2290_s1 + $0x160] sm:$0xff] %vm472_vm0, %v694_v16 }
 0x14e   :  { %1244 = vxpose.xlu1.b32.cont [14/16] %v1222_v12, 128  ;;  %v808_v56 = vpop.trf.xlu1  ;;  %1131 = vxpose.xlu0.b32.cont [14/16] %v1109_v39, 128  ;;  %v695_v21 = vpop.trf.xlu0 }
 0x14f   :  { %1339 = vst.msk [vmem:[%s2290_s1 + $0x1e8] sm:$0xff] %vm472_vm0, %v808_v56  ;;  %1323 = vst.msk [vmem:[%s2290_s1 + $0x168] sm:$0xff] %vm472_vm0, %v695_v21 }
 0x152   :  { %1245 = vxpose.xlu1.b32.cont [15/16] %v1226_v4, 128  ;;  %v809_v18 = vpop.trf.xlu1  ;;  %1132 = vxpose.xlu0.b32.cont [15/16] %v1113_v63, 128  ;;  %v696_v35 = vpop.trf.xlu0 }
 0x153   :  { %1340 = vst.msk [vmem:[%s2290_s1 + $0x1f0] sm:$0xff] %vm472_vm0, %v809_v18  ;;  %1324 = vst.msk [vmem:[%s2290_s1 + $0x170] sm:$0xff] %vm472_vm0, %v696_v35 }
 0x156   :  { %1246 = vxpose.xlu1.b32.end [16/16] %v1230_v24, 128  ;;  %v810_v29 = vpop.trf.xlu1  ;;  %1133 = vxpose.xlu0.b32.end [16/16] %v1117_v26, 128  ;;  %v697_v30 = vpop.trf.xlu0 }
 0x157   :  { %1341 = vst.msk [vmem:[%s2290_s1 + $0x1f8] sm:$0xff] %vm472_vm0, %v810_v29  ;;  %1325 = vst.msk [vmem:[%s2290_s1 + $0x178] sm:$0xff] %vm472_vm0, %v697_v30 }
 0x15a   :  { %v1021_v47 = vpop.trf.xlu1  ;;  %v908_v32 = vpop.trf.xlu0 }
 0x15b   :  { %1358 = vst.msk [vmem:[%s2290_s1 + $0x280] sm:$0xff] %vm472_vm0, %v1021_v47  ;;  %1342 = vst.msk [vmem:[%s2290_s1 + $0x200] sm:$0xff] %vm472_vm0, %v908_v32 }
 0x15e   :  { %v1022_v36 = vpop.trf.xlu1  ;;  %v909_v52 = vpop.trf.xlu0 }
 0x15f   :  { %1359 = vst.msk [vmem:[%s2290_s1 + $0x288] sm:$0xff] %vm472_vm0, %v1022_v36  ;;  %1343 = vst.msk [vmem:[%s2290_s1 + $0x208] sm:$0xff] %vm472_vm0, %v909_v52 }
 0x162   :  { %v1023_v40 = vpop.trf.xlu1  ;;  %v910_v48 = vpop.trf.xlu0 }
 0x163   :  { %1360 = vst.msk [vmem:[%s2290_s1 + $0x290] sm:$0xff] %vm472_vm0, %v1023_v40  ;;  %1344 = vst.msk [vmem:[%s2290_s1 + $0x210] sm:$0xff] %vm472_vm0, %v910_v48 }
 0x166   :  { %v1024_v0 = vpop.trf.xlu1  ;;  %v911_v38 = vpop.trf.xlu0 }
 0x167   :  { %1361 = vst.msk [vmem:[%s2290_s1 + $0x298] sm:$0xff] %vm472_vm0, %v1024_v0  ;;  %1345 = vst.msk [vmem:[%s2290_s1 + $0x218] sm:$0xff] %vm472_vm0, %v911_v38 }
 0x16a   :  { %v1025_v19 = vpop.trf.xlu1  ;;  %v912_v41 = vpop.trf.xlu0 }
 0x16b   :  { %1362 = vst.msk [vmem:[%s2290_s1 + $0x2a0] sm:$0xff] %vm472_vm0, %v1025_v19  ;;  %1346 = vst.msk [vmem:[%s2290_s1 + $0x220] sm:$0xff] %vm472_vm0, %v912_v41 }
 0x16e   :  { %v1026_v31 = vpop.trf.xlu1  ;;  %v913_v42 = vpop.trf.xlu0 }
 0x16f   :  { %1363 = vst.msk [vmem:[%s2290_s1 + $0x2a8] sm:$0xff] %vm472_vm0, %v1026_v31  ;;  %1347 = vst.msk [vmem:[%s2290_s1 + $0x228] sm:$0xff] %vm472_vm0, %v913_v42 }
 0x172   :  { %v1027_v43 = vpop.trf.xlu1  ;;  %v914_v9 = vpop.trf.xlu0 }
 0x173   :  { %1364 = vst.msk [vmem:[%s2290_s1 + $0x2b0] sm:$0xff] %vm472_vm0, %v1027_v43  ;;  %1348 = vst.msk [vmem:[%s2290_s1 + $0x230] sm:$0xff] %vm472_vm0, %v914_v9 }
 0x176   :  { %v1028_v44 = vpop.trf.xlu1  ;;  %v915_v27 = vpop.trf.xlu0 }
 0x177   :  { %1365 = vst.msk [vmem:[%s2290_s1 + $0x2b8] sm:$0xff] %vm472_vm0, %v1028_v44  ;;  %1349 = vst.msk [vmem:[%s2290_s1 + $0x238] sm:$0xff] %vm472_vm0, %v915_v27 }
 0x17a   :  { %v1029_v50 = vpop.trf.xlu1  ;;  %v916_v51 = vpop.trf.xlu0 }
 0x17b   :  { %1366 = vst.msk [vmem:[%s2290_s1 + $0x2c0] sm:$0xff] %vm472_vm0, %v1029_v50  ;;  %1350 = vst.msk [vmem:[%s2290_s1 + $0x240] sm:$0xff] %vm472_vm0, %v916_v51 }
 0x17e   :  { %v1030_v53 = vpop.trf.xlu1  ;;  %v917_v20 = vpop.trf.xlu0 }
 0x17f   :  { %1367 = vst.msk [vmem:[%s2290_s1 + $0x2c8] sm:$0xff] %vm472_vm0, %v1030_v53  ;;  %1351 = vst.msk [vmem:[%s2290_s1 + $0x248] sm:$0xff] %vm472_vm0, %v917_v20 }
 0x182   :  { %v1031_v54 = vpop.trf.xlu1  ;;  %v918_v58 = vpop.trf.xlu0 }
 0x183   :  { %1368 = vst.msk [vmem:[%s2290_s1 + $0x2d0] sm:$0xff] %vm472_vm0, %v1031_v54  ;;  %1352 = vst.msk [vmem:[%s2290_s1 + $0x250] sm:$0xff] %vm472_vm0, %v918_v58 }
 0x186   :  { %v1032_v59 = vpop.trf.xlu1  ;;  %v919_v61 = vpop.trf.xlu0 }
 0x187   :  { %1369 = vst.msk [vmem:[%s2290_s1 + $0x2d8] sm:$0xff] %vm472_vm0, %v1032_v59  ;;  %1353 = vst.msk [vmem:[%s2290_s1 + $0x258] sm:$0xff] %vm472_vm0, %v919_v61 }
 0x18a   :  { %v1033_v62 = vpop.trf.xlu1  ;;  %v920_v1 = vpop.trf.xlu0 }
 0x18b   :  { %1370 = vst.msk [vmem:[%s2290_s1 + $0x2e0] sm:$0xff] %vm472_vm0, %v1033_v62  ;;  %1354 = vst.msk [vmem:[%s2290_s1 + $0x260] sm:$0xff] %vm472_vm0, %v920_v1 }
 0x18e   :  { %v1034_v57 = vpop.trf.xlu1  ;;  %v921_v6 = vpop.trf.xlu0 }
 0x18f   :  { %1371 = vst.msk [vmem:[%s2290_s1 + $0x2e8] sm:$0xff] %vm472_vm0, %v1034_v57  ;;  %1355 = vst.msk [vmem:[%s2290_s1 + $0x268] sm:$0xff] %vm472_vm0, %v921_v6 }
 0x192   :  { %v1035_v3 = vpop.trf.xlu1  ;;  %v922_v11 = vpop.trf.xlu0 }
 0x193   :  { %1372 = vst.msk [vmem:[%s2290_s1 + $0x2f0] sm:$0xff] %vm472_vm0, %v1035_v3  ;;  %1356 = vst.msk [vmem:[%s2290_s1 + $0x270] sm:$0xff] %vm472_vm0, %v922_v11 }
 0x196   :  { %v1036_v25 = vpop.trf.xlu1  ;;  %v923_v10 = vpop.trf.xlu0 }
 0x197   :  { %1373 = vst.msk [vmem:[%s2290_s1 + $0x2f8] sm:$0xff] %vm472_vm0, %v1036_v25  ;;  %1357 = vst.msk [vmem:[%s2290_s1 + $0x278] sm:$0xff] %vm472_vm0, %v923_v10 }
 0x19a   :  { %v1247_v7 = vpop.trf.xlu1  ;;  %v1134_v55 = vpop.trf.xlu0 }
 0x19b   :  { %1390 = vst.msk [vmem:[%s2290_s1 + $0x380] sm:$0xff] %vm472_vm0, %v1247_v7  ;;  %1374 = vst.msk [vmem:[%s2290_s1 + $0x300] sm:$0xff] %vm472_vm0, %v1134_v55 }
 0x19e   :  { %v1248_v17 = vpop.trf.xlu1  ;;  %v1135_v5 = vpop.trf.xlu0 }
 0x19f   :  { %1391 = vst.msk [vmem:[%s2290_s1 + $0x388] sm:$0xff] %vm472_vm0, %v1248_v17  ;;  %1375 = vst.msk [vmem:[%s2290_s1 + $0x308] sm:$0xff] %vm472_vm0, %v1135_v5 }
 0x1a2   :  { %v1249_v8 = vpop.trf.xlu1  ;;  %v1136_v13 = vpop.trf.xlu0 }
 0x1a3   :  { %1392 = vst.msk [vmem:[%s2290_s1 + $0x390] sm:$0xff] %vm472_vm0, %v1249_v8  ;;  %1376 = vst.msk [vmem:[%s2290_s1 + $0x310] sm:$0xff] %vm472_vm0, %v1136_v13 }
 0x1a6   :  { %v1250_v23 = vpop.trf.xlu1  ;;  %v1137_v34 = vpop.trf.xlu0 }
 0x1a7   :  { %1393 = vst.msk [vmem:[%s2290_s1 + $0x398] sm:$0xff] %vm472_vm0, %v1250_v23  ;;  %1377 = vst.msk [vmem:[%s2290_s1 + $0x318] sm:$0xff] %vm472_vm0, %v1137_v34 }
 0x1aa   :  { %v1251_v49 = vpop.trf.xlu1  ;;  %v1138_v45 = vpop.trf.xlu0 }
 0x1ab   :  { %1394 = vst.msk [vmem:[%s2290_s1 + $0x3a0] sm:$0xff] %vm472_vm0, %v1251_v49  ;;  %1378 = vst.msk [vmem:[%s2290_s1 + $0x320] sm:$0xff] %vm472_vm0, %v1138_v45 }
 0x1ae   :  { %v1252_v37 = vpop.trf.xlu1  ;;  %v1139_v16 = vpop.trf.xlu0 }
 0x1af   :  { %1395 = vst.msk [vmem:[%s2290_s1 + $0x3a8] sm:$0xff] %vm472_vm0, %v1252_v37  ;;  %1379 = vst.msk [vmem:[%s2290_s1 + $0x328] sm:$0xff] %vm472_vm0, %v1139_v16 }
 0x1b2   :  { %v1253_v12 = vpop.trf.xlu1  ;;  %v1140_v39 = vpop.trf.xlu0 }
 0x1b3   :  { %1396 = vst.msk [vmem:[%s2290_s1 + $0x3b0] sm:$0xff] %vm472_vm0, %v1253_v12  ;;  %1380 = vst.msk [vmem:[%s2290_s1 + $0x330] sm:$0xff] %vm472_vm0, %v1140_v39 }
 0x1b6   :  { %v1254_v60 = vpop.trf.xlu1  ;;  %v1141_v2 = vpop.trf.xlu0 }
 0x1b7   :  { %1397 = vst.msk [vmem:[%s2290_s1 + $0x3b8] sm:$0xff] %vm472_vm0, %v1254_v60  ;;  %1381 = vst.msk [vmem:[%s2290_s1 + $0x338] sm:$0xff] %vm472_vm0, %v1141_v2 }
 0x1ba   :  { %v1255_v33 = vpop.trf.xlu1  ;;  %v1142_v15 = vpop.trf.xlu0 }
 0x1bb   :  { %1398 = vst.msk [vmem:[%s2290_s1 + $0x3c0] sm:$0xff] %vm472_vm0, %v1255_v33  ;;  %1382 = vst.msk [vmem:[%s2290_s1 + $0x340] sm:$0xff] %vm472_vm0, %v1142_v15 }
 0x1be   :  { %v1256_v56 = vpop.trf.xlu1  ;;  %v1143_v21 = vpop.trf.xlu0 }
 0x1bf   :  { %1399 = vst.msk [vmem:[%s2290_s1 + $0x3c8] sm:$0xff] %vm472_vm0, %v1256_v56  ;;  %1383 = vst.msk [vmem:[%s2290_s1 + $0x348] sm:$0xff] %vm472_vm0, %v1143_v21 }
 0x1c2   :  { %v1257_v4 = vpop.trf.xlu1  ;;  %v1144_v63 = vpop.trf.xlu0 }
 0x1c3   :  { %1400 = vst.msk [vmem:[%s2290_s1 + $0x3d0] sm:$0xff] %vm472_vm0, %v1257_v4  ;;  %1384 = vst.msk [vmem:[%s2290_s1 + $0x350] sm:$0xff] %vm472_vm0, %v1144_v63 }
 0x1c6   :  { %v1258_v46 = vpop.trf.xlu1  ;;  %v1145_v22 = vpop.trf.xlu0 }
 0x1c7   :  { %1401 = vst.msk [vmem:[%s2290_s1 + $0x3d8] sm:$0xff] %vm472_vm0, %v1258_v46  ;;  %1385 = vst.msk [vmem:[%s2290_s1 + $0x358] sm:$0xff] %vm472_vm0, %v1145_v22 }
 0x1ca   :  { %v1259_v28 = vpop.trf.xlu1  ;;  %v1146_v14 = vpop.trf.xlu0 }
 0x1cb   :  { %1402 = vst.msk [vmem:[%s2290_s1 + $0x3e0] sm:$0xff] %vm472_vm0, %v1259_v28  ;;  %1386 = vst.msk [vmem:[%s2290_s1 + $0x360] sm:$0xff] %vm472_vm0, %v1146_v14 }
 0x1ce   :  { %v1260_v18 = vpop.trf.xlu1  ;;  %v1147_v35 = vpop.trf.xlu0 }
 0x1cf   :  { %1403 = vst.msk [vmem:[%s2290_s1 + $0x3e8] sm:$0xff] %vm472_vm0, %v1260_v18  ;;  %1387 = vst.msk [vmem:[%s2290_s1 + $0x368] sm:$0xff] %vm472_vm0, %v1147_v35 }
 0x1d2   :  { %v1261_v24 = vpop.trf.xlu1  ;;  %v1148_v26 = vpop.trf.xlu0 }
 0x1d3   :  { %1404 = vst.msk [vmem:[%s2290_s1 + $0x3f0] sm:$0xff] %vm472_vm0, %v1261_v24  ;;  %1388 = vst.msk [vmem:[%s2290_s1 + $0x370] sm:$0xff] %vm472_vm0, %v1148_v26 }
 0x1d6   :  { %v1262_v29 = vpop.trf.xlu1  ;;  %v1149_v30 = vpop.trf.xlu0 }
 0x1d7   :  { %1405 = vst.msk [vmem:[%s2290_s1 + $0x3f8] sm:$0xff] %vm472_vm0, %v1262_v29  ;;  %1389 = vst.msk [vmem:[%s2290_s1 + $0x378] sm:$0xff] %vm472_vm0, %v1149_v30 }
 0x1d8   :  { %1284 = vsyncpa [#allocation4], 1 }

// kernel: tpu_custom_call.1
= control target key start
LH: loop header
LB: loop body
LE: loop exit
PB: predicated region body
PF: predicated region fallthrough
CT: control target
= control target key end

     0   :  { %6 = vsyncpa [#allocation3], 0  ;;  %s940_s0 = inlined_call_operand.hbm [shape: f32[3,8,128], index: 0, kind: input, shape index: {}]   ;;  %s941_s1 = inlined_call_operand.hbm [shape: f32[81,8,128], index: 1, kind: output, shape index: {}]  }
   0x1   :  { %7 = vsyncpa [#allocation4], 0  ;;  %s697_s6 = smov [#allocation2]   ;;  %s649_s10 = scalar_lea.hbm %s940_s0, 384 }
   0x2   :  { %s13_s7 = sshll.u32 %s697_s6, 4  ;;  %p650_p0 = scmp.ne.s32.totalorder %s940_s0, %s649_s10  ;;  %s14_s7 = int_to_ptr.vmem [resolvable:$true] %s13_s7 }
   0x3   :  { %p653_p1 = scmp.lt.u32.totalorder %s649_s10, %s940_s0 }
   0x5   :  { %p655_p2 = pnand %p653_p1, %p650_p0 }
   0x7   :  { %658 = shalt.err (!%p655_p2)
}
   0x8   :  { %s659_s15 = scalar_lea.vmem %s14_s7, 384  ;;  %p664_p4 = scmp.lt.s32.totalorder %s14_s7, %s14_s7 }
   0x9   :  { %p660_p3 = scmp.ne.s32.totalorder %s14_s7, %s659_s15  ;;  %p665_p5 = scmp.lt.s32.totalorder %s659_s15, %s659_s15 }
   0xb   :  { %p666_p6 = por %p665_p5, %p664_p4 }
   0xd   :  { %p667_p7 = pnand %p666_p6, %p660_p3 }
   0xf   :  { %670 = shalt.err (!%p667_p7)
}
  0x10   :  { %s698_s16 = smov 128   ;;  %s699_s17 = smov 8  }
  0x11   :  { %19 = dma.hbm_to_vmem [thread:$0]  %s940_s0, 384, %s14_s7, [#allocation3], %s698_s16, %s698_s16, %s699_s17  }
  0x12   :  { %693 = dma.done.wait [#allocation3], 384  }
  0x13   :  { %694 = vsyncadd [#allocation3], 4294966912  ;;  %v700_v0 = vmov 0.2820948   ;;  %v23_v1 = vld [vmem:[#allocation2] sm:$0xff]  ;;  %v26_v2 = vld [vmem:[#allocation2 + $0x8] sm:$0xff] }
  0x14   :  { %39 = vst [vmem:[#allocation5] sm:$0xff] %v700_v0  ;;  %v29_v3 = vld [vmem:[#allocation2 + $0x10] sm:$0xff]  ;;  %v30_v4 = vmul.f32 %v23_v1, %v23_v1  ;;  %v31_v5 = vmul.f32 %v26_v2, %v26_v2  ;;  %s701_s0 = smov [#allocation5]  }
  0x15   :  { %v33_v6 = vmul.f32 %v29_v3, %v29_v3  ;;  %s541_s20 = sshll.u32 %s701_s0, 4  ;;  %s542_s20 = int_to_ptr.vmem [resolvable:$true] %s541_s20 }
  0x16   :  { %v32_v7 = vadd.f32 %v31_v5, %v30_v4  ;;  %s671_s21 = scalar_lea.vmem %s542_s20, 10368  ;;  %p676_p9 = scmp.lt.s32.totalorder %s542_s20, %s542_s20 }
  0x17   :  { %p672_p8 = scmp.ne.s32.totalorder %s542_s20, %s671_s21  ;;  %p677_p10 = scmp.lt.s32.totalorder %s671_s21, %s671_s21 }
  0x18   :  { %v34_v8 = vadd.f32 %v33_v6, %v32_v7 }
  0x19   :  { %p678_p11 = por %p677_p10, %p676_p9 }
  0x1a   :  { %647 = vrsqrt.f32 %v34_v8 }
  0x1b   :  { %p679_p12 = pnand %p678_p11, %p672_p8 }
  0x24   :  { %v648_v9 = vpop.eup %647 }
  0x25   :  { %v727_v10 = vmul.f32 %v648_v9, %v29_v3  ;;  %v729_v11 = vmul.f32 %v648_v9, %v23_v1  ;;  %v731_v12 = vmul.f32 %v648_v9, %v26_v2 }
  0x27   :  { %v40_v13 = vmul.f32 0.48860252, %v727_v10  ;;  %v43_v14 = vmul.f32 1.5, %v727_v10  ;;  %v50_v15 = vmul.f32 1.6666666, %v727_v10  ;;  %v58_v16 = vmul.f32 1.75, %v727_v10 }
  0x28   :  { %v52_v17 = vmul.f32 0.6666667, %v727_v10  ;;  %v739_v18 = vmul.f32 1.8, %v727_v10  ;;  %v742_v19 = vmul.f32 1.8333334, %v727_v10  ;;  %v192_v20 = vmul.f32 %v729_v11, %v729_v11 }
  0x29   :  { %42 = vst [vmem:[#allocation5 + $0x10] sm:$0xff] %v40_v13  ;;  %v44_v21 = vmul.f32 %v43_v14, %v727_v10  ;;  %v748_v22 = vmul.f32 1.8571428, %v727_v10  ;;  %v751_v23 = vmul.f32 1.875, %v727_v10  ;;  %v98_v24 = vmul.f32 0.48860252, %v729_v11 }
  0x2a   :  { %v102_v25 = vmul.f32 0.48860252, %v731_v12  ;;  %v756_v26 = vmul.f32 3.0, %v727_v10  ;;  %v759_v27 = vmul.f32 2.5, %v727_v10  ;;  %v127_v28 = vmul.f32 2.3333333, %v727_v10 }
  0x2b   :  { %v635_v29 = vadd.f32 -0.5, %v44_v21  ;;  %101 = vst [vmem:[#allocation5 + $0x18] sm:$0xff] %v98_v24  ;;  %v140_v30 = vmul.f32 2.25, %v727_v10  ;;  %v764_v31 = vmul.f32 2.2, %v727_v10  ;;  %v193_v40 = vmul.f32 %v731_v12, %v731_v12 }
  0x2c   :  { %v767_v32 = vmul.f32 2.1666667, %v727_v10  ;;  %104 = vst [vmem:[#allocation5 + $0x8] sm:$0xff] %v102_v25  ;;  %v106_v33 = vmul.f32 0.3641828, %v756_v26  ;;  %v116_v34 = vmul.f32 %v759_v27, %v756_v26  ;;  %v195_v44 = vmul.f32 %v731_v12, %v729_v11 }
  0x2d   :  { %v129_v35 = vmul.f32 1.3333334, %v756_v26  ;;  %v774_v36 = vmul.f32 2.142857, %v727_v10  ;;  %v46_v37 = vmul.f32 0.63078314, %v635_v29  ;;  %v51_v38 = vmul.f32 %v635_v29, %v50_v15 }
  0x2e   :  { %v60_v39 = vmul.f32 0.75, %v635_v29  ;;  %v107_v41 = vmul.f32 %v106_v33, %v729_v11  ;;  %v111_v42 = vmul.f32 %v106_v33, %v731_v12  ;;  %v636_v43 = vadd.f32 -1.5, %v116_v34 }
  0x2f   :  { %49 = vst [vmem:[#allocation5 + $0x30] sm:$0xff] %v46_v37  ;;  %v53_v45 = vsub.f32 %v51_v38, %v52_v17  ;;  %v782_v46 = vsub.f32 %v192_v20, %v193_v40  ;;  %v205_v47 = vmul.f32 15.0, %v727_v10  ;;  %v215_v48 = vmul.f32 3.5, %v727_v10 }
  0x30   :  { %110 = vst [vmem:[#allocation5 + $0x38] sm:$0xff] %v107_v41  ;;  %114 = vst [vmem:[#allocation5 + $0x28] sm:$0xff] %v111_v42  ;;  %v118_v49 = vmul.f32 0.3046972, %v636_v43  ;;  %v128_v50 = vmul.f32 %v636_v43, %v127_v28  ;;  %v142_v51 = vmul.f32 1.25, %v636_v43  ;;  %v786_v52 = vadd.f32 %v195_v44, %v195_v44 }
  0x31   :  { %v54_v53 = vmul.f32 0.7463527, %v53_v45  ;;  %v59_v54 = vmul.f32 %v58_v16, %v53_v45  ;;  %v68_v55 = vmul.f32 0.8, %v53_v45  ;;  %v197_v56 = vmul.f32 0.54627424, %v782_v46 }
  0x32   :  { %v119_v57 = vmul.f32 %v118_v49, %v729_v11  ;;  %v123_v58 = vmul.f32 %v118_v49, %v731_v12  ;;  %v130_v59 = vsub.f32 %v128_v50, %v129_v35  ;;  %v201_v60 = vmul.f32 0.54627424, %v786_v52 }
  0x33   :  { %57 = vst [vmem:[#allocation5 + $0x60] sm:$0xff] %v54_v53  ;;  %v61_v61 = vsub.f32 %v59_v54, %v60_v39  ;;  %200 = vst [vmem:[#allocation5 + $0x40] sm:$0xff] %v197_v56  ;;  %v206_v62 = vmul.f32 0.09635372, %v205_v47  ;;  %v216_v63 = vmul.f32 %v215_v48, %v205_v47  ;;  %v228_v0 = vmul.f32 2.0, %v205_v47 }
  0x34   :  { %122 = vst [vmem:[#allocation5 + $0x68] sm:$0xff] %v119_v57  ;;  %126 = vst [vmem:[#allocation5 + $0x58] sm:$0xff] %v123_v58  ;;  %v131_v1 = vmul.f32 0.26761863, %v130_v59  ;;  %v141_v2 = vmul.f32 %v140_v30, %v130_v59  ;;  %v155_v3 = vmul.f32 1.2, %v130_v59  ;;  %v278_v28 = vmul.f32 %v786_v52, %v731_v12 }
  0x35   :  { %204 = vst [vmem:[#allocation5 + $0x20] sm:$0xff] %v201_v60  ;;  %v239_v4 = vmul.f32 2.75, %v727_v10  ;;  %v62_v5 = vmul.f32 0.8462844, %v61_v61  ;;  %v67_v6 = vmul.f32 %v739_v18, %v61_v61  ;;  %v76_v7 = vmul.f32 0.8333333, %v61_v61 }
  0x36   :  { %v207_v8 = vmul.f32 %v206_v62, %v782_v46  ;;  %v132_v9 = vmul.f32 %v131_v1, %v729_v11  ;;  %v136_v13 = vmul.f32 %v131_v1, %v731_v12  ;;  %v143_v14 = vsub.f32 %v141_v2, %v142_v51 }
  0x37   :  { %v211_v15 = vmul.f32 %v206_v62, %v786_v52  ;;  %65 = vst [vmem:[#allocation5 + $0xa0] sm:$0xff] %v62_v5  ;;  %v69_v16 = vsub.f32 %v67_v6, %v68_v55  ;;  %v637_v17 = vadd.f32 -7.5, %v216_v63  ;;  %v799_v20 = vmul.f32 2.6, %v727_v10 }
  0x38   :  { %210 = vst [vmem:[#allocation5 + $0x70] sm:$0xff] %v207_v8  ;;  %v277_v18 = vmul.f32 %v782_v46, %v729_v11  ;;  %135 = vst [vmem:[#allocation5 + $0xa8] sm:$0xff] %v132_v9  ;;  %v144_v21 = vmul.f32 0.24157155, %v143_v14  ;;  %v154_v24 = vmul.f32 %v764_v31, %v143_v14  ;;  %v168_v25 = vmul.f32 1.1666666, %v143_v14 }
  0x39   :  { %139 = vst [vmem:[#allocation5 + $0x98] sm:$0xff] %v136_v13  ;;  %214 = vst [vmem:[#allocation5 + $0x50] sm:$0xff] %v211_v15  ;;  %v70_v29 = vmul.f32 0.9356026, %v69_v16  ;;  %v75_v30 = vmul.f32 %v742_v19, %v69_v16  ;;  %v84_v33 = vmul.f32 0.85714287, %v69_v16  ;;  %v227_v39 = vmul.f32 %v637_v17, %v756_v26 }
  0x3a   :  { %v218_v34 = vmul.f32 0.063078314, %v637_v17  ;;  %v145_v35 = vmul.f32 %v144_v21, %v729_v11  ;;  %v149_v37 = vmul.f32 %v144_v21, %v731_v12  ;;  %v156_v38 = vsub.f32 %v154_v24, %v155_v3 }
  0x3b   :  { %73 = vst [vmem:[#allocation5 + $0xf0] sm:$0xff] %v70_v29  ;;  %v77_v40 = vsub.f32 %v75_v30, %v76_v7  ;;  %v241_v42 = vmul.f32 1.75, %v637_v17  ;;  %v229_v45 = vsub.f32 %v227_v39, %v228_v0  ;;  %v814_v50 = vsub.f32 %v277_v18, %v278_v28 }
  0x3c   :  { %v219_v31 = vmul.f32 %v218_v34, %v782_v46  ;;  %v223_v41 = vmul.f32 %v218_v34, %v786_v52  ;;  %148 = vst [vmem:[#allocation5 + $0xf8] sm:$0xff] %v145_v35  ;;  %152 = vst [vmem:[#allocation5 + $0xe8] sm:$0xff] %v149_v37  ;;  %v157_v43 = vmul.f32 0.221951, %v156_v38  ;;  %v167_v19 = vmul.f32 %v767_v32, %v156_v38 }
  0x3d   :  { %v181_v44 = vmul.f32 1.1428572, %v156_v38  ;;  %v78_v47 = vmul.f32 1.0171072, %v77_v40  ;;  %v83_v48 = vmul.f32 %v748_v22, %v77_v40  ;;  %v92_v49 = vmul.f32 0.875, %v77_v40 }
  0x3e   :  { %222 = vst [vmem:[#allocation5 + $0xb0] sm:$0xff] %v219_v31  ;;  %226 = vst [vmem:[#allocation5 + $0x90] sm:$0xff] %v223_v41  ;;  %v158_v51 = vmul.f32 %v157_v43, %v729_v11  ;;  %v162_v53 = vmul.f32 %v157_v43, %v731_v12  ;;  %v169_v54 = vsub.f32 %v167_v19, %v168_v25  ;;  %v230_v55 = vmul.f32 0.045652732, %v229_v45 }
  0x3f   :  { %81 = vst [vmem:[#allocation5 + $0x150] sm:$0xff] %v78_v47  ;;  %v85_v56 = vsub.f32 %v83_v48, %v84_v33  ;;  %v240_v57 = vmul.f32 %v239_v4, %v229_v45  ;;  %v254_v32 = vmul.f32 1.6, %v229_v45  ;;  %v283_v58 = vmul.f32 0.5900436, %v814_v50 }
  0x40   :  { %161 = vst [vmem:[#allocation5 + $0x158] sm:$0xff] %v158_v51  ;;  %165 = vst [vmem:[#allocation5 + $0x148] sm:$0xff] %v162_v53  ;;  %v170_v22 = vmul.f32 0.20647225, %v169_v54  ;;  %v180_v59 = vmul.f32 %v774_v36, %v169_v54  ;;  %v231_v60 = vmul.f32 %v230_v55, %v782_v46  ;;  %v235_v61 = vmul.f32 %v230_v55, %v786_v52 }
  0x41   :  { %v86_v62 = vmul.f32 1.0925485, %v85_v56  ;;  %v91_v63 = vmul.f32 %v751_v23, %v85_v56  ;;  %v242_v0 = vsub.f32 %v240_v57, %v241_v42  ;;  %286 = vst [vmem:[#allocation5 + $0x78] sm:$0xff] %v283_v58  ;;  %v280_v1 = vmul.f32 %v782_v46, %v731_v12 }
  0x42   :  { %v171_v2 = vmul.f32 %v170_v22, %v729_v11  ;;  %v175_v3 = vmul.f32 %v170_v22, %v731_v12  ;;  %v182_v4 = vsub.f32 %v180_v59, %v181_v44  ;;  %234 = vst [vmem:[#allocation5 + $0x100] sm:$0xff] %v231_v60  ;;  %238 = vst [vmem:[#allocation5 + $0xe0] sm:$0xff] %v235_v61  ;;  %v291_v13 = vmul.f32 105.0, %v727_v10 }
  0x43   :  { %v281_v36 = vmul.f32 %v786_v52, %v729_v11  ;;  %89 = vst [vmem:[#allocation5 + $0x1c0] sm:$0xff] %v86_v62  ;;  %v93_v5 = vsub.f32 %v91_v63, %v92_v49  ;;  %v243_v6 = vmul.f32 0.035093535, %v242_v0  ;;  %v253_v23 = vmul.f32 %v799_v20, %v242_v0 }
  0x44   :  { %v266_v7 = vmul.f32 1.5, %v242_v0  ;;  %174 = vst [vmem:[#allocation5 + $0x1c8] sm:$0xff] %v171_v2  ;;  %178 = vst [vmem:[#allocation5 + $0x1b8] sm:$0xff] %v175_v3  ;;  %v183_v8 = vmul.f32 0.1938511, %v182_v4  ;;  %v301_v14 = vmul.f32 4.5, %v727_v10  ;;  %v354_v43 = vmul.f32 %v814_v50, %v731_v12 }
  0x45   :  { %v830_v9 = vadd.f32 %v281_v36, %v280_v1  ;;  %v94_v15 = vmul.f32 1.1631067, %v93_v5  ;;  %v244_v16 = vmul.f32 %v243_v6, %v782_v46  ;;  %v248_v17 = vmul.f32 %v243_v6, %v786_v52 }
  0x46   :  { %v255_v18 = vsub.f32 %v253_v23, %v254_v32  ;;  %v184_v21 = vmul.f32 %v183_v8, %v729_v11  ;;  %v188_v20 = vmul.f32 %v183_v8, %v731_v12  ;;  %v292_v25 = vmul.f32 0.016858388, %v291_v13 }
  0x47   :  { %v287_v24 = vmul.f32 0.5900436, %v830_v9  ;;  %97 = vst [vmem:[#allocation5 + $0x240] sm:$0xff] %v94_v15  ;;  %247 = vst [vmem:[#allocation5 + $0x160] sm:$0xff] %v244_v16  ;;  %v302_v30 = vmul.f32 %v301_v14, %v291_v13  ;;  %v313_v33 = vmul.f32 3.6666667, %v727_v10  ;;  %v352_v42 = vmul.f32 %v830_v9, %v731_v12 }
  0x48   :  { %251 = vst [vmem:[#allocation5 + $0x140] sm:$0xff] %v248_v17  ;;  %v256_v28 = vmul.f32 0.028097313, %v255_v18  ;;  %v265_v29 = vmul.f32 %v255_v18, %v759_v27  ;;  %187 = vst [vmem:[#allocation5 + $0x248] sm:$0xff] %v184_v21  ;;  %v293_v34 = vmul.f32 %v292_v25, %v814_v50  ;;  %v297_v35 = vmul.f32 %v292_v25, %v830_v9 }
  0x49   :  { %191 = vst [vmem:[#allocation5 + $0x238] sm:$0xff] %v188_v20  ;;  %290 = vst [vmem:[#allocation5 + $0x48] sm:$0xff] %v287_v24  ;;  %v315_v37 = vmul.f32 2.6666667, %v291_v13  ;;  %v326_v38 = vmul.f32 3.25, %v727_v10  ;;  %v638_v41 = vadd.f32 -52.5, %v302_v30  ;;  %v351_v27 = vmul.f32 %v814_v50, %v729_v11 }
  0x4a   :  { %v257_v39 = vmul.f32 %v256_v28, %v782_v46  ;;  %v261_v40 = vmul.f32 %v256_v28, %v786_v52  ;;  %v267_v31 = vsub.f32 %v265_v29, %v266_v7  ;;  %296 = vst [vmem:[#allocation5 + $0xb8] sm:$0xff] %v293_v34  ;;  %300 = vst [vmem:[#allocation5 + $0x88] sm:$0xff] %v297_v35  ;;  %v365_v53 = vmul.f32 945.0, %v727_v10 }
  0x4b   :  { %v355_v19 = vmul.f32 %v830_v9, %v729_v11  ;;  %v304_v45 = vmul.f32 0.009318825, %v638_v41  ;;  %v314_v47 = vmul.f32 %v638_v41, %v313_v33  ;;  %v328_v48 = vmul.f32 2.25, %v638_v41 }
  0x4c   :  { %260 = vst [vmem:[#allocation5 + $0x1d0] sm:$0xff] %v257_v39  ;;  %264 = vst [vmem:[#allocation5 + $0x1b0] sm:$0xff] %v261_v40  ;;  %v268_v44 = vmul.f32 0.023169639, %v267_v31  ;;  %v854_v49 = vsub.f32 %v351_v27, %v352_v42  ;;  %v375_v54 = vmul.f32 5.5, %v727_v10  ;;  %v437_v39 = vmul.f32 6.5, %v727_v10 }
  0x4d   :  { %v856_v51 = vadd.f32 %v355_v19, %v354_v43  ;;  %v305_v57 = vmul.f32 %v304_v45, %v814_v50  ;;  %v309_v32 = vmul.f32 %v304_v45, %v830_v9  ;;  %v316_v58 = vsub.f32 %v314_v47, %v315_v37 }
  0x4e   :  { %v269_v55 = vmul.f32 %v268_v44, %v782_v46  ;;  %v273_v56 = vmul.f32 %v268_v44, %v786_v52  ;;  %v357_v22 = vmul.f32 0.6258357, %v854_v49  ;;  %v366_v60 = vmul.f32 0.002196468, %v365_v53 }
  0x4f   :  { %v361_v59 = vmul.f32 0.6258357, %v856_v51  ;;  %308 = vst [vmem:[#allocation5 + $0x108] sm:$0xff] %v305_v57  ;;  %312 = vst [vmem:[#allocation5 + $0xd8] sm:$0xff] %v309_v32  ;;  %v376_v61 = vmul.f32 %v375_v54, %v365_v53  ;;  %v387_v62 = vmul.f32 4.3333335, %v727_v10  ;;  %v327_v0 = vmul.f32 %v326_v38, %v316_v58 }
  0x50   :  { %272 = vst [vmem:[#allocation5 + $0x250] sm:$0xff] %v269_v55  ;;  %276 = vst [vmem:[#allocation5 + $0x230] sm:$0xff] %v273_v56  ;;  %v389_v46 = vmul.f32 3.3333333, %v365_v53  ;;  %v400_v52 = vmul.f32 3.75, %v727_v10  ;;  %v340_v1 = vmul.f32 2.0, %v316_v58  ;;  %v367_v2 = vmul.f32 %v366_v60, %v854_v49 }
  0x51   :  { %v317_v63 = vmul.f32 0.0058489223, %v316_v58  ;;  %360 = vst [vmem:[#allocation5 + $0xc0] sm:$0xff] %v357_v22  ;;  %364 = vst [vmem:[#allocation5 + $0x80] sm:$0xff] %v361_v59  ;;  %v371_v3 = vmul.f32 %v366_v60, %v856_v51  ;;  %v639_v4 = vadd.f32 -472.5, %v376_v61  ;;  %v413_v36 = vmul.f32 %v854_v49, %v729_v11 }
  0x52   :  { %v414_v5 = vmul.f32 %v856_v51, %v731_v12  ;;  %v329_v7 = vsub.f32 %v327_v0, %v328_v48  ;;  %370 = vst [vmem:[#allocation5 + $0x110] sm:$0xff] %v367_v2  ;;  %v416_v8 = vmul.f32 %v854_v49, %v731_v12  ;;  %v417_v21 = vmul.f32 %v856_v51, %v729_v11 }
  0x53   :  { %v318_v6 = vmul.f32 %v317_v63, %v814_v50  ;;  %v322_v23 = vmul.f32 %v317_v63, %v830_v9  ;;  %374 = vst [vmem:[#allocation5 + $0xd0] sm:$0xff] %v371_v3  ;;  %v378_v13 = vmul.f32 0.0010678623, %v639_v4  ;;  %v388_v14 = vmul.f32 %v639_v4, %v387_v62 }
  0x54   :  { %v402_v15 = vmul.f32 2.75, %v639_v4  ;;  %v878_v16 = vsub.f32 %v413_v36, %v414_v5  ;;  %v330_v17 = vmul.f32 0.0039735604, %v329_v7  ;;  %v339_v18 = vmul.f32 %v329_v7, %v756_v26 }
  0x55   :  { %321 = vst [vmem:[#allocation5 + $0x168] sm:$0xff] %v318_v6  ;;  %325 = vst [vmem:[#allocation5 + $0x138] sm:$0xff] %v322_v23  ;;  %v427_v20 = vmul.f32 10395.0, %v727_v10  ;;  %v379_v24 = vmul.f32 %v378_v13, %v854_v49  ;;  %v383_v25 = vmul.f32 %v378_v13, %v856_v51  ;;  %v390_v28 = vsub.f32 %v388_v14, %v389_v46 }
  0x56   :  { %v419_v29 = vmul.f32 0.6563821, %v878_v16  ;;  %v331_v30 = vmul.f32 %v330_v17, %v814_v50  ;;  %v335_v33 = vmul.f32 %v330_v17, %v830_v9  ;;  %v341_v34 = vsub.f32 %v339_v18, %v340_v1 }
  0x57   :  { %v889_v35 = vadd.f32 %v417_v21, %v416_v8  ;;  %382 = vst [vmem:[#allocation5 + $0x170] sm:$0xff] %v379_v24  ;;  %386 = vst [vmem:[#allocation5 + $0x130] sm:$0xff] %v383_v25  ;;  %v391_v26 = vmul.f32 0.00059903675, %v390_v28  ;;  %v401_v37 = vmul.f32 %v400_v52, %v390_v28  ;;  %v428_v38 = vmul.f32 0.00022766899, %v427_v20 }
  0x58   :  { %422 = vst [vmem:[#allocation5 + $0x118] sm:$0xff] %v419_v29  ;;  %334 = vst [vmem:[#allocation5 + $0x1d8] sm:$0xff] %v331_v30  ;;  %v342_v40 = vmul.f32 0.0028519854, %v341_v34  ;;  %v449_v41 = vmul.f32 5.0, %v727_v10  ;;  %v451_v27 = vmul.f32 4.0, %v427_v20  ;;  %v438_v53 = vmul.f32 %v437_v39, %v427_v20 }
  0x59   :  { %338 = vst [vmem:[#allocation5 + $0x1a8] sm:$0xff] %v335_v33  ;;  %v423_v31 = vmul.f32 0.6563821, %v889_v35  ;;  %v392_v42 = vmul.f32 %v391_v26, %v854_v49  ;;  %v396_v43 = vmul.f32 %v391_v26, %v856_v51  ;;  %v403_v19 = vsub.f32 %v401_v37, %v402_v15 }
  0x5a   :  { %v429_v44 = vmul.f32 %v428_v38, %v878_v16  ;;  %v343_v45 = vmul.f32 %v342_v40, %v814_v50  ;;  %v347_v47 = vmul.f32 %v342_v40, %v830_v9  ;;  %v433_v48 = vmul.f32 %v428_v38, %v889_v35 }
  0x5b   :  { %426 = vst [vmem:[#allocation5 + $0xc8] sm:$0xff] %v423_v31  ;;  %395 = vst [vmem:[#allocation5 + $0x1e0] sm:$0xff] %v392_v42  ;;  %v404_v54 = vmul.f32 0.00036818974, %v403_v19  ;;  %v462_v55 = vmul.f32 %v878_v16, %v729_v11  ;;  %v463_v56 = vmul.f32 %v889_v35, %v731_v12  ;;  %v465_v57 = vmul.f32 %v878_v16, %v731_v12 }
  0x5c   :  { %399 = vst [vmem:[#allocation5 + $0x1a0] sm:$0xff] %v396_v43  ;;  %432 = vst [vmem:[#allocation5 + $0x178] sm:$0xff] %v429_v44  ;;  %v640_v50 = vadd.f32 -5197.5, %v438_v53  ;;  %v466_v9 = vmul.f32 %v889_v35, %v729_v11  ;;  %v476_v32 = vmul.f32 135135.0, %v727_v10 }
  0x5d   :  { %346 = vst [vmem:[#allocation5 + $0x258] sm:$0xff] %v343_v45  ;;  %350 = vst [vmem:[#allocation5 + $0x228] sm:$0xff] %v347_v47  ;;  %v486_v58 = vmul.f32 7.5, %v727_v10  ;;  %v405_v22 = vmul.f32 %v404_v54, %v854_v49  ;;  %v409_v59 = vmul.f32 %v404_v54, %v856_v51  ;;  %v464_v60 = vsub.f32 %v462_v55, %v463_v56 }
  0x5e   :  { %436 = vst [vmem:[#allocation5 + $0x128] sm:$0xff] %v433_v48  ;;  %v512_v61 = vmul.f32 2027025.0, %v727_v10  ;;  %v440_v62 = vmul.f32 9.983946e-05, %v640_v50  ;;  %v450_v46 = vmul.f32 %v640_v50, %v449_v41  ;;  %v467_v52 = vadd.f32 %v466_v9, %v465_v57 }
  0x5f   :  { %v477_v63 = vmul.f32 1.9580128e-05, %v476_v32  ;;  %408 = vst [vmem:[#allocation5 + $0x260] sm:$0xff] %v405_v22  ;;  %412 = vst [vmem:[#allocation5 + $0x220] sm:$0xff] %v409_v59  ;;  %v468_v0 = vmul.f32 0.6831841, %v464_v60  ;;  %v487_v1 = vmul.f32 %v486_v58, %v476_v32  ;;  %v498_v2 = vmul.f32 %v464_v60, %v729_v11 }
  0x60   :  { %v501_v3 = vmul.f32 %v464_v60, %v731_v12  ;;  %v441_v4 = vmul.f32 %v440_v62, %v878_v16  ;;  %v445_v49 = vmul.f32 %v440_v62, %v889_v35  ;;  %v452_v51 = vsub.f32 %v450_v46, %v451_v27 }
  0x61   :  { %v472_v36 = vmul.f32 0.6831841, %v467_v52  ;;  %471 = vst [vmem:[#allocation5 + $0x180] sm:$0xff] %v468_v0  ;;  %v478_v10 = vmul.f32 %v477_v63, %v464_v60  ;;  %v482_v5 = vmul.f32 %v477_v63, %v467_v52  ;;  %v641_v6 = vadd.f32 -67567.5, %v487_v1 }
  0x62   :  { %v499_v23 = vmul.f32 %v467_v52, %v731_v12  ;;  %444 = vst [vmem:[#allocation5 + $0x1e8] sm:$0xff] %v441_v4  ;;  %448 = vst [vmem:[#allocation5 + $0x198] sm:$0xff] %v445_v49  ;;  %v453_v7 = vmul.f32 5.1058727e-05, %v452_v51  ;;  %v502_v8 = vmul.f32 %v467_v52, %v729_v11  ;;  %v513_v13 = vmul.f32 1.4384167e-06, %v512_v61 }
  0x63   :  { %475 = vst [vmem:[#allocation5 + $0x120] sm:$0xff] %v472_v36  ;;  %481 = vst [vmem:[#allocation5 + $0x1f0] sm:$0xff] %v478_v10  ;;  %v489_v14 = vmul.f32 7.878532e-06, %v641_v6 }
  0x64   :  { %485 = vst [vmem:[#allocation5 + $0x190] sm:$0xff] %v482_v5  ;;  %v500_v15 = vsub.f32 %v498_v2, %v499_v23  ;;  %v454_v17 = vmul.f32 %v453_v7, %v878_v16  ;;  %v458_v18 = vmul.f32 %v453_v7, %v889_v35  ;;  %v503_v21 = vadd.f32 %v502_v8, %v501_v3 }
  0x65   :  { %v490_v20 = vmul.f32 %v489_v14, %v464_v60  ;;  %v494_v24 = vmul.f32 %v489_v14, %v467_v52 }
  0x66   :  { %v504_v25 = vmul.f32 0.70716274, %v500_v15  ;;  %v514_v28 = vmul.f32 %v513_v13, %v500_v15  ;;  %457 = vst [vmem:[#allocation5 + $0x268] sm:$0xff] %v454_v17  ;;  %461 = vst [vmem:[#allocation5 + $0x218] sm:$0xff] %v458_v18  ;;  %v508_v29 = vmul.f32 0.70716274, %v503_v21  ;;  %v518_v30 = vmul.f32 %v513_v13, %v503_v21 }
  0x67   :  { %v522_v33 = vmul.f32 %v500_v15, %v729_v11  ;;  %v523_v34 = vmul.f32 %v503_v21, %v731_v12  ;;  %493 = vst [vmem:[#allocation5 + $0x270] sm:$0xff] %v490_v20  ;;  %497 = vst [vmem:[#allocation5 + $0x210] sm:$0xff] %v494_v24  ;;  %v525_v16 = vmul.f32 %v500_v15, %v731_v12 }
  0x68   :  { %507 = vst [vmem:[#allocation5 + $0x1f8] sm:$0xff] %v504_v25  ;;  %517 = vst [vmem:[#allocation5 + $0x278] sm:$0xff] %v514_v28  ;;  %v526_v35 = vmul.f32 %v503_v21, %v729_v11 }
  0x69   :  { %511 = vst [vmem:[#allocation5 + $0x188] sm:$0xff] %v508_v29  ;;  %521 = vst [vmem:[#allocation5 + $0x208] sm:$0xff] %v518_v30  ;;  %v524_v26 = vsub.f32 %v522_v33, %v523_v34 }
  0x6a   :  { %v527_v37 = vadd.f32 %v526_v35, %v525_v16 }
  0x6b   :  { %v528_v38 = vmul.f32 0.72892666, %v524_v26 }
  0x6c   :  { %v532_v39 = vmul.f32 0.72892666, %v527_v37 }
  0x6d   :  { %531 = vst [vmem:[#allocation5 + $0x280] sm:$0xff] %v528_v38 }
  0x6e   :  { %535 = vst [vmem:[#allocation5 + $0x200] sm:$0xff] %v532_v39 }
  0x6f   :  { %682 = shalt.err (!%p679_p12)
}
  0x70   :  { %s683_s24 = scalar_lea.hbm %s941_s1, 10368 }
  0x71   :  { %p684_p13 = scmp.ne.s32.totalorder %s941_s1, %s683_s24  ;;  %p687_p0 = scmp.lt.u32.totalorder %s683_s24, %s941_s1 }
  0x73   :  { %p689_p1 = pnand %p687_p0, %p684_p13 }
  0x75   :  { %692 = shalt.err (!%p689_p1)
}
  0x76   :  { %547 = dma.vmem_to_hbm [thread:$0]  %s542_s20, 10368, %s941_s1, [#allocation4], %s698_s16, %s698_s16, %s699_s17  }
  0x77   :  { %695 = dma.done.wait [#allocation4], 10368  }
  0x78   :  { %696 = vsyncadd [#allocation4], 4294956928 }
  0x79   :  { %551 = vsyncpa [#allocation3], 1 }
  0x7a   :  { %552 = vsyncpa [#allocation4], 1 }

</bundles_post_ra>
